<compile_context>
chip_gen: v7x
topology: tpu7x:2x2x1
jax: 0.10.0
libtpu: 0.0.40
codegen_flags: <defaults>
</compile_context>

<pallas_src>
import jax
import jax.numpy as jnp
from jax import lax
from jax.experimental import pallas as pl
from jax.experimental.pallas import tpu as pltpu


_CHANNELS = [(1, 3), (3, 16), (16, 1), (1, 3), (3, 16), (16, 1)]  # (cin, cout)
_CMAX = 16        # max channel count anywhere in the architecture
_PAD_OFF = 128    # lane-aligned offset of valid data inside the pad scratch


# ----------------------------------------------------------------------------
# Constant-matrix builders (plain JAX, evaluated in the wrapper under jit)
# ----------------------------------------------------------------------------
def bilinear_matrix(H):
    """(2H, H) bilinear 2x upsampling matrix (align_corners=False)."""
    Ho = 2 * H
    src = (jnp.arange(Ho, dtype=jnp.float32) + 0.5) / 2.0 - 0.5
    x0 = jnp.floor(src)
    t = src - x0
    i0 = jnp.clip(x0.astype(jnp.int32), 0, H - 1)
    i1 = jnp.clip(x0.astype(jnp.int32) + 1, 0, H - 1)
    rows = jnp.arange(Ho)
    M = jnp.zeros((Ho, H), jnp.float32)
    M = M.at[rows, i0].add(1.0 - t)
    M = M.at[rows, i1].add(t)
    return M


def _up_matrix(H, W):
    """(H*W, 4*H*W) flat bilinear-2x matrix: out_flat = x_flat @ U."""
    return jnp.kron(bilinear_matrix(H).T, bilinear_matrix(W).T)


def _pool_selectors(H, W):
    """(4, H*W, H*W//4) exact 0/1 matrices; maxpool2x2 = max_j (x_flat @ S_j)."""
    Ho, Wo = H // 2, W // 2
    P, Po = H * W, Ho * Wo
    q = jnp.arange(Po)
    ho, wo = q // Wo, q % Wo
    sels = []
    for dy in (0, 1):
        for dx in (0, 1):
            p = (2 * ho + dy) * W + (2 * wo + dx)
            sels.append(jnp.zeros((P, Po), jnp.float32).at[p, q].set(1.0))
    return jnp.stack(sels)


def _conv_weight_mat(w):
    """(cout, 9*_CMAX) im2col weight matrix, zero padded to 16 channel slots.

    Column k*16 + ci multiplies patch row k*16 + ci (tap k = dy*3+dx, chan ci).
    """
    cout, cin = w.shape[0], w.shape[1]
    wk = jnp.transpose(w, (0, 2, 3, 1)).reshape(cout, 9, cin)
    wm = jnp.zeros((cout, 9, _CMAX), jnp.float32)
    wm = wm.at[:, :, :cin].set(wk.astype(jnp.float32))
    return wm.reshape(cout, 9 * _CMAX)


def _col_masks(H, W):
    """(2, 1, H*W) f32 masks: [0] valid for left tap (w>=1), [1] right (w<=W-2)."""
    col = jnp.arange(H * W) % W
    ml = (col >= 1).astype(jnp.float32).reshape(1, H * W)
    mr = (col <= W - 2).astype(jnp.float32).reshape(1, H * W)
    return jnp.stack([ml, mr])


# ----------------------------------------------------------------------------
# Fused forward kernel: one grid step = full network for one sample, all in VMEM
# ----------------------------------------------------------------------------
def _make_fwd_kernel(spatial, pad_cols):
    """spatial: 6 x (H, W) per conv layer.  pad_cols: pad-scratch lane width."""

    def kernel(*refs):
        x_ref = refs[0]
        crefs = refs[1:19]        # 6 x (weight_mat, bias, col_masks)
        sel_refs = refs[19:22]    # 3 maxpool selector stacks
        up_refs = refs[22:25]     # 3 bilinear upsample matrices
        o_ref = refs[25]
        pad_ref = refs[26]        # (16, pad_cols)   f32 scratch
        patch_ref = refs[27]      # (144, H*W)       f32 scratch

        # Clear patch scratch once: rows a given conv does not write are hit
        # by zero weight columns, so they only need to be finite (never stale
        # uninitialised VMEM garbage).
        patch_ref[...] = jnp.zeros(patch_ref.shape, jnp.float32)

        def conv(h, idx):
            w_ref, b_ref, m_ref = crefs[3 * idx:3 * idx + 3]
            cin, _ = _CHANNELS[idx]
            Hc, Wc = spatial[idx]
            P = Hc * Wc
            # in-kernel zero padding: VMEM memset + lane-aligned interior store
            pad_ref[:cin, :] = jnp.zeros((cin, pad_cols), jnp.float32)
            pad_ref[:cin, _PAD_OFF:_PAD_OFF + P] = h
            padv = pad_ref[:cin, :]
            ml, mr = m_ref[0], m_ref[1]
            # im2col: 9 shifted flat taps -> patch rows [k*16, k*16 + cin)
            for dy in range(3):
                for dx in range(3):
                    s = (dy - 1) * Wc + (dx - 1)
                    tap = padv[:, _PAD_OFF + s:_PAD_OFF + s + P]
                    if dx == 0:
                        tap = tap * ml          # kill wrapped left column
                    elif dx == 2:
                        tap = tap * mr          # kill wrapped right column
                    k = dy * 3 + dx
                    patch_ref[k * _CMAX:k * _CMAX + cin, :P] = tap
            patches = patch_ref[:, :P]                         # (144, P)
            out = jnp.dot(w_ref[...], patches,
                          preferred_element_type=jnp.float32)  # (cout, P)
            return out + b_ref[...]

        def pool(h, sel_ref, relu):
            m = jnp.dot(h, sel_ref[0], preferred_element_type=jnp.float32)
            for j in range(1, 4):
                m = jnp.maximum(
                    m, jnp.dot(h, sel_ref[j],
                               preferred_element_type=jnp.float32))
            return jnp.maximum(m, 0.0) if relu else m

        def up(h, u_ref, relu):
            y = jnp.dot(h, u_ref[...], preferred_element_type=jnp.float32)
            return jnp.maximum(y, 0.0) if relu else y

        h = x_ref[0]                               # (1, H*W)
        # encoder: conv -> maxpool -> relu (x2), conv -> maxpool
        h = conv(h, 0); h = pool(h, sel_refs[0], True)
        h = conv(h, 1); h = pool(h, sel_refs[1], True)
        h = conv(h, 2); h = pool(h, sel_refs[2], False)
        # decoder: conv -> upsample -> relu (x2), conv -> upsample
        h = conv(h, 3); h = up(h, up_refs[0], True)
        h = conv(h, 4); h = up(h, up_refs[1], True)
        h = conv(h, 5); h = up(h, up_refs[2], False)
        o_ref[0] = h                               # (1, H*W)

    return kernel


def autoencoder_forward(x, params):
    """x: (N, 1, H, W) f32; params: 6 x (w (cout,cin,3,3), b (cout,))."""
    N, C, H, W = x.shape
    assert C == 1 and H % 8 == 0 and W % 8 == 0
    P = H * W
    H1, W1 = H // 2, W // 2
    H2, W2 = H1 // 2, W1 // 2
    H3, W3 = H2 // 2, W2 // 2
    spatial = [(H, W), (H1, W1), (H2, W2), (H3, W3), (H2, W2), (H1, W1)]
    pad_cols = _PAD_OFF + P + W + 1

    operands = [x.reshape(N, 1, P).astype(jnp.float32)]
    in_specs = [pl.BlockSpec((1, 1, P), lambda n: (n, 0, 0))]

    def add_const(a):
        operands.append(a)
        in_specs.append(pl.BlockSpec(a.shape, lambda n, nd=a.ndim: (0,) * nd))

    for (w, b), (hc, wc) in zip(params, spatial):
        add_const(_conv_weight_mat(w))
        add_const(b.astype(jnp.float32).reshape(w.shape[0], 1))
        add_const(_col_masks(hc, wc))
    for hc, wc in [(H, W), (H1, W1), (H2, W2)]:          # pool input sizes
        add_const(_pool_selectors(hc, wc))
    for hc, wc in [(H3, W3), (H2, W2), (H1, W1)]:        # upsample input sizes
        add_const(_up_matrix(hc, wc))

    out = pl.pallas_call(
        _make_fwd_kernel(spatial, pad_cols),
        out_shape=jax.ShapeDtypeStruct((N, 1, P), jnp.float32),
        grid=(N,),
        in_specs=in_specs,
        out_specs=pl.BlockSpec((1, 1, P), lambda n: (n, 0, 0)),
        scratch_shapes=[
            pltpu.VMEM((_CMAX, pad_cols), jnp.float32),     # padded flat act
            pltpu.VMEM((9 * _CMAX, P), jnp.float32),        # im2col patches
        ],
        compiler_params=pltpu.CompilerParams(
            dimension_semantics=("parallel",)),
    )(*operands)
    return out.reshape(N, 1, H, W)


# ----------------------------------------------------------------------------
# Pure-JAX reference
# ----------------------------------------------------------------------------
def autoencoder_ref(x, params):
    def conv(h, w, b):
        o = lax.conv_general_dilated(
            h, w, (1, 1), "SAME", dimension_numbers=("NCHW", "OIHW", "NCHW"))
        return o + b[None, :, None, None]

    def pool(h, relu):
        o = lax.reduce_window(h, -jnp.inf, lax.max, (1, 1, 2, 2), (1, 1, 2, 2),
                              "VALID")
        return jnp.maximum(o, 0.0) if relu else o

    def up(h, relu):
        Hh, Ww = h.shape[2], h.shape[3]
        o = jnp.einsum("Hh,nchw,wW->ncHW",
                       bilinear_matrix(Hh), h, bilinear_matrix(Ww).T)
        return jnp.maximum(o, 0.0) if relu else o

    (w1, b1), (w2, b2), (w3, b3), (w4, b4), (w5, b5), (w6, b6) = params
    h = pool(conv(x, w1, b1), True)
    h = pool(conv(h, w2, b2), True)
    h = pool(conv(h, w3, b3), False)
    h = up(conv(h, w4, b4), True)
    h = up(conv(h, w5, b5), True)
    h = up(conv(h, w6, b6), False)
    return h


def init_conv(key, cin, cout):
    kw, kb = jax.random.split(key)
    bound = 1.0 / jnp.sqrt(jnp.float32(cin * 9))
    w = jax.random.uniform(kw, (cout, cin, 3, 3), jnp.float32, -bound, bound)
    b = jax.random.uniform(kb, (cout,), jnp.float32, -bound, bound)
    return w, b


if __name__ == "__main__":
    key = jax.random.PRNGKey(0)
    keys = jax.random.split(key, 7)
    # input (N, C, H, W) = (2, 1, 16, 16); spatial divisible by 8 (3 pools)
    x = jax.random.normal(keys[0], (2, 1, 16, 16), jnp.float32)
    params = [init_conv(keys[i + 1], ci, co)
              for i, (ci, co) in enumerate(_CHANNELS)]

    out = jax.block_until_ready(jax.jit(autoencoder_forward)(x, params))
    ref = autoencoder_ref(x, params)

    assert out.shape == (2, 1, 16, 16), out.shape
    assert bool(jnp.all(jnp.isfinite(out)))
    assert bool(jnp.allclose(out, ref, rtol=1e-3, atol=1e-3)), float(
        jnp.max(jnp.abs(out - ref)))
    print("KERNEL_OK")
</pallas_src>

<mosaic_0001>
module attributes {stable_mosaic.version = 11 : i64} {
  func.func private @main(%arg0: i32) attributes {dimension_semantics = [#tpu.dimension_semantics<core_parallel>], iteration_bounds = array<i64: 2>, tpu.core_type = #tpu.core_type<sc_scalar_subcore>, window_params = []} {
    return
  }
}

module attributes {stable_mosaic.version = 11 : i64} {
  func.func private @main(%arg0: i32) attributes {dimension_semantics = [#tpu.dimension_semantics<core_parallel>], iteration_bounds = array<i64: 2>, tpu.core_type = #tpu.core_type<sc_scalar_subcore>, window_params = []} {
    return
  }
}

module attributes {stable_mosaic.version = 11 : i64} {
  func.func @kernel(%arg0: i32, %arg1: memref<1x1x256xf32, #tpu.memory_space<vmem>>, %arg2: memref<3x144xf32, #tpu.memory_space<vmem>>, %arg3: memref<3x1xf32, #tpu.memory_space<vmem>>, %arg4: memref<2x1x256xf32, #tpu.memory_space<vmem>>, %arg5: memref<16x144xf32, #tpu.memory_space<vmem>>, %arg6: memref<16x1xf32, #tpu.memory_space<vmem>>, %arg7: memref<2x1x64xf32, #tpu.memory_space<vmem>>, %arg8: memref<1x144xf32, #tpu.memory_space<vmem>>, %arg9: memref<1x1xf32, #tpu.memory_space<vmem>>, %arg10: memref<2x1x16xf32, #tpu.memory_space<vmem>>, %arg11: memref<3x144xf32, #tpu.memory_space<vmem>>, %arg12: memref<3x1xf32, #tpu.memory_space<vmem>>, %arg13: memref<2x1x4xf32, #tpu.memory_space<vmem>>, %arg14: memref<16x144xf32, #tpu.memory_space<vmem>>, %arg15: memref<16x1xf32, #tpu.memory_space<vmem>>, %arg16: memref<2x1x16xf32, #tpu.memory_space<vmem>>, %arg17: memref<1x144xf32, #tpu.memory_space<vmem>>, %arg18: memref<1x1xf32, #tpu.memory_space<vmem>>, %arg19: memref<2x1x64xf32, #tpu.memory_space<vmem>>, %arg20: memref<4x256x64xf32, #tpu.memory_space<vmem>>, %arg21: memref<4x64x16xf32, #tpu.memory_space<vmem>>, %arg22: memref<4x16x4xf32, #tpu.memory_space<vmem>>, %arg23: memref<4x16xf32, #tpu.memory_space<vmem>>, %arg24: memref<16x64xf32, #tpu.memory_space<vmem>>, %arg25: memref<64x256xf32, #tpu.memory_space<vmem>>, %arg26: memref<1x1x256xf32, #tpu.memory_space<vmem>>, %arg27: memref<16x401xf32, #tpu.memory_space<vmem>>, %arg28: memref<144x256xf32, #tpu.memory_space<vmem>>) attributes {dimension_semantics = [#tpu.dimension_semantics<parallel>], iteration_bounds = array<i64: 2>, scalar_prefetch = 0 : i64, scratch_operands = 2 : i64, tpu.core_type = #tpu.core_type<tc>, window_params = [{transform_indices = @transform_0, window_bounds = array<i64: 1, 1, 256>}, {pipeline_mode = #tpu.pipeline_mode<synchronous>, transform_indices = @transform_1, window_bounds = array<i64: 3, 144>}, {pipeline_mode = #tpu.pipeline_mode<synchronous>, transform_indices = @transform_2, window_bounds = array<i64: 3, 1>}, {pipeline_mode = #tpu.pipeline_mode<synchronous>, transform_indices = @transform_3, window_bounds = array<i64: 2, 1, 256>}, {pipeline_mode = #tpu.pipeline_mode<synchronous>, transform_indices = @transform_4, window_bounds = array<i64: 16, 144>}, {pipeline_mode = #tpu.pipeline_mode<synchronous>, transform_indices = @transform_5, window_bounds = array<i64: 16, 1>}, {pipeline_mode = #tpu.pipeline_mode<synchronous>, transform_indices = @transform_6, window_bounds = array<i64: 2, 1, 64>}, {pipeline_mode = #tpu.pipeline_mode<synchronous>, transform_indices = @transform_7, window_bounds = array<i64: 1, 144>}, {pipeline_mode = #tpu.pipeline_mode<synchronous>, transform_indices = @transform_8, window_bounds = array<i64: 1, 1>}, {pipeline_mode = #tpu.pipeline_mode<synchronous>, transform_indices = @transform_9, window_bounds = array<i64: 2, 1, 16>}, {pipeline_mode = #tpu.pipeline_mode<synchronous>, transform_indices = @transform_10, window_bounds = array<i64: 3, 144>}, {pipeline_mode = #tpu.pipeline_mode<synchronous>, transform_indices = @transform_11, window_bounds = array<i64: 3, 1>}, {pipeline_mode = #tpu.pipeline_mode<synchronous>, transform_indices = @transform_12, window_bounds = array<i64: 2, 1, 4>}, {pipeline_mode = #tpu.pipeline_mode<synchronous>, transform_indices = @transform_13, window_bounds = array<i64: 16, 144>}, {pipeline_mode = #tpu.pipeline_mode<synchronous>, transform_indices = @transform_14, window_bounds = array<i64: 16, 1>}, {pipeline_mode = #tpu.pipeline_mode<synchronous>, transform_indices = @transform_15, window_bounds = array<i64: 2, 1, 16>}, {pipeline_mode = #tpu.pipeline_mode<synchronous>, transform_indices = @transform_16, window_bounds = array<i64: 1, 144>}, {pipeline_mode = #tpu.pipeline_mode<synchronous>, transform_indices = @transform_17, window_bounds = array<i64: 1, 1>}, {pipeline_mode = #tpu.pipeline_mode<synchronous>, transform_indices = @transform_18, window_bounds = array<i64: 2, 1, 64>}, {pipeline_mode = #tpu.pipeline_mode<synchronous>, transform_indices = @transform_19, window_bounds = array<i64: 4, 256, 64>}, {pipeline_mode = #tpu.pipeline_mode<synchronous>, transform_indices = @transform_20, window_bounds = array<i64: 4, 64, 16>}, {pipeline_mode = #tpu.pipeline_mode<synchronous>, transform_indices = @transform_21, window_bounds = array<i64: 4, 16, 4>}, {pipeline_mode = #tpu.pipeline_mode<synchronous>, transform_indices = @transform_22, window_bounds = array<i64: 4, 16>}, {pipeline_mode = #tpu.pipeline_mode<synchronous>, transform_indices = @transform_23, window_bounds = array<i64: 16, 64>}, {pipeline_mode = #tpu.pipeline_mode<synchronous>, transform_indices = @transform_24, window_bounds = array<i64: 64, 256>}, {transform_indices = @transform_25, window_bounds = array<i64: 1, 1, 256>}]} {
    %cst = arith.constant 0.000000e+00 : f32
    %0 = vector.broadcast %cst : f32 to vector<144x256xf32>
    %c0 = arith.constant 0 : index
    %c0_0 = arith.constant 0 : index
    %1 = vector.load %arg28[%c0, %c0_0] : memref<144x256xf32, #tpu.memory_space<vmem>>, vector<144x256xf32>
    tpu.vector_store %arg28[%c0, %c0_0], %0 {strides = array<i32>} : memref<144x256xf32, #tpu.memory_space<vmem>>, vector<144x256xf32>,
    %c0_1 = arith.constant 0 : index
    %c0_2 = arith.constant 0 : index
    %c0_3 = arith.constant 0 : index
    %2 = vector.load %arg1[%c0_1, %c0_2, %c0_3] : memref<1x1x256xf32, #tpu.memory_space<vmem>>, vector<1x1x256xf32>
    %3 = vector.shape_cast %2 : vector<1x1x256xf32> to vector<1x256xf32>
    %cst_4 = arith.constant 0.000000e+00 : f32
    %4 = vector.broadcast %cst_4 : f32 to vector<1x401xf32>
    %c0_5 = arith.constant 0 : index
    %c0_6 = arith.constant 0 : index
    %5 = vector.load %arg27[%c0_5, %c0_6] : memref<16x401xf32, #tpu.memory_space<vmem>>, vector<1x401xf32>
    tpu.vector_store %arg27[%c0_5, %c0_6], %4 {strides = array<i32>} : memref<16x401xf32, #tpu.memory_space<vmem>>, vector<1x401xf32>,
    %c0_7 = arith.constant 0 : index
    %c128 = arith.constant 128 : index
    %6 = vector.load %arg27[%c0_7, %c128] : memref<16x401xf32, #tpu.memory_space<vmem>>, vector<1x256xf32>
    tpu.vector_store %arg27[%c0_7, %c128], %3 {strides = array<i32>} : memref<16x401xf32, #tpu.memory_space<vmem>>, vector<1x256xf32>,
    %c0_8 = arith.constant 0 : index
    %c0_9 = arith.constant 0 : index
    %7 = vector.load %arg27[%c0_8, %c0_9] : memref<16x401xf32, #tpu.memory_space<vmem>>, vector<1x401xf32>
    %c0_10 = arith.constant 0 : index
    %c0_11 = arith.constant 0 : index
    %c0_12 = arith.constant 0 : index
    %8 = vector.load %arg4[%c0_10, %c0_11, %c0_12] : memref<2x1x256xf32, #tpu.memory_space<vmem>>, vector<1x1x256xf32>
    %9 = vector.shape_cast %8 : vector<1x1x256xf32> to vector<1x256xf32>
    %c1 = arith.constant 1 : index
    %c0_13 = arith.constant 0 : index
    %c0_14 = arith.constant 0 : index
    %10 = vector.load %arg4[%c1, %c0_13, %c0_14] : memref<2x1x256xf32, #tpu.memory_space<vmem>>, vector<1x1x256xf32>
    %11 = vector.shape_cast %10 : vector<1x1x256xf32> to vector<1x256xf32>
    %12 = vector.extract_strided_slice %7 {offsets = [0, 111], sizes = [1, 256], strides = [1, 1]} : vector<1x401xf32> to vector<1x256xf32>
    %13 = arith.mulf %12, %9 : vector<1x256xf32>
    %c0_15 = arith.constant 0 : index
    %c0_16 = arith.constant 0 : index
    %14 = vector.load %arg28[%c0_15, %c0_16] : memref<144x256xf32, #tpu.memory_space<vmem>>, vector<1x256xf32>
    tpu.vector_store %arg28[%c0_15, %c0_16], %13 {strides = array<i32>} : memref<144x256xf32, #tpu.memory_space<vmem>>, vector<1x256xf32>,
    %15 = vector.extract_strided_slice %7 {offsets = [0, 112], sizes = [1, 256], strides = [1, 1]} : vector<1x401xf32> to vector<1x256xf32>
    %c16 = arith.constant 16 : index
    %c0_17 = arith.constant 0 : index
    %16 = vector.load %arg28[%c16, %c0_17] : memref<144x256xf32, #tpu.memory_space<vmem>>, vector<1x256xf32>
    tpu.vector_store %arg28[%c16, %c0_17], %15 {strides = array<i32>} : memref<144x256xf32, #tpu.memory_space<vmem>>, vector<1x256xf32>,
    %17 = vector.extract_strided_slice %7 {offsets = [0, 113], sizes = [1, 256], strides = [1, 1]} : vector<1x401xf32> to vector<1x256xf32>
    %18 = arith.mulf %17, %11 : vector<1x256xf32>
    %c32 = arith.constant 32 : index
    %c0_18 = arith.constant 0 : index
    %19 = vector.load %arg28[%c32, %c0_18] : memref<144x256xf32, #tpu.memory_space<vmem>>, vector<1x256xf32>
    tpu.vector_store %arg28[%c32, %c0_18], %18 {strides = array<i32>} : memref<144x256xf32, #tpu.memory_space<vmem>>, vector<1x256xf32>,
    %20 = vector.extract_strided_slice %7 {offsets = [0, 127], sizes = [1, 256], strides = [1, 1]} : vector<1x401xf32> to vector<1x256xf32>
    %21 = arith.mulf %20, %9 : vector<1x256xf32>
    %c48 = arith.constant 48 : index
    %c0_19 = arith.constant 0 : index
    %22 = vector.load %arg28[%c48, %c0_19] : memref<144x256xf32, #tpu.memory_space<vmem>>, vector<1x256xf32>
    tpu.vector_store %arg28[%c48, %c0_19], %21 {strides = array<i32>} : memref<144x256xf32, #tpu.memory_space<vmem>>, vector<1x256xf32>,
    %23 = vector.extract_strided_slice %7 {offsets = [0, 128], sizes = [1, 256], strides = [1, 1]} : vector<1x401xf32> to vector<1x256xf32>
    %c64 = arith.constant 64 : index
    %c0_20 = arith.constant 0 : index
    %24 = vector.load %arg28[%c64, %c0_20] : memref<144x256xf32, #tpu.memory_space<vmem>>, vector<1x256xf32>
    tpu.vector_store %arg28[%c64, %c0_20], %23 {strides = array<i32>} : memref<144x256xf32, #tpu.memory_space<vmem>>, vector<1x256xf32>,
    %25 = vector.extract_strided_slice %7 {offsets = [0, 129], sizes = [1, 256], strides = [1, 1]} : vector<1x401xf32> to vector<1x256xf32>
    %26 = arith.mulf %25, %11 : vector<1x256xf32>
    %c80 = arith.constant 80 : index
    %c0_21 = arith.constant 0 : index
    %27 = vector.load %arg28[%c80, %c0_21] : memref<144x256xf32, #tpu.memory_space<vmem>>, vector<1x256xf32>
    tpu.vector_store %arg28[%c80, %c0_21], %26 {strides = array<i32>} : memref<144x256xf32, #tpu.memory_space<vmem>>, vector<1x256xf32>,
    %28 = vector.extract_strided_slice %7 {offsets = [0, 143], sizes = [1, 256], strides = [1, 1]} : vector<1x401xf32> to vector<1x256xf32>
    %29 = arith.mulf %28, %9 : vector<1x256xf32>
    %c96 = arith.constant 96 : index
    %c0_22 = arith.constant 0 : index
    %30 = vector.load %arg28[%c96, %c0_22] : memref<144x256xf32, #tpu.memory_space<vmem>>, vector<1x256xf32>
    tpu.vector_store %arg28[%c96, %c0_22], %29 {strides = array<i32>} : memref<144x256xf32, #tpu.memory_space<vmem>>, vector<1x256xf32>,
    %31 = vector.extract_strided_slice %7 {offsets = [0, 144], sizes = [1, 256], strides = [1, 1]} : vector<1x401xf32> to vector<1x256xf32>
    %c112 = arith.constant 112 : index
    %c0_23 = arith.constant 0 : index
    %32 = vector.load %arg28[%c112, %c0_23] : memref<144x256xf32, #tpu.memory_space<vmem>>, vector<1x256xf32>
    tpu.vector_store %arg28[%c112, %c0_23], %31 {strides = array<i32>} : memref<144x256xf32, #tpu.memory_space<vmem>>, vector<1x256xf32>,
    %33 = vector.extract_strided_slice %7 {offsets = [0, 145], sizes = [1, 256], strides = [1, 1]} : vector<1x401xf32> to vector<1x256xf32>
    %34 = arith.mulf %33, %11 : vector<1x256xf32>
    %c128_24 = arith.constant 128 : index
    %c0_25 = arith.constant 0 : index
    %35 = vector.load %arg28[%c128_24, %c0_25] : memref<144x256xf32, #tpu.memory_space<vmem>>, vector<1x256xf32>
    tpu.vector_store %arg28[%c128_24, %c0_25], %34 {strides = array<i32>} : memref<144x256xf32, #tpu.memory_space<vmem>>, vector<1x256xf32>,
    %c0_26 = arith.constant 0 : index
    %c0_27 = arith.constant 0 : index
    %36 = vector.load %arg28[%c0_26, %c0_27] : memref<144x256xf32, #tpu.memory_space<vmem>>, vector<144x256xf32>
    %c0_28 = arith.constant 0 : index
    %c0_29 = arith.constant 0 : index
    %37 = vector.load %arg2[%c0_28, %c0_29] : memref<3x144xf32, #tpu.memory_space<vmem>>, vector<3x144xf32>
    %cst_30 = arith.constant dense<0.000000e+00> : vector<3x256xf32>
    %38 = tpu.matmul %37, %36, %cst_30 {dimension_numbers = #tpu.dot_dimension_numbers<[1], [0], [0], [1], [0, 0, 1, 1], [], []>} : vector<3x144xf32>, vector<144x256xf32>, vector<3x256xf32> -> vector<3x256xf32>
    %c0_31 = arith.constant 0 : index
    %c0_32 = arith.constant 0 : index
    %39 = vector.load %arg3[%c0_31, %c0_32] : memref<3x1xf32, #tpu.memory_space<vmem>>, vector<3x1xf32>
    %40 = vector.broadcast %39 : vector<3x1xf32> to vector<3x256xf32>
    %41 = arith.addf %38, %40 : vector<3x256xf32>
    %c0_33 = arith.constant 0 : index
    %c0_34 = arith.constant 0 : index
    %c0_35 = arith.constant 0 : index
    %42 = vector.load %arg20[%c0_33, %c0_34, %c0_35] : memref<4x256x64xf32, #tpu.memory_space<vmem>>, vector<1x256x64xf32>
    %43 = vector.shape_cast %42 : vector<1x256x64xf32> to vector<256x64xf32>
    %cst_36 = arith.constant dense<0.000000e+00> : vector<3x64xf32>
    %44 = tpu.matmul %41, %43, %cst_36 {dimension_numbers = #tpu.dot_dimension_numbers<[1], [0], [0], [1], [0, 0, 1, 1], [], []>} : vector<3x256xf32>, vector<256x64xf32>, vector<3x64xf32> -> vector<3x64xf32>
    %c1_37 = arith.constant 1 : index
    %c0_38 = arith.constant 0 : index
    %c0_39 = arith.constant 0 : index
    %45 = vector.load %arg20[%c1_37, %c0_38, %c0_39] : memref<4x256x64xf32, #tpu.memory_space<vmem>>, vector<1x256x64xf32>
    %46 = vector.shape_cast %45 : vector<1x256x64xf32> to vector<256x64xf32>
    %cst_40 = arith.constant dense<0.000000e+00> : vector<3x64xf32>
    %47 = tpu.matmul %41, %46, %cst_40 {dimension_numbers = #tpu.dot_dimension_numbers<[1], [0], [0], [1], [0, 0, 1, 1], [], []>} : vector<3x256xf32>, vector<256x64xf32>, vector<3x64xf32> -> vector<3x64xf32>
    %48 = arith.maximumf %44, %47 : vector<3x64xf32>
    %c2 = arith.constant 2 : index
    %c0_41 = arith.constant 0 : index
    %c0_42 = arith.constant 0 : index
    %49 = vector.load %arg20[%c2, %c0_41, %c0_42] : memref<4x256x64xf32, #tpu.memory_space<vmem>>, vector<1x256x64xf32>
    %50 = vector.shape_cast %49 : vector<1x256x64xf32> to vector<256x64xf32>
    %cst_43 = arith.constant dense<0.000000e+00> : vector<3x64xf32>
    %51 = tpu.matmul %41, %50, %cst_43 {dimension_numbers = #tpu.dot_dimension_numbers<[1], [0], [0], [1], [0, 0, 1, 1], [], []>} : vector<3x256xf32>, vector<256x64xf32>, vector<3x64xf32> -> vector<3x64xf32>
    %52 = arith.maximumf %48, %51 : vector<3x64xf32>
    %c3 = arith.constant 3 : index
    %c0_44 = arith.constant 0 : index
    %c0_45 = arith.constant 0 : index
    %53 = vector.load %arg20[%c3, %c0_44, %c0_45] : memref<4x256x64xf32, #tpu.memory_space<vmem>>, vector<1x256x64xf32>
    %54 = vector.shape_cast %53 : vector<1x256x64xf32> to vector<256x64xf32>
    %cst_46 = arith.constant dense<0.000000e+00> : vector<3x64xf32>
    %55 = tpu.matmul %41, %54, %cst_46 {dimension_numbers = #tpu.dot_dimension_numbers<[1], [0], [0], [1], [0, 0, 1, 1], [], []>} : vector<3x256xf32>, vector<256x64xf32>, vector<3x64xf32> -> vector<3x64xf32>
    %56 = arith.maximumf %52, %55 : vector<3x64xf32>
    %cst_47 = arith.constant 0.000000e+00 : f32
    %57 = vector.broadcast %cst_47 : f32 to vector<3x64xf32>
    %58 = arith.maximumf %56, %57 : vector<3x64xf32>
    %cst_48 = arith.constant 0.000000e+00 : f32
    %59 = vector.broadcast %cst_48 : f32 to vector<3x401xf32>
    %c0_49 = arith.constant 0 : index
    %c0_50 = arith.constant 0 : index
    %60 = vector.load %arg27[%c0_49, %c0_50] : memref<16x401xf32, #tpu.memory_space<vmem>>, vector<3x401xf32>
    tpu.vector_store %arg27[%c0_49, %c0_50], %59 {strides = array<i32>} : memref<16x401xf32, #tpu.memory_space<vmem>>, vector<3x401xf32>,
    %c0_51 = arith.constant 0 : index
    %c128_52 = arith.constant 128 : index
    %61 = vector.load %arg27[%c0_51, %c128_52] : memref<16x401xf32, #tpu.memory_space<vmem>>, vector<3x64xf32>
    tpu.vector_store %arg27[%c0_51, %c128_52], %58 {strides = array<i32>} : memref<16x401xf32, #tpu.memory_space<vmem>>, vector<3x64xf32>,
    %c0_53 = arith.constant 0 : index
    %c0_54 = arith.constant 0 : index
    %62 = vector.load %arg27[%c0_53, %c0_54] : memref<16x401xf32, #tpu.memory_space<vmem>>, vector<3x401xf32>
    %c0_55 = arith.constant 0 : index
    %c0_56 = arith.constant 0 : index
    %c0_57 = arith.constant 0 : index
    %63 = vector.load %arg7[%c0_55, %c0_56, %c0_57] : memref<2x1x64xf32, #tpu.memory_space<vmem>>, vector<1x1x64xf32>
    %64 = vector.shape_cast %63 : vector<1x1x64xf32> to vector<1x64xf32>
    %c1_58 = arith.constant 1 : index
    %c0_59 = arith.constant 0 : index
    %c0_60 = arith.constant 0 : index
    %65 = vector.load %arg7[%c1_58, %c0_59, %c0_60] : memref<2x1x64xf32, #tpu.memory_space<vmem>>, vector<1x1x64xf32>
    %66 = vector.shape_cast %65 : vector<1x1x64xf32> to vector<1x64xf32>
    %67 = vector.extract_strided_slice %62 {offsets = [0, 119], sizes = [3, 64], strides = [1, 1]} : vector<3x401xf32> to vector<3x64xf32>
    %68 = vector.broadcast %64 : vector<1x64xf32> to vector<3x64xf32>
    %69 = arith.mulf %67, %68 : vector<3x64xf32>
    %c0_61 = arith.constant 0 : index
    %c0_62 = arith.constant 0 : index
    %70 = vector.load %arg28[%c0_61, %c0_62] : memref<144x256xf32, #tpu.memory_space<vmem>>, vector<3x64xf32>
    tpu.vector_store %arg28[%c0_61, %c0_62], %69 {strides = array<i32>} : memref<144x256xf32, #tpu.memory_space<vmem>>, vector<3x64xf32>,
    %71 = vector.extract_strided_slice %62 {offsets = [0, 120], sizes = [3, 64], strides = [1, 1]} : vector<3x401xf32> to vector<3x64xf32>
    %c16_63 = arith.constant 16 : index
    %c0_64 = arith.constant 0 : index
    %72 = vector.load %arg28[%c16_63, %c0_64] : memref<144x256xf32, #tpu.memory_space<vmem>>, vector<3x64xf32>
    tpu.vector_store %arg28[%c16_63, %c0_64], %71 {strides = array<i32>} : memref<144x256xf32, #tpu.memory_space<vmem>>, vector<3x64xf32>,
    %73 = vector.extract_strided_slice %62 {offsets = [0, 121], sizes = [3, 64], strides = [1, 1]} : vector<3x401xf32> to vector<3x64xf32>
    %74 = vector.broadcast %66 : vector<1x64xf32> to vector<3x64xf32>
    %75 = arith.mulf %73, %74 : vector<3x64xf32>
    %c32_65 = arith.constant 32 : index
    %c0_66 = arith.constant 0 : index
    %76 = vector.load %arg28[%c32_65, %c0_66] : memref<144x256xf32, #tpu.memory_space<vmem>>, vector<3x64xf32>
    tpu.vector_store %arg28[%c32_65, %c0_66], %75 {strides = array<i32>} : memref<144x256xf32, #tpu.memory_space<vmem>>, vector<3x64xf32>,
    %77 = vector.extract_strided_slice %62 {offsets = [0, 127], sizes = [3, 64], strides = [1, 1]} : vector<3x401xf32> to vector<3x64xf32>
    %78 = vector.broadcast %64 : vector<1x64xf32> to vector<3x64xf32>
    %79 = arith.mulf %77, %78 : vector<3x64xf32>
    %c48_67 = arith.constant 48 : index
    %c0_68 = arith.constant 0 : index
    %80 = vector.load %arg28[%c48_67, %c0_68] : memref<144x256xf32, #tpu.memory_space<vmem>>, vector<3x64xf32>
    tpu.vector_store %arg28[%c48_67, %c0_68], %79 {strides = array<i32>} : memref<144x256xf32, #tpu.memory_space<vmem>>, vector<3x64xf32>,
    %81 = vector.extract_strided_slice %62 {offsets = [0, 128], sizes = [3, 64], strides = [1, 1]} : vector<3x401xf32> to vector<3x64xf32>
    %c64_69 = arith.constant 64 : index
    %c0_70 = arith.constant 0 : index
    %82 = vector.load %arg28[%c64_69, %c0_70] : memref<144x256xf32, #tpu.memory_space<vmem>>, vector<3x64xf32>
    tpu.vector_store %arg28[%c64_69, %c0_70], %81 {strides = array<i32>} : memref<144x256xf32, #tpu.memory_space<vmem>>, vector<3x64xf32>,
    %83 = vector.extract_strided_slice %62 {offsets = [0, 129], sizes = [3, 64], strides = [1, 1]} : vector<3x401xf32> to vector<3x64xf32>
    %84 = vector.broadcast %66 : vector<1x64xf32> to vector<3x64xf32>
    %85 = arith.mulf %83, %84 : vector<3x64xf32>
    %c80_71 = arith.constant 80 : index
    %c0_72 = arith.constant 0 : index
    %86 = vector.load %arg28[%c80_71, %c0_72] : memref<144x256xf32, #tpu.memory_space<vmem>>, vector<3x64xf32>
    tpu.vector_store %arg28[%c80_71, %c0_72], %85 {strides = array<i32>} : memref<144x256xf32, #tpu.memory_space<vmem>>, vector<3x64xf32>,
    %87 = vector.extract_strided_slice %62 {offsets = [0, 135], sizes = [3, 64], strides = [1, 1]} : vector<3x401xf32> to vector<3x64xf32>
    %88 = vector.broadcast %64 : vector<1x64xf32> to vector<3x64xf32>
    %89 = arith.mulf %87, %88 : vector<3x64xf32>
    %c96_73 = arith.constant 96 : index
    %c0_74 = arith.constant 0 : index
    %90 = vector.load %arg28[%c96_73, %c0_74] : memref<144x256xf32, #tpu.memory_space<vmem>>, vector<3x64xf32>
    tpu.vector_store %arg28[%c96_73, %c0_74], %89 {strides = array<i32>} : memref<144x256xf32, #tpu.memory_space<vmem>>, vector<3x64xf32>,
    %91 = vector.extract_strided_slice %62 {offsets = [0, 136], sizes = [3, 64], strides = [1, 1]} : vector<3x401xf32> to vector<3x64xf32>
    %c112_75 = arith.constant 112 : index
    %c0_76 = arith.constant 0 : index
    %92 = vector.load %arg28[%c112_75, %c0_76] : memref<144x256xf32, #tpu.memory_space<vmem>>, vector<3x64xf32>
    tpu.vector_store %arg28[%c112_75, %c0_76], %91 {strides = array<i32>} : memref<144x256xf32, #tpu.memory_space<vmem>>, vector<3x64xf32>,
    %93 = vector.extract_strided_slice %62 {offsets = [0, 137], sizes = [3, 64], strides = [1, 1]} : vector<3x401xf32> to vector<3x64xf32>
    %94 = vector.broadcast %66 : vector<1x64xf32> to vector<3x64xf32>
    %95 = arith.mulf %93, %94 : vector<3x64xf32>
    %c128_77 = arith.constant 128 : index
    %c0_78 = arith.constant 0 : index
    %96 = vector.load %arg28[%c128_77, %c0_78] : memref<144x256xf32, #tpu.memory_space<vmem>>, vector<3x64xf32>
    tpu.vector_store %arg28[%c128_77, %c0_78], %95 {strides = array<i32>} : memref<144x256xf32, #tpu.memory_space<vmem>>, vector<3x64xf32>,
    %c0_79 = arith.constant 0 : index
    %c0_80 = arith.constant 0 : index
    %97 = vector.load %arg28[%c0_79, %c0_80] : memref<144x256xf32, #tpu.memory_space<vmem>>, vector<144x64xf32>
    %c0_81 = arith.constant 0 : index
    %c0_82 = arith.constant 0 : index
    %98 = vector.load %arg5[%c0_81, %c0_82] : memref<16x144xf32, #tpu.memory_space<vmem>>, vector<16x144xf32>
    %cst_83 = arith.constant dense<0.000000e+00> : vector<16x64xf32>
    %99 = tpu.matmul %98, %97, %cst_83 {dimension_numbers = #tpu.dot_dimension_numbers<[1], [0], [0], [1], [0, 0, 1, 1], [], []>} : vector<16x144xf32>, vector<144x64xf32>, vector<16x64xf32> -> vector<16x64xf32>
    %c0_84 = arith.constant 0 : index
    %c0_85 = arith.constant 0 : index
    %100 = vector.load %arg6[%c0_84, %c0_85] : memref<16x1xf32, #tpu.memory_space<vmem>>, vector<16x1xf32>
    %101 = vector.broadcast %100 : vector<16x1xf32> to vector<16x64xf32>
    %102 = arith.addf %99, %101 : vector<16x64xf32>
    %c0_86 = arith.constant 0 : index
    %c0_87 = arith.constant 0 : index
    %c0_88 = arith.constant 0 : index
    %103 = vector.load %arg21[%c0_86, %c0_87, %c0_88] : memref<4x64x16xf32, #tpu.memory_space<vmem>>, vector<1x64x16xf32>
    %104 = vector.shape_cast %103 : vector<1x64x16xf32> to vector<64x16xf32>
    %cst_89 = arith.constant dense<0.000000e+00> : vector<16x16xf32>
    %105 = tpu.matmul %102, %104, %cst_89 {dimension_numbers = #tpu.dot_dimension_numbers<[1], [0], [0], [1], [0, 0, 1, 1], [], []>} : vector<16x64xf32>, vector<64x16xf32>, vector<16x16xf32> -> vector<16x16xf32>
    %c1_90 = arith.constant 1 : index
    %c0_91 = arith.constant 0 : index
    %c0_92 = arith.constant 0 : index
    %106 = vector.load %arg21[%c1_90, %c0_91, %c0_92] : memref<4x64x16xf32, #tpu.memory_space<vmem>>, vector<1x64x16xf32>
    %107 = vector.shape_cast %106 : vector<1x64x16xf32> to vector<64x16xf32>
    %cst_93 = arith.constant dense<0.000000e+00> : vector<16x16xf32>
    %108 = tpu.matmul %102, %107, %cst_93 {dimension_numbers = #tpu.dot_dimension_numbers<[1], [0], [0], [1], [0, 0, 1, 1], [], []>} : vector<16x64xf32>, vector<64x16xf32>, vector<16x16xf32> -> vector<16x16xf32>
    %109 = arith.maximumf %105, %108 : vector<16x16xf32>
    %c2_94 = arith.constant 2 : index
    %c0_95 = arith.constant 0 : index
    %c0_96 = arith.constant 0 : index
    %110 = vector.load %arg21[%c2_94, %c0_95, %c0_96] : memref<4x64x16xf32, #tpu.memory_space<vmem>>, vector<1x64x16xf32>
    %111 = vector.shape_cast %110 : vector<1x64x16xf32> to vector<64x16xf32>
    %cst_97 = arith.constant dense<0.000000e+00> : vector<16x16xf32>
    %112 = tpu.matmul %102, %111, %cst_97 {dimension_numbers = #tpu.dot_dimension_numbers<[1], [0], [0], [1], [0, 0, 1, 1], [], []>} : vector<16x64xf32>, vector<64x16xf32>, vector<16x16xf32> -> vector<16x16xf32>
    %113 = arith.maximumf %109, %112 : vector<16x16xf32>
    %c3_98 = arith.constant 3 : index
    %c0_99 = arith.constant 0 : index
    %c0_100 = arith.constant 0 : index
    %114 = vector.load %arg21[%c3_98, %c0_99, %c0_100] : memref<4x64x16xf32, #tpu.memory_space<vmem>>, vector<1x64x16xf32>
    %115 = vector.shape_cast %114 : vector<1x64x16xf32> to vector<64x16xf32>
    %cst_101 = arith.constant dense<0.000000e+00> : vector<16x16xf32>
    %116 = tpu.matmul %102, %115, %cst_101 {dimension_numbers = #tpu.dot_dimension_numbers<[1], [0], [0], [1], [0, 0, 1, 1], [], []>} : vector<16x64xf32>, vector<64x16xf32>, vector<16x16xf32> -> vector<16x16xf32>
    %117 = arith.maximumf %113, %116 : vector<16x16xf32>
    %cst_102 = arith.constant 0.000000e+00 : f32
    %118 = vector.broadcast %cst_102 : f32 to vector<16x16xf32>
    %119 = arith.maximumf %117, %118 : vector<16x16xf32>
    %cst_103 = arith.constant 0.000000e+00 : f32
    %120 = vector.broadcast %cst_103 : f32 to vector<16x401xf32>
    %c0_104 = arith.constant 0 : index
    %c0_105 = arith.constant 0 : index
    %121 = vector.load %arg27[%c0_104, %c0_105] : memref<16x401xf32, #tpu.memory_space<vmem>>, vector<16x401xf32>
    tpu.vector_store %arg27[%c0_104, %c0_105], %120 {strides = array<i32>} : memref<16x401xf32, #tpu.memory_space<vmem>>, vector<16x401xf32>,
    %c0_106 = arith.constant 0 : index
    %c128_107 = arith.constant 128 : index
    %122 = vector.load %arg27[%c0_106, %c128_107] : memref<16x401xf32, #tpu.memory_space<vmem>>, vector<16x16xf32>
    tpu.vector_store %arg27[%c0_106, %c128_107], %119 {strides = array<i32>} : memref<16x401xf32, #tpu.memory_space<vmem>>, vector<16x16xf32>,
    %c0_108 = arith.constant 0 : index
    %c0_109 = arith.constant 0 : index
    %123 = vector.load %arg27[%c0_108, %c0_109] : memref<16x401xf32, #tpu.memory_space<vmem>>, vector<16x401xf32>
    %c0_110 = arith.constant 0 : index
    %c0_111 = arith.constant 0 : index
    %c0_112 = arith.constant 0 : index
    %124 = vector.load %arg10[%c0_110, %c0_111, %c0_112] : memref<2x1x16xf32, #tpu.memory_space<vmem>>, vector<1x1x16xf32>
    %125 = vector.shape_cast %124 : vector<1x1x16xf32> to vector<1x16xf32>
    %c1_113 = arith.constant 1 : index
    %c0_114 = arith.constant 0 : index
    %c0_115 = arith.constant 0 : index
    %126 = vector.load %arg10[%c1_113, %c0_114, %c0_115] : memref<2x1x16xf32, #tpu.memory_space<vmem>>, vector<1x1x16xf32>
    %127 = vector.shape_cast %126 : vector<1x1x16xf32> to vector<1x16xf32>
    %128 = vector.extract_strided_slice %123 {offsets = [0, 123], sizes = [16, 16], strides = [1, 1]} : vector<16x401xf32> to vector<16x16xf32>
    %129 = vector.broadcast %125 : vector<1x16xf32> to vector<16x16xf32>
    %130 = arith.mulf %128, %129 : vector<16x16xf32>
    %c0_116 = arith.constant 0 : index
    %c0_117 = arith.constant 0 : index
    %131 = vector.load %arg28[%c0_116, %c0_117] : memref<144x256xf32, #tpu.memory_space<vmem>>, vector<16x16xf32>
    tpu.vector_store %arg28[%c0_116, %c0_117], %130 {strides = array<i32>} : memref<144x256xf32, #tpu.memory_space<vmem>>, vector<16x16xf32>,
    %132 = vector.extract_strided_slice %123 {offsets = [0, 124], sizes = [16, 16], strides = [1, 1]} : vector<16x401xf32> to vector<16x16xf32>
    %c16_118 = arith.constant 16 : index
    %c0_119 = arith.constant 0 : index
    %133 = vector.load %arg28[%c16_118, %c0_119] : memref<144x256xf32, #tpu.memory_space<vmem>>, vector<16x16xf32>
    tpu.vector_store %arg28[%c16_118, %c0_119], %132 {strides = array<i32>} : memref<144x256xf32, #tpu.memory_space<vmem>>, vector<16x16xf32>,
    %134 = vector.extract_strided_slice %123 {offsets = [0, 125], sizes = [16, 16], strides = [1, 1]} : vector<16x401xf32> to vector<16x16xf32>
    %135 = vector.broadcast %127 : vector<1x16xf32> to vector<16x16xf32>
    %136 = arith.mulf %134, %135 : vector<16x16xf32>
    %c32_120 = arith.constant 32 : index
    %c0_121 = arith.constant 0 : index
    %137 = vector.load %arg28[%c32_120, %c0_121] : memref<144x256xf32, #tpu.memory_space<vmem>>, vector<16x16xf32>
    tpu.vector_store %arg28[%c32_120, %c0_121], %136 {strides = array<i32>} : memref<144x256xf32, #tpu.memory_space<vmem>>, vector<16x16xf32>,
    %138 = vector.extract_strided_slice %123 {offsets = [0, 127], sizes = [16, 16], strides = [1, 1]} : vector<16x401xf32> to vector<16x16xf32>
    %139 = vector.broadcast %125 : vector<1x16xf32> to vector<16x16xf32>
    %140 = arith.mulf %138, %139 : vector<16x16xf32>
    %c48_122 = arith.constant 48 : index
    %c0_123 = arith.constant 0 : index
    %141 = vector.load %arg28[%c48_122, %c0_123] : memref<144x256xf32, #tpu.memory_space<vmem>>, vector<16x16xf32>
    tpu.vector_store %arg28[%c48_122, %c0_123], %140 {strides = array<i32>} : memref<144x256xf32, #tpu.memory_space<vmem>>, vector<16x16xf32>,
    %142 = vector.extract_strided_slice %123 {offsets = [0, 128], sizes = [16, 16], strides = [1, 1]} : vector<16x401xf32> to vector<16x16xf32>
    %c64_124 = arith.constant 64 : index
    %c0_125 = arith.constant 0 : index
    %143 = vector.load %arg28[%c64_124, %c0_125] : memref<144x256xf32, #tpu.memory_space<vmem>>, vector<16x16xf32>
    tpu.vector_store %arg28[%c64_124, %c0_125], %142 {strides = array<i32>} : memref<144x256xf32, #tpu.memory_space<vmem>>, vector<16x16xf32>,
    %144 = vector.extract_strided_slice %123 {offsets = [0, 129], sizes = [16, 16], strides = [1, 1]} : vector<16x401xf32> to vector<16x16xf32>
    %145 = vector.broadcast %127 : vector<1x16xf32> to vector<16x16xf32>
    %146 = arith.mulf %144, %145 : vector<16x16xf32>
    %c80_126 = arith.constant 80 : index
    %c0_127 = arith.constant 0 : index
    %147 = vector.load %arg28[%c80_126, %c0_127] : memref<144x256xf32, #tpu.memory_space<vmem>>, vector<16x16xf32>
    tpu.vector_store %arg28[%c80_126, %c0_127], %146 {strides = array<i32>} : memref<144x256xf32, #tpu.memory_space<vmem>>, vector<16x16xf32>,
    %148 = vector.extract_strided_slice %123 {offsets = [0, 131], sizes = [16, 16], strides = [1, 1]} : vector<16x401xf32> to vector<16x16xf32>
    %149 = vector.broadcast %125 : vector<1x16xf32> to vector<16x16xf32>
    %150 = arith.mulf %148, %149 : vector<16x16xf32>
    %c96_128 = arith.constant 96 : index
    %c0_129 = arith.constant 0 : index
    %151 = vector.load %arg28[%c96_128, %c0_129] : memref<144x256xf32, #tpu.memory_space<vmem>>, vector<16x16xf32>
    tpu.vector_store %arg28[%c96_128, %c0_129], %150 {strides = array<i32>} : memref<144x256xf32, #tpu.memory_space<vmem>>, vector<16x16xf32>,
    %152 = vector.extract_strided_slice %123 {offsets = [0, 132], sizes = [16, 16], strides = [1, 1]} : vector<16x401xf32> to vector<16x16xf32>
    %c112_130 = arith.constant 112 : index
    %c0_131 = arith.constant 0 : index
    %153 = vector.load %arg28[%c112_130, %c0_131] : memref<144x256xf32, #tpu.memory_space<vmem>>, vector<16x16xf32>
    tpu.vector_store %arg28[%c112_130, %c0_131], %152 {strides = array<i32>} : memref<144x256xf32, #tpu.memory_space<vmem>>, vector<16x16xf32>,
    %154 = vector.extract_strided_slice %123 {offsets = [0, 133], sizes = [16, 16], strides = [1, 1]} : vector<16x401xf32> to vector<16x16xf32>
    %155 = vector.broadcast %127 : vector<1x16xf32> to vector<16x16xf32>
    %156 = arith.mulf %154, %155 : vector<16x16xf32>
    %c128_132 = arith.constant 128 : index
    %c0_133 = arith.constant 0 : index
    %157 = vector.load %arg28[%c128_132, %c0_133] : memref<144x256xf32, #tpu.memory_space<vmem>>, vector<16x16xf32>
    tpu.vector_store %arg28[%c128_132, %c0_133], %156 {strides = array<i32>} : memref<144x256xf32, #tpu.memory_space<vmem>>, vector<16x16xf32>,
    %c0_134 = arith.constant 0 : index
    %c0_135 = arith.constant 0 : index
    %158 = vector.load %arg28[%c0_134, %c0_135] : memref<144x256xf32, #tpu.memory_space<vmem>>, vector<144x16xf32>
    %c0_136 = arith.constant 0 : index
    %c0_137 = arith.constant 0 : index
    %159 = vector.load %arg8[%c0_136, %c0_137] : memref<1x144xf32, #tpu.memory_space<vmem>>, vector<1x144xf32>
    %cst_138 = arith.constant dense<0.000000e+00> : vector<1x16xf32>
    %160 = tpu.matmul %159, %158, %cst_138 {dimension_numbers = #tpu.dot_dimension_numbers<[1], [0], [0], [1], [0, 0, 1, 1], [], []>} : vector<1x144xf32>, vector<144x16xf32>, vector<1x16xf32> -> vector<1x16xf32>
    %c0_139 = arith.constant 0 : index
    %c0_140 = arith.constant 0 : index
    %161 = vector.load %arg9[%c0_139, %c0_140] : memref<1x1xf32, #tpu.memory_space<vmem>>, vector<1x1xf32>
    %162 = vector.broadcast %161 : vector<1x1xf32> to vector<1x16xf32>
    %163 = arith.addf %160, %162 : vector<1x16xf32>
    %c0_141 = arith.constant 0 : index
    %c0_142 = arith.constant 0 : index
    %c0_143 = arith.constant 0 : index
    %164 = vector.load %arg22[%c0_141, %c0_142, %c0_143] : memref<4x16x4xf32, #tpu.memory_space<vmem>>, vector<1x16x4xf32>
    %165 = vector.shape_cast %164 : vector<1x16x4xf32> to vector<16x4xf32>
    %cst_144 = arith.constant dense<0.000000e+00> : vector<1x4xf32>
    %166 = tpu.matmul %163, %165, %cst_144 {dimension_numbers = #tpu.dot_dimension_numbers<[1], [0], [0], [1], [0, 0, 1, 1], [], []>} : vector<1x16xf32>, vector<16x4xf32>, vector<1x4xf32> -> vector<1x4xf32>
    %c1_145 = arith.constant 1 : index
    %c0_146 = arith.constant 0 : index
    %c0_147 = arith.constant 0 : index
    %167 = vector.load %arg22[%c1_145, %c0_146, %c0_147] : memref<4x16x4xf32, #tpu.memory_space<vmem>>, vector<1x16x4xf32>
    %168 = vector.shape_cast %167 : vector<1x16x4xf32> to vector<16x4xf32>
    %cst_148 = arith.constant dense<0.000000e+00> : vector<1x4xf32>
    %169 = tpu.matmul %163, %168, %cst_148 {dimension_numbers = #tpu.dot_dimension_numbers<[1], [0], [0], [1], [0, 0, 1, 1], [], []>} : vector<1x16xf32>, vector<16x4xf32>, vector<1x4xf32> -> vector<1x4xf32>
    %170 = arith.maximumf %166, %169 : vector<1x4xf32>
    %c2_149 = arith.constant 2 : index
    %c0_150 = arith.constant 0 : index
    %c0_151 = arith.constant 0 : index
    %171 = vector.load %arg22[%c2_149, %c0_150, %c0_151] : memref<4x16x4xf32, #tpu.memory_space<vmem>>, vector<1x16x4xf32>
    %172 = vector.shape_cast %171 : vector<1x16x4xf32> to vector<16x4xf32>
    %cst_152 = arith.constant dense<0.000000e+00> : vector<1x4xf32>
    %173 = tpu.matmul %163, %172, %cst_152 {dimension_numbers = #tpu.dot_dimension_numbers<[1], [0], [0], [1], [0, 0, 1, 1], [], []>} : vector<1x16xf32>, vector<16x4xf32>, vector<1x4xf32> -> vector<1x4xf32>
    %174 = arith.maximumf %170, %173 : vector<1x4xf32>
    %c3_153 = arith.constant 3 : index
    %c0_154 = arith.constant 0 : index
    %c0_155 = arith.constant 0 : index
    %175 = vector.load %arg22[%c3_153, %c0_154, %c0_155] : memref<4x16x4xf32, #tpu.memory_space<vmem>>, vector<1x16x4xf32>
    %176 = vector.shape_cast %175 : vector<1x16x4xf32> to vector<16x4xf32>
    %cst_156 = arith.constant dense<0.000000e+00> : vector<1x4xf32>
    %177 = tpu.matmul %163, %176, %cst_156 {dimension_numbers = #tpu.dot_dimension_numbers<[1], [0], [0], [1], [0, 0, 1, 1], [], []>} : vector<1x16xf32>, vector<16x4xf32>, vector<1x4xf32> -> vector<1x4xf32>
    %178 = arith.maximumf %174, %177 : vector<1x4xf32>
    %cst_157 = arith.constant 0.000000e+00 : f32
    %179 = vector.broadcast %cst_157 : f32 to vector<1x401xf32>
    %c0_158 = arith.constant 0 : index
    %c0_159 = arith.constant 0 : index
    %180 = vector.load %arg27[%c0_158, %c0_159] : memref<16x401xf32, #tpu.memory_space<vmem>>, vector<1x401xf32>
    tpu.vector_store %arg27[%c0_158, %c0_159], %179 {strides = array<i32>} : memref<16x401xf32, #tpu.memory_space<vmem>>, vector<1x401xf32>,
    %c0_160 = arith.constant 0 : index
    %c128_161 = arith.constant 128 : index
    %181 = vector.load %arg27[%c0_160, %c128_161] : memref<16x401xf32, #tpu.memory_space<vmem>>, vector<1x4xf32>
    tpu.vector_store %arg27[%c0_160, %c128_161], %178 {strides = array<i32>} : memref<16x401xf32, #tpu.memory_space<vmem>>, vector<1x4xf32>,
    %c0_162 = arith.constant 0 : index
    %c0_163 = arith.constant 0 : index
    %182 = vector.load %arg27[%c0_162, %c0_163] : memref<16x401xf32, #tpu.memory_space<vmem>>, vector<1x401xf32>
    %c0_164 = arith.constant 0 : index
    %c0_165 = arith.constant 0 : index
    %c0_166 = arith.constant 0 : index
    %183 = vector.load %arg13[%c0_164, %c0_165, %c0_166] : memref<2x1x4xf32, #tpu.memory_space<vmem>>, vector<1x1x4xf32>
    %184 = vector.shape_cast %183 : vector<1x1x4xf32> to vector<1x4xf32>
    %c1_167 = arith.constant 1 : index
    %c0_168 = arith.constant 0 : index
    %c0_169 = arith.constant 0 : index
    %185 = vector.load %arg13[%c1_167, %c0_168, %c0_169] : memref<2x1x4xf32, #tpu.memory_space<vmem>>, vector<1x1x4xf32>
    %186 = vector.shape_cast %185 : vector<1x1x4xf32> to vector<1x4xf32>
    %187 = vector.extract_strided_slice %182 {offsets = [0, 125], sizes = [1, 4], strides = [1, 1]} : vector<1x401xf32> to vector<1x4xf32>
    %188 = arith.mulf %187, %184 : vector<1x4xf32>
    %c0_170 = arith.constant 0 : index
    %c0_171 = arith.constant 0 : index
    %189 = vector.load %arg28[%c0_170, %c0_171] : memref<144x256xf32, #tpu.memory_space<vmem>>, vector<1x4xf32>
    tpu.vector_store %arg28[%c0_170, %c0_171], %188 {strides = array<i32>} : memref<144x256xf32, #tpu.memory_space<vmem>>, vector<1x4xf32>,
    %190 = vector.extract_strided_slice %182 {offsets = [0, 126], sizes = [1, 4], strides = [1, 1]} : vector<1x401xf32> to vector<1x4xf32>
    %c16_172 = arith.constant 16 : index
    %c0_173 = arith.constant 0 : index
    %191 = vector.load %arg28[%c16_172, %c0_173] : memref<144x256xf32, #tpu.memory_space<vmem>>, vector<1x4xf32>
    tpu.vector_store %arg28[%c16_172, %c0_173], %190 {strides = array<i32>} : memref<144x256xf32, #tpu.memory_space<vmem>>, vector<1x4xf32>,
    %192 = vector.extract_strided_slice %182 {offsets = [0, 127], sizes = [1, 4], strides = [1, 1]} : vector<1x401xf32> to vector<1x4xf32>
    %193 = arith.mulf %192, %186 : vector<1x4xf32>
    %c32_174 = arith.constant 32 : index
    %c0_175 = arith.constant 0 : index
    %194 = vector.load %arg28[%c32_174, %c0_175] : memref<144x256xf32, #tpu.memory_space<vmem>>, vector<1x4xf32>
    tpu.vector_store %arg28[%c32_174, %c0_175], %193 {strides = array<i32>} : memref<144x256xf32, #tpu.memory_space<vmem>>, vector<1x4xf32>,
    %195 = vector.extract_strided_slice %182 {offsets = [0, 127], sizes = [1, 4], strides = [1, 1]} : vector<1x401xf32> to vector<1x4xf32>
    %196 = arith.mulf %195, %184 : vector<1x4xf32>
    %c48_176 = arith.constant 48 : index
    %c0_177 = arith.constant 0 : index
    %197 = vector.load %arg28[%c48_176, %c0_177] : memref<144x256xf32, #tpu.memory_space<vmem>>, vector<1x4xf32>
    tpu.vector_store %arg28[%c48_176, %c0_177], %196 {strides = array<i32>} : memref<144x256xf32, #tpu.memory_space<vmem>>, vector<1x4xf32>,
    %198 = vector.extract_strided_slice %182 {offsets = [0, 128], sizes = [1, 4], strides = [1, 1]} : vector<1x401xf32> to vector<1x4xf32>
    %c64_178 = arith.constant 64 : index
    %c0_179 = arith.constant 0 : index
    %199 = vector.load %arg28[%c64_178, %c0_179] : memref<144x256xf32, #tpu.memory_space<vmem>>, vector<1x4xf32>
    tpu.vector_store %arg28[%c64_178, %c0_179], %198 {strides = array<i32>} : memref<144x256xf32, #tpu.memory_space<vmem>>, vector<1x4xf32>,
    %200 = vector.extract_strided_slice %182 {offsets = [0, 129], sizes = [1, 4], strides = [1, 1]} : vector<1x401xf32> to vector<1x4xf32>
    %201 = arith.mulf %200, %186 : vector<1x4xf32>
    %c80_180 = arith.constant 80 : index
    %c0_181 = arith.constant 0 : index
    %202 = vector.load %arg28[%c80_180, %c0_181] : memref<144x256xf32, #tpu.memory_space<vmem>>, vector<1x4xf32>
    tpu.vector_store %arg28[%c80_180, %c0_181], %201 {strides = array<i32>} : memref<144x256xf32, #tpu.memory_space<vmem>>, vector<1x4xf32>,
    %203 = vector.extract_strided_slice %182 {offsets = [0, 129], sizes = [1, 4], strides = [1, 1]} : vector<1x401xf32> to vector<1x4xf32>
    %204 = arith.mulf %203, %184 : vector<1x4xf32>
    %c96_182 = arith.constant 96 : index
    %c0_183 = arith.constant 0 : index
    %205 = vector.load %arg28[%c96_182, %c0_183] : memref<144x256xf32, #tpu.memory_space<vmem>>, vector<1x4xf32>
    tpu.vector_store %arg28[%c96_182, %c0_183], %204 {strides = array<i32>} : memref<144x256xf32, #tpu.memory_space<vmem>>, vector<1x4xf32>,
    %206 = vector.extract_strided_slice %182 {offsets = [0, 130], sizes = [1, 4], strides = [1, 1]} : vector<1x401xf32> to vector<1x4xf32>
    %c112_184 = arith.constant 112 : index
    %c0_185 = arith.constant 0 : index
    %207 = vector.load %arg28[%c112_184, %c0_185] : memref<144x256xf32, #tpu.memory_space<vmem>>, vector<1x4xf32>
    tpu.vector_store %arg28[%c112_184, %c0_185], %206 {strides = array<i32>} : memref<144x256xf32, #tpu.memory_space<vmem>>, vector<1x4xf32>,
    %208 = vector.extract_strided_slice %182 {offsets = [0, 131], sizes = [1, 4], strides = [1, 1]} : vector<1x401xf32> to vector<1x4xf32>
    %209 = arith.mulf %208, %186 : vector<1x4xf32>
    %c128_186 = arith.constant 128 : index
    %c0_187 = arith.constant 0 : index
    %210 = vector.load %arg28[%c128_186, %c0_187] : memref<144x256xf32, #tpu.memory_space<vmem>>, vector<1x4xf32>
    tpu.vector_store %arg28[%c128_186, %c0_187], %209 {strides = array<i32>} : memref<144x256xf32, #tpu.memory_space<vmem>>, vector<1x4xf32>,
    %c0_188 = arith.constant 0 : index
    %c0_189 = arith.constant 0 : index
    %211 = vector.load %arg28[%c0_188, %c0_189] : memref<144x256xf32, #tpu.memory_space<vmem>>, vector<144x4xf32>
    %c0_190 = arith.constant 0 : index
    %c0_191 = arith.constant 0 : index
    %212 = vector.load %arg11[%c0_190, %c0_191] : memref<3x144xf32, #tpu.memory_space<vmem>>, vector<3x144xf32>
    %cst_192 = arith.constant dense<0.000000e+00> : vector<3x4xf32>
    %213 = tpu.matmul %212, %211, %cst_192 {dimension_numbers = #tpu.dot_dimension_numbers<[1], [0], [0], [1], [0, 0, 1, 1], [], []>} : vector<3x144xf32>, vector<144x4xf32>, vector<3x4xf32> -> vector<3x4xf32>
    %c0_193 = arith.constant 0 : index
    %c0_194 = arith.constant 0 : index
    %214 = vector.load %arg12[%c0_193, %c0_194] : memref<3x1xf32, #tpu.memory_space<vmem>>, vector<3x1xf32>
    %215 = vector.broadcast %214 : vector<3x1xf32> to vector<3x4xf32>
    %216 = arith.addf %213, %215 : vector<3x4xf32>
    %c0_195 = arith.constant 0 : index
    %c0_196 = arith.constant 0 : index
    %217 = vector.load %arg23[%c0_195, %c0_196] : memref<4x16xf32, #tpu.memory_space<vmem>>, vector<4x16xf32>
    %cst_197 = arith.constant dense<0.000000e+00> : vector<3x16xf32>
    %218 = tpu.matmul %216, %217, %cst_197 {dimension_numbers = #tpu.dot_dimension_numbers<[1], [0], [0], [1], [0, 0, 1, 1], [], []>} : vector<3x4xf32>, vector<4x16xf32>, vector<3x16xf32> -> vector<3x16xf32>
    %cst_198 = arith.constant 0.000000e+00 : f32
    %219 = vector.broadcast %cst_198 : f32 to vector<3x16xf32>
    %220 = arith.maximumf %218, %219 : vector<3x16xf32>
    %cst_199 = arith.constant 0.000000e+00 : f32
    %221 = vector.broadcast %cst_199 : f32 to vector<3x401xf32>
    %c0_200 = arith.constant 0 : index
    %c0_201 = arith.constant 0 : index
    %222 = vector.load %arg27[%c0_200, %c0_201] : memref<16x401xf32, #tpu.memory_space<vmem>>, vector<3x401xf32>
    tpu.vector_store %arg27[%c0_200, %c0_201], %221 {strides = array<i32>} : memref<16x401xf32, #tpu.memory_space<vmem>>, vector<3x401xf32>,
    %c0_202 = arith.constant 0 : index
    %c128_203 = arith.constant 128 : index
    %223 = vector.load %arg27[%c0_202, %c128_203] : memref<16x401xf32, #tpu.memory_space<vmem>>, vector<3x16xf32>
    tpu.vector_store %arg27[%c0_202, %c128_203], %220 {strides = array<i32>} : memref<16x401xf32, #tpu.memory_space<vmem>>, vector<3x16xf32>,
    %c0_204 = arith.constant 0 : index
    %c0_205 = arith.constant 0 : index
    %224 = vector.load %arg27[%c0_204, %c0_205] : memref<16x401xf32, #tpu.memory_space<vmem>>, vector<3x401xf32>
    %c0_206 = arith.constant 0 : index
    %c0_207 = arith.constant 0 : index
    %c0_208 = arith.constant 0 : index
    %225 = vector.load %arg16[%c0_206, %c0_207, %c0_208] : memref<2x1x16xf32, #tpu.memory_space<vmem>>, vector<1x1x16xf32>
    %226 = vector.shape_cast %225 : vector<1x1x16xf32> to vector<1x16xf32>
    %c1_209 = arith.constant 1 : index
    %c0_210 = arith.constant 0 : index
    %c0_211 = arith.constant 0 : index
    %227 = vector.load %arg16[%c1_209, %c0_210, %c0_211] : memref<2x1x16xf32, #tpu.memory_space<vmem>>, vector<1x1x16xf32>
    %228 = vector.shape_cast %227 : vector<1x1x16xf32> to vector<1x16xf32>
    %229 = vector.extract_strided_slice %224 {offsets = [0, 123], sizes = [3, 16], strides = [1, 1]} : vector<3x401xf32> to vector<3x16xf32>
    %230 = vector.broadcast %226 : vector<1x16xf32> to vector<3x16xf32>
    %231 = arith.mulf %229, %230 : vector<3x16xf32>
    %c0_212 = arith.constant 0 : index
    %c0_213 = arith.constant 0 : index
    %232 = vector.load %arg28[%c0_212, %c0_213] : memref<144x256xf32, #tpu.memory_space<vmem>>, vector<3x16xf32>
    tpu.vector_store %arg28[%c0_212, %c0_213], %231 {strides = array<i32>} : memref<144x256xf32, #tpu.memory_space<vmem>>, vector<3x16xf32>,
    %233 = vector.extract_strided_slice %224 {offsets = [0, 124], sizes = [3, 16], strides = [1, 1]} : vector<3x401xf32> to vector<3x16xf32>
    %c16_214 = arith.constant 16 : index
    %c0_215 = arith.constant 0 : index
    %234 = vector.load %arg28[%c16_214, %c0_215] : memref<144x256xf32, #tpu.memory_space<vmem>>, vector<3x16xf32>
    tpu.vector_store %arg28[%c16_214, %c0_215], %233 {strides = array<i32>} : memref<144x256xf32, #tpu.memory_space<vmem>>, vector<3x16xf32>,
    %235 = vector.extract_strided_slice %224 {offsets = [0, 125], sizes = [3, 16], strides = [1, 1]} : vector<3x401xf32> to vector<3x16xf32>
    %236 = vector.broadcast %228 : vector<1x16xf32> to vector<3x16xf32>
    %237 = arith.mulf %235, %236 : vector<3x16xf32>
    %c32_216 = arith.constant 32 : index
    %c0_217 = arith.constant 0 : index
    %238 = vector.load %arg28[%c32_216, %c0_217] : memref<144x256xf32, #tpu.memory_space<vmem>>, vector<3x16xf32>
    tpu.vector_store %arg28[%c32_216, %c0_217], %237 {strides = array<i32>} : memref<144x256xf32, #tpu.memory_space<vmem>>, vector<3x16xf32>,
    %239 = vector.extract_strided_slice %224 {offsets = [0, 127], sizes = [3, 16], strides = [1, 1]} : vector<3x401xf32> to vector<3x16xf32>
    %240 = vector.broadcast %226 : vector<1x16xf32> to vector<3x16xf32>
    %241 = arith.mulf %239, %240 : vector<3x16xf32>
    %c48_218 = arith.constant 48 : index
    %c0_219 = arith.constant 0 : index
    %242 = vector.load %arg28[%c48_218, %c0_219] : memref<144x256xf32, #tpu.memory_space<vmem>>, vector<3x16xf32>
    tpu.vector_store %arg28[%c48_218, %c0_219], %241 {strides = array<i32>} : memref<144x256xf32, #tpu.memory_space<vmem>>, vector<3x16xf32>,
    %243 = vector.extract_strided_slice %224 {offsets = [0, 128], sizes = [3, 16], strides = [1, 1]} : vector<3x401xf32> to vector<3x16xf32>
    %c64_220 = arith.constant 64 : index
    %c0_221 = arith.constant 0 : index
    %244 = vector.load %arg28[%c64_220, %c0_221] : memref<144x256xf32, #tpu.memory_space<vmem>>, vector<3x16xf32>
    tpu.vector_store %arg28[%c64_220, %c0_221], %243 {strides = array<i32>} : memref<144x256xf32, #tpu.memory_space<vmem>>, vector<3x16xf32>,
    %245 = vector.extract_strided_slice %224 {offsets = [0, 129], sizes = [3, 16], strides = [1, 1]} : vector<3x401xf32> to vector<3x16xf32>
    %246 = vector.broadcast %228 : vector<1x16xf32> to vector<3x16xf32>
    %247 = arith.mulf %245, %246 : vector<3x16xf32>
    %c80_222 = arith.constant 80 : index
    %c0_223 = arith.constant 0 : index
    %248 = vector.load %arg28[%c80_222, %c0_223] : memref<144x256xf32, #tpu.memory_space<vmem>>, vector<3x16xf32>
    tpu.vector_store %arg28[%c80_222, %c0_223], %247 {strides = array<i32>} : memref<144x256xf32, #tpu.memory_space<vmem>>, vector<3x16xf32>,
    %249 = vector.extract_strided_slice %224 {offsets = [0, 131], sizes = [3, 16], strides = [1, 1]} : vector<3x401xf32> to vector<3x16xf32>
    %250 = vector.broadcast %226 : vector<1x16xf32> to vector<3x16xf32>
    %251 = arith.mulf %249, %250 : vector<3x16xf32>
    %c96_224 = arith.constant 96 : index
    %c0_225 = arith.constant 0 : index
    %252 = vector.load %arg28[%c96_224, %c0_225] : memref<144x256xf32, #tpu.memory_space<vmem>>, vector<3x16xf32>
    tpu.vector_store %arg28[%c96_224, %c0_225], %251 {strides = array<i32>} : memref<144x256xf32, #tpu.memory_space<vmem>>, vector<3x16xf32>,
    %253 = vector.extract_strided_slice %224 {offsets = [0, 132], sizes = [3, 16], strides = [1, 1]} : vector<3x401xf32> to vector<3x16xf32>
    %c112_226 = arith.constant 112 : index
    %c0_227 = arith.constant 0 : index
    %254 = vector.load %arg28[%c112_226, %c0_227] : memref<144x256xf32, #tpu.memory_space<vmem>>, vector<3x16xf32>
    tpu.vector_store %arg28[%c112_226, %c0_227], %253 {strides = array<i32>} : memref<144x256xf32, #tpu.memory_space<vmem>>, vector<3x16xf32>,
    %255 = vector.extract_strided_slice %224 {offsets = [0, 133], sizes = [3, 16], strides = [1, 1]} : vector<3x401xf32> to vector<3x16xf32>
    %256 = vector.broadcast %228 : vector<1x16xf32> to vector<3x16xf32>
    %257 = arith.mulf %255, %256 : vector<3x16xf32>
    %c128_228 = arith.constant 128 : index
    %c0_229 = arith.constant 0 : index
    %258 = vector.load %arg28[%c128_228, %c0_229] : memref<144x256xf32, #tpu.memory_space<vmem>>, vector<3x16xf32>
    tpu.vector_store %arg28[%c128_228, %c0_229], %257 {strides = array<i32>} : memref<144x256xf32, #tpu.memory_space<vmem>>, vector<3x16xf32>,
    %c0_230 = arith.constant 0 : index
    %c0_231 = arith.constant 0 : index
    %259 = vector.load %arg28[%c0_230, %c0_231] : memref<144x256xf32, #tpu.memory_space<vmem>>, vector<144x16xf32>
    %c0_232 = arith.constant 0 : index
    %c0_233 = arith.constant 0 : index
    %260 = vector.load %arg14[%c0_232, %c0_233] : memref<16x144xf32, #tpu.memory_space<vmem>>, vector<16x144xf32>
    %cst_234 = arith.constant dense<0.000000e+00> : vector<16x16xf32>
    %261 = tpu.matmul %260, %259, %cst_234 {dimension_numbers = #tpu.dot_dimension_numbers<[1], [0], [0], [1], [0, 0, 1, 1], [], []>} : vector<16x144xf32>, vector<144x16xf32>, vector<16x16xf32> -> vector<16x16xf32>
    %c0_235 = arith.constant 0 : index
    %c0_236 = arith.constant 0 : index
    %262 = vector.load %arg15[%c0_235, %c0_236] : memref<16x1xf32, #tpu.memory_space<vmem>>, vector<16x1xf32>
    %263 = vector.broadcast %262 : vector<16x1xf32> to vector<16x16xf32>
    %264 = arith.addf %261, %263 : vector<16x16xf32>
    %c0_237 = arith.constant 0 : index
    %c0_238 = arith.constant 0 : index
    %265 = vector.load %arg24[%c0_237, %c0_238] : memref<16x64xf32, #tpu.memory_space<vmem>>, vector<16x64xf32>
    %cst_239 = arith.constant dense<0.000000e+00> : vector<16x64xf32>
    %266 = tpu.matmul %264, %265, %cst_239 {dimension_numbers = #tpu.dot_dimension_numbers<[1], [0], [0], [1], [0, 0, 1, 1], [], []>} : vector<16x16xf32>, vector<16x64xf32>, vector<16x64xf32> -> vector<16x64xf32>
    %cst_240 = arith.constant 0.000000e+00 : f32
    %267 = vector.broadcast %cst_240 : f32 to vector<16x64xf32>
    %268 = arith.maximumf %266, %267 : vector<16x64xf32>
    %cst_241 = arith.constant 0.000000e+00 : f32
    %269 = vector.broadcast %cst_241 : f32 to vector<16x401xf32>
    %c0_242 = arith.constant 0 : index
    %c0_243 = arith.constant 0 : index
    %270 = vector.load %arg27[%c0_242, %c0_243] : memref<16x401xf32, #tpu.memory_space<vmem>>, vector<16x401xf32>
    tpu.vector_store %arg27[%c0_242, %c0_243], %269 {strides = array<i32>} : memref<16x401xf32, #tpu.memory_space<vmem>>, vector<16x401xf32>,
    %c0_244 = arith.constant 0 : index
    %c128_245 = arith.constant 128 : index
    %271 = vector.load %arg27[%c0_244, %c128_245] : memref<16x401xf32, #tpu.memory_space<vmem>>, vector<16x64xf32>
    tpu.vector_store %arg27[%c0_244, %c128_245], %268 {strides = array<i32>} : memref<16x401xf32, #tpu.memory_space<vmem>>, vector<16x64xf32>,
    %c0_246 = arith.constant 0 : index
    %c0_247 = arith.constant 0 : index
    %272 = vector.load %arg27[%c0_246, %c0_247] : memref<16x401xf32, #tpu.memory_space<vmem>>, vector<16x401xf32>
    %c0_248 = arith.constant 0 : index
    %c0_249 = arith.constant 0 : index
    %c0_250 = arith.constant 0 : index
    %273 = vector.load %arg19[%c0_248, %c0_249, %c0_250] : memref<2x1x64xf32, #tpu.memory_space<vmem>>, vector<1x1x64xf32>
    %274 = vector.shape_cast %273 : vector<1x1x64xf32> to vector<1x64xf32>
    %c1_251 = arith.constant 1 : index
    %c0_252 = arith.constant 0 : index
    %c0_253 = arith.constant 0 : index
    %275 = vector.load %arg19[%c1_251, %c0_252, %c0_253] : memref<2x1x64xf32, #tpu.memory_space<vmem>>, vector<1x1x64xf32>
    %276 = vector.shape_cast %275 : vector<1x1x64xf32> to vector<1x64xf32>
    %277 = vector.extract_strided_slice %272 {offsets = [0, 119], sizes = [16, 64], strides = [1, 1]} : vector<16x401xf32> to vector<16x64xf32>
    %278 = vector.broadcast %274 : vector<1x64xf32> to vector<16x64xf32>
    %279 = arith.mulf %277, %278 : vector<16x64xf32>
    %c0_254 = arith.constant 0 : index
    %c0_255 = arith.constant 0 : index
    %280 = vector.load %arg28[%c0_254, %c0_255] : memref<144x256xf32, #tpu.memory_space<vmem>>, vector<16x64xf32>
    tpu.vector_store %arg28[%c0_254, %c0_255], %279 {strides = array<i32>} : memref<144x256xf32, #tpu.memory_space<vmem>>, vector<16x64xf32>,
    %281 = vector.extract_strided_slice %272 {offsets = [0, 120], sizes = [16, 64], strides = [1, 1]} : vector<16x401xf32> to vector<16x64xf32>
    %c16_256 = arith.constant 16 : index
    %c0_257 = arith.constant 0 : index
    %282 = vector.load %arg28[%c16_256, %c0_257] : memref<144x256xf32, #tpu.memory_space<vmem>>, vector<16x64xf32>
    tpu.vector_store %arg28[%c16_256, %c0_257], %281 {strides = array<i32>} : memref<144x256xf32, #tpu.memory_space<vmem>>, vector<16x64xf32>,
    %283 = vector.extract_strided_slice %272 {offsets = [0, 121], sizes = [16, 64], strides = [1, 1]} : vector<16x401xf32> to vector<16x64xf32>
    %284 = vector.broadcast %276 : vector<1x64xf32> to vector<16x64xf32>
    %285 = arith.mulf %283, %284 : vector<16x64xf32>
    %c32_258 = arith.constant 32 : index
    %c0_259 = arith.constant 0 : index
    %286 = vector.load %arg28[%c32_258, %c0_259] : memref<144x256xf32, #tpu.memory_space<vmem>>, vector<16x64xf32>
    tpu.vector_store %arg28[%c32_258, %c0_259], %285 {strides = array<i32>} : memref<144x256xf32, #tpu.memory_space<vmem>>, vector<16x64xf32>,
    %287 = vector.extract_strided_slice %272 {offsets = [0, 127], sizes = [16, 64], strides = [1, 1]} : vector<16x401xf32> to vector<16x64xf32>
    %288 = vector.broadcast %274 : vector<1x64xf32> to vector<16x64xf32>
    %289 = arith.mulf %287, %288 : vector<16x64xf32>
    %c48_260 = arith.constant 48 : index
    %c0_261 = arith.constant 0 : index
    %290 = vector.load %arg28[%c48_260, %c0_261] : memref<144x256xf32, #tpu.memory_space<vmem>>, vector<16x64xf32>
    tpu.vector_store %arg28[%c48_260, %c0_261], %289 {strides = array<i32>} : memref<144x256xf32, #tpu.memory_space<vmem>>, vector<16x64xf32>,
    %291 = vector.extract_strided_slice %272 {offsets = [0, 128], sizes = [16, 64], strides = [1, 1]} : vector<16x401xf32> to vector<16x64xf32>
    %c64_262 = arith.constant 64 : index
    %c0_263 = arith.constant 0 : index
    %292 = vector.load %arg28[%c64_262, %c0_263] : memref<144x256xf32, #tpu.memory_space<vmem>>, vector<16x64xf32>
    tpu.vector_store %arg28[%c64_262, %c0_263], %291 {strides = array<i32>} : memref<144x256xf32, #tpu.memory_space<vmem>>, vector<16x64xf32>,
    %293 = vector.extract_strided_slice %272 {offsets = [0, 129], sizes = [16, 64], strides = [1, 1]} : vector<16x401xf32> to vector<16x64xf32>
    %294 = vector.broadcast %276 : vector<1x64xf32> to vector<16x64xf32>
    %295 = arith.mulf %293, %294 : vector<16x64xf32>
    %c80_264 = arith.constant 80 : index
    %c0_265 = arith.constant 0 : index
    %296 = vector.load %arg28[%c80_264, %c0_265] : memref<144x256xf32, #tpu.memory_space<vmem>>, vector<16x64xf32>
    tpu.vector_store %arg28[%c80_264, %c0_265], %295 {strides = array<i32>} : memref<144x256xf32, #tpu.memory_space<vmem>>, vector<16x64xf32>,
    %297 = vector.extract_strided_slice %272 {offsets = [0, 135], sizes = [16, 64], strides = [1, 1]} : vector<16x401xf32> to vector<16x64xf32>
    %298 = vector.broadcast %274 : vector<1x64xf32> to vector<16x64xf32>
    %299 = arith.mulf %297, %298 : vector<16x64xf32>
    %c96_266 = arith.constant 96 : index
    %c0_267 = arith.constant 0 : index
    %300 = vector.load %arg28[%c96_266, %c0_267] : memref<144x256xf32, #tpu.memory_space<vmem>>, vector<16x64xf32>
    tpu.vector_store %arg28[%c96_266, %c0_267], %299 {strides = array<i32>} : memref<144x256xf32, #tpu.memory_space<vmem>>, vector<16x64xf32>,
    %301 = vector.extract_strided_slice %272 {offsets = [0, 136], sizes = [16, 64], strides = [1, 1]} : vector<16x401xf32> to vector<16x64xf32>
    %c112_268 = arith.constant 112 : index
    %c0_269 = arith.constant 0 : index
    %302 = vector.load %arg28[%c112_268, %c0_269] : memref<144x256xf32, #tpu.memory_space<vmem>>, vector<16x64xf32>
    tpu.vector_store %arg28[%c112_268, %c0_269], %301 {strides = array<i32>} : memref<144x256xf32, #tpu.memory_space<vmem>>, vector<16x64xf32>,
    %303 = vector.extract_strided_slice %272 {offsets = [0, 137], sizes = [16, 64], strides = [1, 1]} : vector<16x401xf32> to vector<16x64xf32>
    %304 = vector.broadcast %276 : vector<1x64xf32> to vector<16x64xf32>
    %305 = arith.mulf %303, %304 : vector<16x64xf32>
    %c128_270 = arith.constant 128 : index
    %c0_271 = arith.constant 0 : index
    %306 = vector.load %arg28[%c128_270, %c0_271] : memref<144x256xf32, #tpu.memory_space<vmem>>, vector<16x64xf32>
    tpu.vector_store %arg28[%c128_270, %c0_271], %305 {strides = array<i32>} : memref<144x256xf32, #tpu.memory_space<vmem>>, vector<16x64xf32>,
    %c0_272 = arith.constant 0 : index
    %c0_273 = arith.constant 0 : index
    %307 = vector.load %arg28[%c0_272, %c0_273] : memref<144x256xf32, #tpu.memory_space<vmem>>, vector<144x64xf32>
    %c0_274 = arith.constant 0 : index
    %c0_275 = arith.constant 0 : index
    %308 = vector.load %arg17[%c0_274, %c0_275] : memref<1x144xf32, #tpu.memory_space<vmem>>, vector<1x144xf32>
    %cst_276 = arith.constant dense<0.000000e+00> : vector<1x64xf32>
    %309 = tpu.matmul %308, %307, %cst_276 {dimension_numbers = #tpu.dot_dimension_numbers<[1], [0], [0], [1], [0, 0, 1, 1], [], []>} : vector<1x144xf32>, vector<144x64xf32>, vector<1x64xf32> -> vector<1x64xf32>
    %c0_277 = arith.constant 0 : index
    %c0_278 = arith.constant 0 : index
    %310 = vector.load %arg18[%c0_277, %c0_278] : memref<1x1xf32, #tpu.memory_space<vmem>>, vector<1x1xf32>
    %311 = vector.broadcast %310 : vector<1x1xf32> to vector<1x64xf32>
    %312 = arith.addf %309, %311 : vector<1x64xf32>
    %c0_279 = arith.constant 0 : index
    %c0_280 = arith.constant 0 : index
    %313 = vector.load %arg25[%c0_279, %c0_280] : memref<64x256xf32, #tpu.memory_space<vmem>>, vector<64x256xf32>
    %cst_281 = arith.constant dense<0.000000e+00> : vector<1x256xf32>
    %314 = tpu.matmul %312, %313, %cst_281 {dimension_numbers = #tpu.dot_dimension_numbers<[1], [0], [0], [1], [0, 0, 1, 1], [], []>} : vector<1x64xf32>, vector<64x256xf32>, vector<1x256xf32> -> vector<1x256xf32>
    %c0_282 = arith.constant 0 : index
    %c0_283 = arith.constant 0 : index
    %c0_284 = arith.constant 0 : index
    %315 = vector.load %arg26[%c0_282, %c0_283, %c0_284] : memref<1x1x256xf32, #tpu.memory_space<vmem>>, vector<1x1x256xf32>
    %316 = vector.shape_cast %315 : vector<1x1x256xf32> to vector<1x256xf32>
    %317 = vector.shape_cast %314 : vector<1x256xf32> to vector<1x1x256xf32>
    tpu.vector_store %arg26[%c0_282, %c0_283, %c0_284], %317 {strides = array<i32>} : memref<1x1x256xf32, #tpu.memory_space<vmem>>, vector<1x1x256xf32>,
    return
  }
  func.func @transform_0(%arg0: i32) -> (i32, i32, i32) {
    %c0_i32 = arith.constant 0 : i32
    %c0_i32_0 = arith.constant 0 : i32
    %c0_i32_1 = arith.constant 0 : i32
    return %arg0, %c0_i32, %c0_i32_0 : i32, i32, i32
  }
  func.func @transform_1(%arg0: i32) -> (i32, i32) {
    %c0_i32 = arith.constant 0 : i32
    %c0_i32_0 = arith.constant 0 : i32
    %c0_i32_1 = arith.constant 0 : i32
    return %c0_i32, %c0_i32_0 : i32, i32
  }
  func.func @transform_2(%arg0: i32) -> (i32, i32) {
    %c0_i32 = arith.constant 0 : i32
    %c0_i32_0 = arith.constant 0 : i32
    %c0_i32_1 = arith.constant 0 : i32
    return %c0_i32, %c0_i32_0 : i32, i32
  }
  func.func @transform_3(%arg0: i32) -> (i32, i32, i32) {
    %c0_i32 = arith.constant 0 : i32
    %c0_i32_0 = arith.constant 0 : i32
    %c0_i32_1 = arith.constant 0 : i32
    %c0_i32_2 = arith.constant 0 : i32
    return %c0_i32, %c0_i32_0, %c0_i32_1 : i32, i32, i32
  }
  func.func @transform_4(%arg0: i32) -> (i32, i32) {
    %c0_i32 = arith.constant 0 : i32
    %c0_i32_0 = arith.constant 0 : i32
    %c0_i32_1 = arith.constant 0 : i32
    return %c0_i32, %c0_i32_0 : i32, i32
  }
  func.func @transform_5(%arg0: i32) -> (i32, i32) {
    %c0_i32 = arith.constant 0 : i32
    %c0_i32_0 = arith.constant 0 : i32
    %c0_i32_1 = arith.constant 0 : i32
    return %c0_i32, %c0_i32_0 : i32, i32
  }
  func.func @transform_6(%arg0: i32) -> (i32, i32, i32) {
    %c0_i32 = arith.constant 0 : i32
    %c0_i32_0 = arith.constant 0 : i32
    %c0_i32_1 = arith.constant 0 : i32
    %c0_i32_2 = arith.constant 0 : i32
    return %c0_i32, %c0_i32_0, %c0_i32_1 : i32, i32, i32
  }
  func.func @transform_7(%arg0: i32) -> (i32, i32) {
    %c0_i32 = arith.constant 0 : i32
    %c0_i32_0 = arith.constant 0 : i32
    %c0_i32_1 = arith.constant 0 : i32
    return %c0_i32, %c0_i32_0 : i32, i32
  }
  func.func @transform_8(%arg0: i32) -> (i32, i32) {
    %c0_i32 = arith.constant 0 : i32
    %c0_i32_0 = arith.constant 0 : i32
    %c0_i32_1 = arith.constant 0 : i32
    return %c0_i32, %c0_i32_0 : i32, i32
  }
  func.func @transform_9(%arg0: i32) -> (i32, i32, i32) {
    %c0_i32 = arith.constant 0 : i32
    %c0_i32_0 = arith.constant 0 : i32
    %c0_i32_1 = arith.constant 0 : i32
    %c0_i32_2 = arith.constant 0 : i32
    return %c0_i32, %c0_i32_0, %c0_i32_1 : i32, i32, i32
  }
  func.func @transform_10(%arg0: i32) -> (i32, i32) {
    %c0_i32 = arith.constant 0 : i32
    %c0_i32_0 = arith.constant 0 : i32
    %c0_i32_1 = arith.constant 0 : i32
    return %c0_i32, %c0_i32_0 : i32, i32
  }
  func.func @transform_11(%arg0: i32) -> (i32, i32) {
    %c0_i32 = arith.constant 0 : i32
    %c0_i32_0 = arith.constant 0 : i32
    %c0_i32_1 = arith.constant 0 : i32
    return %c0_i32, %c0_i32_0 : i32, i32
  }
  func.func @transform_12(%arg0: i32) -> (i32, i32, i32) {
    %c0_i32 = arith.constant 0 : i32
    %c0_i32_0 = arith.constant 0 : i32
    %c0_i32_1 = arith.constant 0 : i32
    %c0_i32_2 = arith.constant 0 : i32
    return %c0_i32, %c0_i32_0, %c0_i32_1 : i32, i32, i32
  }
  func.func @transform_13(%arg0: i32) -> (i32, i32) {
    %c0_i32 = arith.constant 0 : i32
    %c0_i32_0 = arith.constant 0 : i32
    %c0_i32_1 = arith.constant 0 : i32
    return %c0_i32, %c0_i32_0 : i32, i32
  }
  func.func @transform_14(%arg0: i32) -> (i32, i32) {
    %c0_i32 = arith.constant 0 : i32
    %c0_i32_0 = arith.constant 0 : i32
    %c0_i32_1 = arith.constant 0 : i32
    return %c0_i32, %c0_i32_0 : i32, i32
  }
  func.func @transform_15(%arg0: i32) -> (i32, i32, i32) {
    %c0_i32 = arith.constant 0 : i32
    %c0_i32_0 = arith.constant 0 : i32
    %c0_i32_1 = arith.constant 0 : i32
    %c0_i32_2 = arith.constant 0 : i32
    return %c0_i32, %c0_i32_0, %c0_i32_1 : i32, i32, i32
  }
  func.func @transform_16(%arg0: i32) -> (i32, i32) {
    %c0_i32 = arith.constant 0 : i32
    %c0_i32_0 = arith.constant 0 : i32
    %c0_i32_1 = arith.constant 0 : i32
    return %c0_i32, %c0_i32_0 : i32, i32
  }
  func.func @transform_17(%arg0: i32) -> (i32, i32) {
    %c0_i32 = arith.constant 0 : i32
    %c0_i32_0 = arith.constant 0 : i32
    %c0_i32_1 = arith.constant 0 : i32
    return %c0_i32, %c0_i32_0 : i32, i32
  }
  func.func @transform_18(%arg0: i32) -> (i32, i32, i32) {
    %c0_i32 = arith.constant 0 : i32
    %c0_i32_0 = arith.constant 0 : i32
    %c0_i32_1 = arith.constant 0 : i32
    %c0_i32_2 = arith.constant 0 : i32
    return %c0_i32, %c0_i32_0, %c0_i32_1 : i32, i32, i32
  }
  func.func @transform_19(%arg0: i32) -> (i32, i32, i32) {
    %c0_i32 = arith.constant 0 : i32
    %c0_i32_0 = arith.constant 0 : i32
    %c0_i32_1 = arith.constant 0 : i32
    %c0_i32_2 = arith.constant 0 : i32
    return %c0_i32, %c0_i32_0, %c0_i32_1 : i32, i32, i32
  }
  func.func @transform_20(%arg0: i32) -> (i32, i32, i32) {
    %c0_i32 = arith.constant 0 : i32
    %c0_i32_0 = arith.constant 0 : i32
    %c0_i32_1 = arith.constant 0 : i32
    %c0_i32_2 = arith.constant 0 : i32
    return %c0_i32, %c0_i32_0, %c0_i32_1 : i32, i32, i32
  }
  func.func @transform_21(%arg0: i32) -> (i32, i32, i32) {
    %c0_i32 = arith.constant 0 : i32
    %c0_i32_0 = arith.constant 0 : i32
    %c0_i32_1 = arith.constant 0 : i32
    %c0_i32_2 = arith.constant 0 : i32
    return %c0_i32, %c0_i32_0, %c0_i32_1 : i32, i32, i32
  }
  func.func @transform_22(%arg0: i32) -> (i32, i32) {
    %c0_i32 = arith.constant 0 : i32
    %c0_i32_0 = arith.constant 0 : i32
    %c0_i32_1 = arith.constant 0 : i32
    return %c0_i32, %c0_i32_0 : i32, i32
  }
  func.func @transform_23(%arg0: i32) -> (i32, i32) {
    %c0_i32 = arith.constant 0 : i32
    %c0_i32_0 = arith.constant 0 : i32
    %c0_i32_1 = arith.constant 0 : i32
    return %c0_i32, %c0_i32_0 : i32, i32
  }
  func.func @transform_24(%arg0: i32) -> (i32, i32) {
    %c0_i32 = arith.constant 0 : i32
    %c0_i32_0 = arith.constant 0 : i32
    %c0_i32_1 = arith.constant 0 : i32
    return %c0_i32, %c0_i32_0 : i32, i32
  }
  func.func @transform_25(%arg0: i32) -> (i32, i32, i32) {
    %c0_i32 = arith.constant 0 : i32
    %c0_i32_0 = arith.constant 0 : i32
    %c0_i32_1 = arith.constant 0 : i32
    return %arg0, %c0_i32, %c0_i32_0 : i32, i32, i32
  }
}

</mosaic_0001>

<bundles_post_ra>
// kernel: autoencoder_forward.1
= control target key start
LH: loop header
LB: loop body
LE: loop exit
PB: predicated region body
PF: predicated region fallthrough
CT: control target
= control target key end

     0   :  { %s6004_s0 = inlined_call_operand.vmem [shape: f32[2,1,256], index: 0, kind: input, shape index: {}]   ;;  %s6005_s1 = inlined_call_operand.vmem [shape: f32[3,144], index: 1, kind: input, shape index: {}]   ;;  %s6006_s2 = inlined_call_operand.vmem [shape: f32[3,1], index: 2, kind: input, shape index: {}]   ;;  %s6007_s3 = inlined_call_operand.vmem [shape: f32[2,1,256], index: 3, kind: input, shape index: {}]   ;;  %s6008_s4 = inlined_call_operand.vmem [shape: f32[16,144], index: 4, kind: input, shape index: {}]   ;;  %s6009_s5 = inlined_call_operand.vmem [shape: f32[16,1], index: 5, kind: input, shape index: {}]   ;;  %s6010_s6 = inlined_call_operand.vmem [shape: f32[2,1,64], index: 6, kind: input, shape index: {}, may-alias: {6,18}]   ;;  %s6011_s7 = inlined_call_operand.vmem [shape: f32[1,144], index: 7, kind: input, shape index: {}]   ;;  %s6012_s8 = inlined_call_operand.<no memory space> [shape: f32[1,1], index: 8, kind: input, shape index: {}]   ;;  %s6013_s9 = inlined_call_operand.vmem [shape: f32[2,1,16], index: 9, kind: input, shape index: {}, may-alias: {9,15}]   ;;  %s6014_s10 = inlined_call_operand.vmem [shape: f32[3,144], index: 10, kind: input, shape index: {}]   ;;  %s6015_s11 = inlined_call_operand.vmem [shape: f32[3,1], index: 11, kind: input, shape index: {}]   ;;  %s6016_s12 = inlined_call_operand.vmem [shape: f32[2,1,4], index: 12, kind: input, shape index: {}]   ;;  %s6017_s13 = inlined_call_operand.vmem [shape: f32[16,144], index: 13, kind: input, shape index: {}]   ;;  %s6018_s14 = inlined_call_operand.vmem [shape: f32[16,1], index: 14, kind: input, shape index: {}]   ;;  %s6019_s15 = inlined_call_operand.vmem [shape: f32[2,1,16], index: 15, kind: input, shape index: {}, may-alias: {9,15}]   ;;  %s6020_s16 = inlined_call_operand.vmem [shape: f32[1,144], index: 16, kind: input, shape index: {}]   ;;  %s6021_s18 = inlined_call_operand.vmem [shape: f32[2,1,64], index: 18, kind: input, shape index: {}, may-alias: {6,18}]   ;;  %s6022_s19 = inlined_call_operand.vmem [shape: f32[4,256,64], index: 19, kind: input, shape index: {}]   ;;  %s6023_s20 = inlined_call_operand.vmem [shape: f32[4,64,16], index: 20, kind: input, shape index: {}]   ;;  %s6024_s21 = inlined_call_operand.vmem [shape: f32[4,16,4], index: 21, kind: input, shape index: {}]   ;;  %s6025_s22 = inlined_call_operand.vmem [shape: f32[4,16], index: 22, kind: input, shape index: {}]   ;;  %s6026_s23 = inlined_call_operand.vmem [shape: f32[16,64], index: 23, kind: input, shape index: {}]   ;;  %s6027_s24 = inlined_call_operand.vmem [shape: f32[64,256], index: 24, kind: input, shape index: {}]   ;;  %s6028_s25 = inlined_call_operand.vmem [shape: f32[2,1,256], index: 25, kind: output, shape index: {}]   ;;  %s6029_s17 = inlined_call_operand.<no memory space> [shape: f32[1,1], index: 17, kind: input, shape index: {}]  }
   0x1   :  { %6068 = sst [smem:[#allocation7_spill]] %s6004_s0  ;;  %v32_v1 = vstv %s6029_s17 }
   0x2   :  { %6069 = sst [smem:[#allocation8_spill]] %s6005_s1  ;;  %33 = vst [vmem:[#allocation5] sm:$0x1] %v32_v1 }
   0x3   :  { %6070 = sst [smem:[#allocation9_spill]] %s6006_s2 }
   0x4   :  { %6071 = sst [smem:[#allocation10_spill]] %s6007_s3  ;;  %s4764_s3 = smov 0  }
   0x5   :  { %6072 = sst [smem:[#allocation11_spill]] %s6008_s4 }
   0x6   :  { %6073 = sst [smem:[#allocation12_spill]] %s6009_s5 }
   0x7   :  { %6074 = sst [smem:[#allocation13_spill]] %s6010_s6 }
   0x8   :  { %6075 = sst [smem:[#allocation14_spill]] %s6011_s7 }
   0x9   :  { %6076 = sst [smem:[#allocation15_spill]] %s6012_s8 }
   0xa   :  { %6077 = sst [smem:[#allocation16_spill]] %s6013_s9  ;;  %s6079_s6 = sld [smem:[#allocation15_spill]] }
   0xb   :  { %6078 = sst [smem:[#allocation17_spill]] %s6022_s19 }
  0x10   :  { %v30_v0 = vstv %s6079_s6 }
  0x11   :  { %31 = vst [vmem:[#allocation4] sm:$0x1] %v30_v0 }
  0x12 LB: > { %6080 = sst [smem:[#allocation6_spill]] %s4599_s3  ;;  %s3659_s26 = sadd.s32 4294967295, %s4599_s3   ;;  %s4599_s3 = sphi %s4764_s3, %s39_s3  }
  0x13   : > { %p3663_p0 = scmp.ge.s32.totalorder %s4599_s3, 1  ;;  %p690_p1 = scmp.lt.s32.totalorder %s4599_s3, 3 }
  0x15   : > { %p691_p2 = pnand %p3663_p0, %p690_p1 }
  0x16   : > { %s6081_s17 = sld [smem:[#allocation10_spill]] (!%p691_p2)  ;;  %v801_v3 = vlaneseq (!%p691_p2)  ;;  %s4601_s27 = smov (!%p691_p2), 111   ;;  %v4603_v6 = vmov (!%p691_p2), 0.0   ;;  %vm828_vm2 = vcmask (!%p691_p2), 138240   ;;  %vm1459_vm3 = vcmask (!%p691_p2), 133120  }
  0x17   : > { %694 = sbr.rel (%p691_p2) target bundleno = 3865 (0xf19), region = 120  ;;  %p4781_p3 = scmp.lt.s32.totalorder (!%p691_p2), %s3659_s26, 1  ;;  %764 = vst [vmem:[#allocation3] sm:$0xff] (!%p691_p2), %v4603_v6  ;;  %765 = vst [vmem:[#allocation3 + $0x8] sm:$0xff] (!%p691_p2), %v4603_v6  ;;  %vm820_vm4 = vcmask (!%p691_p2), 908288   ;;  %vm864_vm5 = vcmask (!%p691_p2), 1039360  }
  0x18   : > { %s6040_s5 = smov (!%p691_p2), 127   ;;  %vm4793_vm0 = vcmp.lt.s32.totalorder (!%p691_p2), %v801_v3, 401  ;;  %766 = vst [vmem:[#allocation3 + $0x10] sm:$0xff] (!%p691_p2), %v4603_v6  ;;  %767 = vst [vmem:[#allocation3 + $0x18] sm:$0xff] (!%p691_p2), %v4603_v6  ;;  %s4604_s0 = smov (!%p691_p2), 113   ;;  %vm4839_vm1 = vcmp.lt.s32.totalorder (!%p691_p2), %v801_v3, 256 }
  0x19   : > { %768 = vst [vmem:[#allocation3 + $0x20] sm:$0xff] (!%p691_p2), %v4603_v6  ;;  %769 = vst [vmem:[#allocation3 + $0x28] sm:$0xff] (!%p691_p2), %v4603_v6  ;;  %s6087_s30 = sld [smem:[#allocation7_spill]] (!%p691_p2)  ;;  %s4605_s1 = smov (!%p691_p2), 16   ;;  %vm847_vm6 = vcmask (!%p691_p2), 924672   ;;  %vm837_vm7 = vcmask (!%p691_p2), 130048  }
  0x1a   : > { %770 = vst [vmem:[#allocation3 + $0x30] sm:$0xff] (!%p691_p2), %v4603_v6  ;;  %772 = vst [vmem:[#allocation3 + $0x40] sm:$0xff] (!%p691_p2), %v4603_v6  ;;  %s4606_s8 = smov (!%p691_p2), 17   ;;  %s6042_s4 = smov (!%p691_p2), 1   ;;  %v4610_v31 = vmov (!%p691_p2), 0   ;;  %vm872_vm8 = vcmask (!%p691_p2), 7168  }
  0x1b   : > { %773 = vst [vmem:[#allocation3 + $0x48] sm:$0xff] (!%p691_p2), %v4603_v6  ;;  %774 = vst [vmem:[#allocation3 + $0x50] sm:$0xff] (!%p691_p2), %v4603_v6  ;;  %s4608_s28 = smov (!%p691_p2), 15   ;;  %s4609_s9 = smov (!%p691_p2), 112   ;;  %4577 = vset.pattern.permute.xlu1 (!%p691_p2), %v4610_v31  ;;  %4578 = vset.pattern.permute.xlu0 (!%p691_p2), %v4610_v31  ;;  %vm855_vm9 = vcmask (!%p691_p2), 121856   ;;  %vm907_vm10 = vcmask (!%p691_p2), 916480  }
  0x1c   : > { %v4775_v2 = vld [vmem:[%s6081_s17] sm:$0x3] (!%p691_p2)  ;;  %v4788_v4 = vld [vmem:[%s6081_s17 + $0x2] sm:$0x3] (!%p691_p2)  ;;  %776 = vst [vmem:[#allocation3 + $0x60] sm:$0xff] (!%p691_p2), %v4603_v6  ;;  %777 = vst [vmem:[#allocation3 + $0x68] sm:$0xff] (!%p691_p2), %v4603_v6 }
  0x1d   : > { %817 = vrot.lane.b32.xlu0 (!%p691_p2), %v4775_v2, %s4601_s27  ;;  %861 = vrot.lane.b32.xlu1 (!%p691_p2), %v4775_v2, %s6040_s5  ;;  %778 = vst [vmem:[#allocation3 + $0x70] sm:$0xff] (!%p691_p2), %v4603_v6  ;;  %780 = vst [vmem:[#allocation3 + $0x80] sm:$0xff] (!%p691_p2), %v4603_v6  ;;  %s6090_s19 = sld [smem:[#allocation17_spill]] (!%p691_p2)  ;;  %s6036_s2 = smov (!%p691_p2), 119   ;;  %vm1461_vm11 = vcmask (!%p691_p2), 518144   ;;  %vm1484_vm12 = vcmask (!%p691_p2), 72704  }
  0x1e   : > { %781 = vst [vmem:[#allocation3 + $0x88] sm:$0xff] %v4603_v6  ;;  %782 = vst [vmem:[#allocation3 + $0x90] sm:$0xff] %v4603_v6  ;;  %s6113_s26 = smov (!%p4781_p3, %s3659_s26), 1  ;;  %s6038_s6 = smov 121   ;;  %vm1494_vm13 = vcmask 64512   ;;  %vm1514_vm14 = vcmask 56320  }
  0x1f   : > { %784 = vst [vmem:[#allocation3 + $0xa0] sm:$0xff] %v4603_v6  ;;  %785 = vst [vmem:[#allocation3 + $0xa8] sm:$0xff] %v4603_v6  ;;  %s6035_s29 = sshll.u32 %s6113_s26, 1  ;;  %s6055_s17 = smov 123   ;;  %vm1687_vm15 = vcmask 523264  }
  0x20   : > { %786 = vst [vmem:[#allocation3 + $0xb0] sm:$0xff] %v4603_v6  ;;  %788 = vst [vmem:[#allocation3 + $0xc0] sm:$0xff] %v4603_v6  ;;  %s759_s7 = scalar_lea.vmem %s6087_s30, %s6035_s29  ;;  %s6093_s30 = smov 127  }
  0x21   : > { %789 = vst [vmem:[#allocation3 + $0xc8] sm:$0xff] %v4603_v6  ;;  %790 = vst [vmem:[#allocation3 + $0xd0] sm:$0xff] %v4603_v6  ;;  %844 = vrot.lane.b32.xlu0 %v4788_v4, %s4604_s0  ;;  %v800_v8 = vld [vmem:[%s759_s7] sm:$0x3]  ;;  %s6089_s7 = sld [smem:[#allocation9_spill]]  ;;  %s6096_s29 = sld [smem:[#allocation12_spill]] }
  0x22   : > { %792 = vst [vmem:[#allocation3 + $0xe0] sm:$0xff] %v4603_v6  ;;  %793 = vst [vmem:[#allocation3 + $0xe8] sm:$0xff] %v4603_v6  ;;  %s6057_s3 = smov 125  }
  0x23   : > { %794 = vst [vmem:[#allocation3 + $0xf0] sm:$0xff] %v4603_v6  ;;  %796 = vst [vmem:[#allocation3 + $0x100] sm:$0xff] %v4603_v6  ;;  %v1057_v29 = vld [vmem:[%s6090_s19 + $0x80] sm:$0xff]  ;;  %v1058_v30 = vld [vmem:[%s6090_s19 + $0x88] sm:$0xff] }
  0x24   : > { %797 = vst [vmem:[#allocation3 + $0x108] sm:$0xff] %v4603_v6  ;;  %798 = vst [vmem:[#allocation3 + $0x110] sm:$0xff] %v4603_v6  ;;  %v4183_v32 = vpack.c.bf16 %v1058_v30, %v1057_v29  ;;  %v1041_v33 = vld [vmem:[%s6090_s19] sm:$0xff]  ;;  %v1042_v34 = vld [vmem:[%s6090_s19 + $0x8] sm:$0xff] }
  0x25   : > { %2034 = vst [vmem:[#allocation2 + $0x28] sm:$0xff] %v4603_v6  ;;  %805 = vst.msk [vmem:[#allocation2] ss:$8 sm:$0xf] %vm4793_vm0, %v4603_v6  ;;  %v4185_v35 = vpack.c.bf16 %v1042_v34, %v1041_v33  ;;  %v1059_v36 = vld [vmem:[%s6090_s19 + $0x90] sm:$0xff]  ;;  %v1060_v37 = vld [vmem:[%s6090_s19 + $0x98] sm:$0xff] }
  0x26   : > { %810 = vst.msk [vmem:[#allocation2 + $0x8] ss:$8 sm:$0x3] %vm4839_vm1, %v800_v8  ;;  %4184 = vmatprep.subr.bf16.mxu1 %v4183_v32  ;;  %v1043_v38 = vld [vmem:[%s6090_s19 + $0x10] sm:$0xff]  ;;  %v4187_v39 = vpack.c.bf16 %v1060_v37, %v1059_v36  ;;  %v1044_v40 = vld [vmem:[%s6090_s19 + $0x18] sm:$0xff]  ;;  %v1061_v42 = vld [vmem:[%s6090_s19 + $0xa0] sm:$0xff] }
  0x27   : > { %v960_v28 = vld [vmem:[%s6089_s7] sm:$0x7]  ;;  %4186 = vmatpush3.bf16.msra.mxu1 %v4185_v35  ;;  %v4189_v41 = vpack.c.bf16 %v1044_v40, %v1043_v38  ;;  %v1062_v43 = vld [vmem:[%s6090_s19 + $0xa8] sm:$0xff]  ;;  %v1063_v48 = vld [vmem:[%s6090_s19 + $0xb0] sm:$0xff]  ;;  %s6044_s7 = smov 120  }
  0x28   : > { %4188 = vmatprep.subr.bf16.mxu1 %v4187_v39  ;;  %v1045_v44 = vld [vmem:[%s6090_s19 + $0x20] sm:$0xff]  ;;  %v1046_v45 = vld [vmem:[%s6090_s19 + $0x28] sm:$0xff]  ;;  %v4191_v46 = vpack.c.bf16 %v1062_v43, %v1061_v42  ;;  %v1064_v49 = vld [vmem:[%s6090_s19 + $0xb8] sm:$0xff] }
  0x29   : > { %v4193_v47 = vpack.c.bf16 %v1046_v45, %v1045_v44  ;;  %v1047_v50 = vld [vmem:[%s6090_s19 + $0x30] sm:$0xff]  ;;  %v4195_v51 = vpack.c.bf16 %v1064_v49, %v1063_v48  ;;  %v1048_v52 = vld [vmem:[%s6090_s19 + $0x38] sm:$0xff]  ;;  %v1065_v54 = vld [vmem:[%s6090_s19 + $0xc0] sm:$0xff] }
  0x2a   : > { %v4197_v53 = vpack.c.bf16 %v1048_v52, %v1047_v50  ;;  %v1066_v55 = vld [vmem:[%s6090_s19 + $0xc8] sm:$0xff]  ;;  %v1049_v56 = vld [vmem:[%s6090_s19 + $0x40] sm:$0xff]  ;;  %v1067_v60 = vld [vmem:[%s6090_s19 + $0xd0] sm:$0xff] }
  0x2b   : > { %4190 = vmatpush3.bf16.msra.mxu1 %v4189_v41  ;;  %v4199_v57 = vpack.c.bf16 %v1066_v55, %v1065_v54  ;;  %v1050_v58 = vld [vmem:[%s6090_s19 + $0x48] sm:$0xff]  ;;  %v1068_v61 = vld [vmem:[%s6090_s19 + $0xd8] sm:$0xff]  ;;  %v1051_v62 = vld [vmem:[%s6090_s19 + $0x50] sm:$0xff] }
  0x2c   : > { %4192 = vmatprep.subr.bf16.mxu1 %v4191_v46  ;;  %v4201_v59 = vpack.c.bf16 %v1050_v58, %v1049_v56  ;;  %v4203_v63 = vpack.c.bf16 %v1068_v61, %v1067_v60  ;;  %v1052_v0 = vld [vmem:[%s6090_s19 + $0x58] sm:$0xff]  ;;  %v1069_v8 = vld [vmem:[%s6090_s19 + $0xe0] sm:$0xff] }
  0x2d   : > { %v812_v9 = vld [vmem:[#allocation2] ss:$8 sm:$0xf]  ;;  %v4205_v1 = vpack.c.bf16 %v1052_v0, %v1051_v62 }
  0x2e   : > { %1456 = vst [vmem:[#allocation2] sm:$0x7] %v4603_v6  ;;  %1457 = vst [vmem:[#allocation2 + $0x8] sm:$0x7] %v4603_v6  ;;  %834 = vrot.lane.b32.xlu0 %v812_v9, %s4605_s1  ;;  %v878_v22 = vrot.slane %v812_v9, 1  ;;  %s6094_s1 = smov 121  }
  0x2f   : > { %1458 = vst [vmem:[#allocation2 + $0x10] sm:$0x7] %v4603_v6  ;;  %1460 = vst.msk [vmem:[#allocation2 + $0x18] sm:$0x7] %vm1459_vm3, %v4603_v6  ;;  %4194 = vmatpush3.bf16.msra.mxu1 %v4193_v47 }
  0x30   : > { %2031 = vst [vmem:[#allocation2 + $0x10] sm:$0xff] %v4603_v6  ;;  %2032 = vst.msk [vmem:[#allocation2 + $0x18] sm:$0xff] %vm828_vm2, %v4603_v6  ;;  %4196 = vmatprep.subr.bf16.mxu1 %v4195_v51 }
  0x31   : > { %881 = vst.msk [vmem:[#allocation3 + $0x80] ss:$8 sm:$0x3] %vm4839_vm1, %v878_v22 }
  0x33   : > { %4198 = vmatpush3.bf16.msra.mxu1 %v4197_v53 }
  0x34   : > { %4200 = vmatprep.subr.bf16.mxu1 %v4199_v57 }
  0x37   : > { %4202 = vmatpush3.bf16.msra.mxu1 %v4201_v59 }
  0x38   : > { %4204 = vmatprep.subr.bf16.mxu1 %v4203_v63  ;;  %v940_v54 = vld [vmem:[#allocation3 + $0x88] sm:$0xff]  ;;  %v939_v58 = vld [vmem:[#allocation3 + $0x80] sm:$0xff] }
  0x39   : > { %v4163_v57 = vpack.c.bf16 %v4603_v6, %v940_v54  ;;  %v4165_v61 = vpack.c.bf16 %v4603_v6, %v939_v58 }
  0x3b   : > { %4206 = vmatpush3.bf16.msra.mxu1 %v4205_v1 }
  0x8f   : > { %v818_v10 = vpop.permute.xlu0 %817  ;;  %v862_v12 = vpop.permute.xlu1 %861 }
  0x90   : > { %v819_v11 = vrot.slane %v818_v10, 7  ;;  %v863_v13 = vrot.slane %v862_v12, 7 }
  0x92   : > { %v821_v14 = vsel %vm820_vm4, %v819_v11, %v818_v10  ;;  %v865_v17 = vsel %vm864_vm5, %v863_v13, %v862_v12  ;;  %v1053_v10 = vld [vmem:[%s6090_s19 + $0x60] sm:$0xff]  ;;  %v1054_v12 = vld [vmem:[%s6090_s19 + $0x68] sm:$0xff] }
  0x93   : > { %v845_v15 = vpop.permute.xlu0 %844  ;;  %v823_v16 = vmul.f32 %v821_v14, %v812_v9  ;;  %v867_v19 = vmul.f32 %v865_v17, %v812_v9  ;;  %v4209_v13 = vpack.c.bf16 %v1054_v12, %v1053_v10 }
  0x94   : > { %v846_v18 = vrot.slane %v845_v15, 7 }
  0x95   : > { %825 = vrot.lane.b32.xlu1 %v823_v16, %s4606_s8  ;;  %869 = vrot.lane.b32.xlu0 %v867_v19, %s6042_s4  ;;  %s6095_s8 = smov 119  }
  0x96   : > { %v848_v20 = vsel %vm847_vm6, %v846_v18, %v845_v15 }
  0x97   : > { %v850_v21 = vmul.f32 %v848_v20, %v812_v9 }
  0x99   : > { %852 = vrot.lane.b32.xlu1 %v850_v21, %s4608_s28  ;;  %893 = vrot.lane.b32.xlu0 %v812_v9, %s4604_s0  ;;  %s6088_s0 = sld [smem:[#allocation8_spill]]  ;;  %s6091_s28 = sld [smem:[#allocation13_spill]] }
  0x9d   : > { %883 = vrot.lane.b32.xlu1 %v812_v9, %s6040_s5  ;;  %913 = vrot.lane.b32.xlu0 %v812_v9, %s4601_s27  ;;  %s6048_s27 = smov 9  }
  0x9f   : > { %v4873_v26 = vld [vmem:[%s6088_s0] sm:$0x77]  ;;  %s6050_s0 = smov 7  }
  0xa0   : > { %v835_v23 = vpop.permute.xlu0 %834  ;;  %v967_v27 = vcombine.high %v4873_v26, %v4873_v26 }
  0xa1   : > { %v836_v24 = vrot.slane %v835_v23, 1  ;;  %903 = vrot.lane.b32.xlu1 %v812_v9, %s4609_s9  ;;  %v1070_v9 = vld [vmem:[%s6090_s19 + $0xe8] sm:$0xff]  ;;  %s6100_s9 = smov 125  }
  0xa2   : > { %3667 = vmatprep.mubr.msk.f32.mxu0 %vm837_vm7, %v967_v27  ;;  %v4207_v11 = vpack.c.bf16 %v1070_v9, %v1069_v8 }
  0xa3   : > { %v838_v25 = vsel %vm837_vm7, %v835_v23, %v836_v24 }
  0xa4   : > { %841 = vst.msk [vmem:[#allocation3 + $0x20] ss:$8 sm:$0x3] %vm4839_vm1, %v838_v25  ;;  %4208 = vmatprep.subr.bf16.mxu1 %v4207_v11 }
  0xa5   : > { %963 = vperm.xlu1 %4577, %v960_v28   ;;  %4210 = vmatpush3.bf16.msra.mxu1 %v4209_v13 }
  0xab   : > { %v928_v27 = vld [vmem:[#allocation3 + $0x28] sm:$0xff]  ;;  %v927_v46 = vld [vmem:[#allocation3 + $0x20] sm:$0xff] }
  0xac   : > { %v4151_v38 = vpack.c.bf16 %v4603_v6, %v928_v27  ;;  %v4153_v50 = vpack.c.bf16 %v4603_v6, %v927_v46  ;;  %v3709_v46 = vld [vmem:[%s6090_s19 + $0x248] sm:$0xff] }
 0x107   : > { %v826_v14 = vpop.permute.xlu1 %825  ;;  %v870_v16 = vpop.permute.xlu0 %869 }
 0x108   : > { %v827_v15 = vrot.slane %v826_v14, 1  ;;  %v871_v17 = vrot.slane %v870_v16, 1 }
 0x10a   : > { %v829_v18 = vsel %vm828_vm2, %v826_v14, %v827_v15  ;;  %v873_v20 = vsel %vm872_vm8, %v870_v16, %v871_v17 }
 0x10b   : > { %831 = vst.msk [vmem:[#allocation3] ss:$8 sm:$0x3] %vm4839_vm1, %v829_v18  ;;  %v853_v19 = vpop.permute.xlu1 %852  ;;  %876 = vst.msk [vmem:[#allocation3 + $0x60] ss:$8 sm:$0x3] %vm4839_vm1, %v873_v20  ;;  %v894_v22 = vpop.permute.xlu0 %893 }
 0x10c   : > { %v854_v21 = vrot.slane %v853_v19, 1  ;;  %v895_v23 = vrot.slane %v894_v22, 1  ;;  %v896_v24 = vrot.slane %v894_v22, 2  ;;  %v3716_v18 = vld [vmem:[%s6090_s19 + $0x280] sm:$0xff] }
 0x10d   : > { %v3700_v22 = vld [vmem:[%s6090_s19 + $0x200] sm:$0xff] }
 0x10e   : > { %v856_v25 = vsel %vm855_vm9, %v853_v19, %v854_v21  ;;  %v897_v29 = vsel %vm847_vm6, %v895_v23, %v896_v24  ;;  %v3717_v19 = vld [vmem:[%s6090_s19 + $0x288] sm:$0xff]  ;;  %v3718_v24 = vld [vmem:[%s6090_s19 + $0x290] sm:$0xff]  ;;  %vm2120_vm6 = vcmask 23552   ;;  %vm4624_vm9 = vmmov 0  }
 0x10f   : > { %859 = vst.msk [vmem:[#allocation3 + $0x40] ss:$8 sm:$0x3] %vm4839_vm1, %v856_v25  ;;  %v884_v28 = vpop.permute.xlu1 %883  ;;  %v899_v32 = vmul.f32 %v897_v29, %v4775_v2  ;;  %v914_v33 = vpop.permute.xlu0 %913  ;;  %v4247_v21 = vpack.c.bf16 %v3717_v19, %v3716_v18  ;;  %v3701_v23 = vld [vmem:[%s6090_s19 + $0x208] sm:$0xff]  ;;  %v3719_v25 = vld [vmem:[%s6090_s19 + $0x298] sm:$0xff]  ;;  %v3702_v29 = vld [vmem:[%s6090_s19 + $0x210] sm:$0xff] }
 0x110   : > { %v885_v30 = vrot.slane %v884_v28, 1  ;;  %v886_v31 = vrot.slane %v884_v28, 2  ;;  %v915_v34 = vrot.slane %v914_v33, 1  ;;  %v916_v35 = vrot.slane %v914_v33, 2  ;;  %v3668_v19 = vld [vmem:[%s6090_s19 + $0x100] sm:$0xff] }
 0x111   : > { %901 = vst.msk [vmem:[#allocation3 + $0xc0] ss:$8 sm:$0x3] %vm4839_vm1, %v899_v32  ;;  %v4249_v27 = vpack.c.bf16 %v3701_v23, %v3700_v22  ;;  %v4251_v28 = vpack.c.bf16 %v3719_v25, %v3718_v24  ;;  %v3721_v32 = vld [vmem:[%s6090_s19 + $0x2a8] sm:$0xff]  ;;  %v3686_v22 = vld [vmem:[%s6090_s19 + $0x190] sm:$0xff]  ;;  %v3687_v23 = vld [vmem:[%s6090_s19 + $0x198] sm:$0xff] }
 0x112   : > { %v924_v36 = vld [vmem:[#allocation3 + $0x8] sm:$0xff]  ;;  %v923_v37 = vld [vmem:[#allocation3] sm:$0xff]  ;;  %v887_v39 = vsel %vm864_vm5, %v885_v30, %v886_v31  ;;  %v917_v43 = vsel %vm820_vm4, %v915_v34, %v916_v35  ;;  %v3703_v30 = vld [vmem:[%s6090_s19 + $0x218] sm:$0xff]  ;;  %vm2070_vm4 = vcmask 39936  }
 0x113   : > { %v4147_v40 = vpack.c.bf16 %v4603_v6, %v924_v36  ;;  %v4149_v41 = vpack.c.bf16 %v4603_v6, %v923_v37  ;;  %v889_v42 = vmul.f32 %v4788_v4, %v887_v39  ;;  %v904_v2 = vpop.permute.xlu1 %903  ;;  %v919_v47 = vmul.f32 %v4788_v4, %v917_v43  ;;  %v936_v53 = vld [vmem:[#allocation3 + $0x68] sm:$0xff]  ;;  %v935_v56 = vld [vmem:[#allocation3 + $0x60] sm:$0xff]  ;;  %v3722_v37 = vld [vmem:[%s6090_s19 + $0x2b0] sm:$0xff] }
 0x114   : > { %v905_v44 = vrot.slane %v904_v2, 1  ;;  %v906_v45 = vrot.slane %v904_v2, 2  ;;  %v4159_v55 = vpack.c.bf16 %v4603_v6, %v936_v53  ;;  %v4161_v59 = vpack.c.bf16 %v4603_v6, %v935_v56  ;;  %v3720_v31 = vld [vmem:[%s6090_s19 + $0x2a0] sm:$0xff]  ;;  %v3705_v36 = vld [vmem:[%s6090_s19 + $0x228] sm:$0xff] }
 0x115   : > { %4148 = vmatprep.subr.bf16.mxu0 %v4147_v40  ;;  %891 = vst.msk [vmem:[#allocation3 + $0xa0] ss:$8 sm:$0x3] %vm4839_vm1, %v889_v42  ;;  %921 = vst.msk [vmem:[#allocation3 + $0x100] ss:$8 sm:$0x3] %vm4839_vm1, %v919_v47  ;;  %v4253_v33 = vpack.c.bf16 %v3703_v30, %v3702_v29  ;;  %v4255_v34 = vpack.c.bf16 %v3721_v32, %v3720_v31  ;;  %v4219_v29 = vpack.c.bf16 %v3687_v23, %v3686_v22 }
 0x116   : > { %4150 = vmatpush1.bf16.msra.mxu0 %v4149_v41  ;;  %v932_v48 = vld [vmem:[#allocation3 + $0x48] sm:$0xff]  ;;  %v908_v49 = vsel %vm907_vm10, %v905_v44, %v906_v45  ;;  %v931_v52 = vld [vmem:[#allocation3 + $0x40] sm:$0xff]  ;;  %v3706_v40 = vld [vmem:[%s6090_s19 + $0x230] sm:$0xff]  ;;  %vm2617_vm10 = vcmask 24576  }
 0x117   : > { %4152 = vmatprep.subr.bf16.mxu0 %v4151_v38  ;;  %911 = vst.msk [vmem:[#allocation3 + $0xe0] ss:$8 sm:$0x3] %vm4839_vm1, %v908_v49  ;;  %v4155_v51 = vpack.c.bf16 %v4603_v6, %v932_v48  ;;  %v4157_v4 = vpack.c.bf16 %v4603_v6, %v931_v52  ;;  %v3704_v35 = vld [vmem:[%s6090_s19 + $0x220] sm:$0xff]  ;;  %v3707_v41 = vld [vmem:[%s6090_s19 + $0x238] sm:$0xff]  ;;  %v3725_v2 = vld [vmem:[%s6090_s19 + $0x2c8] sm:$0xff] }
 0x118   : > { %v948_v0 = vld [vmem:[#allocation3 + $0xc8] sm:$0xff]  ;;  %v947_v9 = vld [vmem:[#allocation3 + $0xc0] sm:$0xff]  ;;  %v4257_v38 = vpack.c.bf16 %v3705_v36, %v3704_v35  ;;  %v4261_v43 = vpack.c.bf16 %v3707_v41, %v3706_v40  ;;  %v3726_v47 = vld [vmem:[%s6090_s19 + $0x2d0] sm:$0xff] }
 0x119   : > { %v4171_v8 = vpack.c.bf16 %v4603_v6, %v948_v0  ;;  %v4173_v11 = vpack.c.bf16 %v4603_v6, %v947_v9  ;;  %v3724_v42 = vld [vmem:[%s6090_s19 + $0x2c0] sm:$0xff]  ;;  %v3727_v48 = vld [vmem:[%s6090_s19 + $0x2d8] sm:$0xff]  ;;  %v3730_v0 = vld [vmem:[%s6090_s19 + $0x2f0] sm:$0xff] }
 0x11a   : > { %4154 = vmatpush1.bf16.msra.mxu0 %v4153_v50  ;;  %v4263_v44 = vpack.c.bf16 %v3725_v2, %v3724_v42  ;;  %v3708_v45 = vld [vmem:[%s6090_s19 + $0x240] sm:$0xff]  ;;  %v4267_v50 = vpack.c.bf16 %v3727_v48, %v3726_v47  ;;  %v3711_v52 = vld [vmem:[%s6090_s19 + $0x258] sm:$0xff]  ;;  %v3714_v9 = vld [vmem:[%s6090_s19 + $0x270] sm:$0xff] }
 0x11b   : > { %4156 = vmatprep.subr.bf16.mxu0 %v4155_v51  ;;  %v4265_v49 = vpack.c.bf16 %v3709_v46, %v3708_v45  ;;  %v3710_v51 = vld [vmem:[%s6090_s19 + $0x250] sm:$0xff]  ;;  %v3728_v53 = vld [vmem:[%s6090_s19 + $0x2e0] sm:$0xff]  ;;  %v3671_v31 = vld [vmem:[%s6090_s19 + $0x118] sm:$0xff] }
 0x11c   : > { %v944_v60 = vld [vmem:[#allocation3 + $0xa8] sm:$0xff]  ;;  %v943_v63 = vld [vmem:[#allocation3 + $0xa0] sm:$0xff]  ;;  %v4269_v54 = vpack.c.bf16 %v3711_v52, %v3710_v51  ;;  %v3670_v30 = vld [vmem:[%s6090_s19 + $0x110] sm:$0xff] }
 0x11d   : > { %v4167_v62 = vpack.c.bf16 %v4603_v6, %v944_v60  ;;  %v4169_v1 = vpack.c.bf16 %v4603_v6, %v943_v63  ;;  %v956_v14 = vld [vmem:[#allocation3 + $0x108] sm:$0xff]  ;;  %v955_v17 = vld [vmem:[#allocation3 + $0x100] sm:$0xff]  ;;  %v1072_v60 = vld [vmem:[%s6090_s19 + $0xf8] sm:$0xff] }
 0x11e   : > { %4158 = vmatpush1.bf16.msra.mxu0 %v4157_v4  ;;  %v952_v10 = vld [vmem:[#allocation3 + $0xe8] sm:$0xff]  ;;  %v951_v13 = vld [vmem:[#allocation3 + $0xe0] sm:$0xff]  ;;  %v4179_v16 = vpack.c.bf16 %v4603_v6, %v956_v14  ;;  %v4181_v20 = vpack.c.bf16 %v4603_v6, %v955_v17  ;;  %v1056_v63 = vld [vmem:[%s6090_s19 + $0x78] sm:$0xff] }
 0x11f   : > { %4160 = vmatprep.subr.bf16.mxu0 %v4159_v55  ;;  %v4175_v12 = vpack.c.bf16 %v4603_v6, %v952_v10  ;;  %v4177_v15 = vpack.c.bf16 %v4603_v6, %v951_v13  ;;  %v3729_v4 = vld [vmem:[%s6090_s19 + $0x2e8] sm:$0xff]  ;;  %v3712_v56 = vld [vmem:[%s6090_s19 + $0x260] sm:$0xff]  ;;  %v3715_v10 = vld [vmem:[%s6090_s19 + $0x278] sm:$0xff] }
 0x120   : > { %v4271_v55 = vpack.c.bf16 %v3729_v4, %v3728_v53  ;;  %v3684_v13 = vld [vmem:[%s6090_s19 + $0x180] sm:$0xff]  ;;  %v3685_v14 = vld [vmem:[%s6090_s19 + $0x188] sm:$0xff]  ;;  %v3674_v41 = vld [vmem:[%s6090_s19 + $0x130] sm:$0xff] }
 0x121   : > { %v3766_v17 = vld [vmem:[%s6091_s28 + $0x1] ss:$0 sm:$0xff]  ;;  %v3675_v42 = vld [vmem:[%s6090_s19 + $0x138] sm:$0xff]  ;;  %v3677_v47 = vld [vmem:[%s6090_s19 + $0x148] sm:$0xff] }
 0x122   : > { %4162 = vmatpush1.bf16.msra.mxu0 %v4161_v59  ;;  %v1071_v59 = vld [vmem:[%s6090_s19 + $0xf0] sm:$0xff]  ;;  %1503 = vrot.lane.b32.xlu1 %v3766_v17, %s6038_s6  ;;  %v3688_v32 = vld [vmem:[%s6090_s19 + $0x1a0] sm:$0xff]  ;;  %v3679_v53 = vld [vmem:[%s6090_s19 + $0x158] sm:$0xff]  ;;  %s6062_s6 = smov 4  }
 0x123   : > { %4164 = vmatprep.subr.bf16.mxu0 %v4163_v57  ;;  %v3713_v57 = vld [vmem:[%s6090_s19 + $0x268] sm:$0xff]  ;;  %v3672_v36 = vld [vmem:[%s6090_s19 + $0x120] sm:$0xff]  ;;  %v3694_v48 = vld [vmem:[%s6090_s19 + $0x1d0] sm:$0xff] }
 0x124   : > { %v4273_v58 = vpack.c.bf16 %v3713_v57, %v3712_v56  ;;  %v964_v18 = vpop.permute.xlu1 %963  ;;  %v3692_v2 = vld [vmem:[%s6090_s19 + $0x1c0] sm:$0xff]  ;;  %v3678_v52 = vld [vmem:[%s6090_s19 + $0x150] sm:$0xff] }
 0x125   : > { %v3676_v46 = vld [vmem:[%s6090_s19 + $0x140] sm:$0xff] }
 0x126   : > { %4166 = vmatpush1.bf16.msra.mxu0 %v4165_v61  ;;  %v4211_v61 = vpack.c.bf16 %v1072_v60, %v1071_v59  ;;  %1533 = vrot.lane.b32.xlu1 %v3766_v17, %s6042_s4  ;;  %v3696_v4 = vld [vmem:[%s6090_s19 + $0x1e0] sm:$0xff]  ;;  %v3698_v59 = vld [vmem:[%s6090_s19 + $0x1f0] sm:$0xff]  ;;  %v3699_v60 = vld [vmem:[%s6090_s19 + $0x1f8] sm:$0xff]  ;;  %s6092_s4 = smov 1  }
 0x127   : > { %4168 = vmatprep.subr.bf16.mxu0 %v4167_v62  ;;  %v1055_v62 = vld [vmem:[%s6090_s19 + $0x70] sm:$0xff]  ;;  %v3680_v57 = vld [vmem:[%s6090_s19 + $0x160] sm:$0xff] }
 0x128   : > { %4212 = vmatprep.subr.bf16.mxu1 %v4211_v61  ;;  %v3736_v23 = vld [vmem:[%s6090_s19 + $0x320] sm:$0xff] }
 0x12a   : > { %4170 = vmatpush1.bf16.msra.mxu0 %v4169_v1  ;;  %v4213_v1 = vpack.c.bf16 %v1056_v63, %v1055_v62  ;;  %1555 = vrot.lane.b32.xlu1 %v3766_v17, %s6048_s27  ;;  %v4243_v62 = vpack.c.bf16 %v3699_v60, %v3698_v59  ;;  %v3682_v63 = vld [vmem:[%s6090_s19 + $0x170] sm:$0xff] }
 0x12b   : > { %4172 = vmatprep.subr.bf16.mxu0 %v4171_v8  ;;  %v3731_v8 = vld [vmem:[%s6090_s19 + $0x2f8] sm:$0xff]  ;;  %v3734_v17 = vld [vmem:[%s6090_s19 + $0x310] sm:$0xff] }
 0x12c   : > { %4214 = vmatpush3.bf16.msra.mxu1 %v4213_v1  ;;  %v3748_v1 = vld [vmem:[%s6090_s19 + $0x380] sm:$0xff] }
 0x12e   : > { %4174 = vmatpush1.bf16.msra.mxu0 %v4173_v11  ;;  %v4275_v11 = vpack.c.bf16 %v3731_v8, %v3730_v0  ;;  %v3683_v0 = vld [vmem:[%s6090_s19 + $0x178] sm:$0xff]  ;;  %v3749_v8 = vld [vmem:[%s6090_s19 + $0x388] sm:$0xff] }
 0x12f   : > { %4176 = vmatprep.subr.bf16.mxu0 %v4175_v12  ;;  %v4277_v12 = vpack.c.bf16 %v3715_v10, %v3714_v9  ;;  %v4245_v9 = vpack.c.bf16 %v3683_v0, %v3682_v63  ;;  %v4279_v10 = vpack.c.bf16 %v3749_v8, %v3748_v1 }
 0x132   : > { %4178 = vmatpush1.bf16.msra.mxu0 %v4177_v15  ;;  %v4215_v15 = vpack.c.bf16 %v3685_v14, %v3684_v13  ;;  %v3750_v13 = vld [vmem:[%s6090_s19 + $0x390] sm:$0xff]  ;;  %v3751_v14 = vld [vmem:[%s6090_s19 + $0x398] sm:$0xff] }
 0x133   : > { %4180 = vmatprep.subr.bf16.mxu0 %v4179_v16  ;;  %v3765_v16 = vld [vmem:[%s6091_s28] ss:$0 sm:$0xff]  ;;  %s6064_s28 = smov 5  }
 0x134   : > { %4216 = vmatprep.subr.bf16.mxu1 %v4215_v15  ;;  %1473 = vrot.lane.b32.xlu0 %v3765_v16, %s6036_s2  ;;  %s6059_s2 = smov 3  }
 0x136   : > { %4182 = vmatpush1.bf16.msra.mxu0 %v4181_v20  ;;  %v3669_v20 = vld [vmem:[%s6090_s19 + $0x108] sm:$0xff] }
 0x137   : > { %4248 = vmatprep.subr.bf16.mxu0 %v4247_v21 }
 0x138   : > { %1518 = vrot.lane.b32.xlu0 %v3765_v16, %s6040_s5  ;;  %s6046_s5 = smov 8  }
 0x139   : > { %1035 = vmatmul.mubr.f32.vlgmr.msra.gmra.mrb[0].mxu0 %v4873_v26  ;;  %v3723_v26 = vld [vmem:[%s6090_s19 + $0x2b8] sm:$0xff] }
 0x13a   : > { %4250 = vmatpush3.bf16.msra.mxu0 %v4249_v27  ;;  %v4259_v39 = vpack.c.bf16 %v3723_v26, %v3722_v37  ;;  %v4217_v27 = vpack.c.bf16 %v3669_v20, %v3668_v19  ;;  %v3673_v37 = vld [vmem:[%s6090_s19 + $0x128] sm:$0xff]  ;;  %v3690_v26 = vld [vmem:[%s6090_s19 + $0x1b0] sm:$0xff]  ;;  %v3752_v19 = vld [vmem:[%s6090_s19 + $0x3a0] sm:$0xff] }
 0x13b   : > { %4252 = vmatprep.subr.bf16.mxu0 %v4251_v28  ;;  %v3753_v20 = vld [vmem:[%s6090_s19 + $0x3a8] sm:$0xff] }
 0x13c   : > { %1542 = vrot.lane.b32.xlu0 %v3765_v16, %s6050_s0  ;;  %v4283_v16 = vpack.c.bf16 %v3751_v14, %v3750_v13  ;;  %v4287_v22 = vpack.c.bf16 %v3753_v20, %v3752_v19 }
 0x13e   : > { %4254 = vmatpush3.bf16.msra.mxu0 %v4253_v33  ;;  %v3689_v33 = vld [vmem:[%s6090_s19 + $0x1a8] sm:$0xff] }
 0x13f   : > { %4256 = vmatprep.subr.bf16.mxu0 %v4255_v34  ;;  %v4221_v34 = vpack.c.bf16 %v3671_v31, %v3670_v30  ;;  %v4223_v35 = vpack.c.bf16 %v3689_v33, %v3688_v32  ;;  %v3738_v31 = vld [vmem:[%s6090_s19 + $0x330] sm:$0xff]  ;;  %v3739_v32 = vld [vmem:[%s6090_s19 + $0x338] sm:$0xff]  ;;  %v3756_v33 = vld [vmem:[%s6090_s19 + $0x3c0] sm:$0xff] }
 0x142   : > { %4258 = vmatpush3.bf16.msra.mxu0 %v4257_v38  ;;  %v3691_v38 = vld [vmem:[%s6090_s19 + $0x1b8] sm:$0xff] }
 0x143   : > { %4260 = vmatprep.subr.bf16.mxu0 %v4259_v39  ;;  %v4225_v39 = vpack.c.bf16 %v3673_v37, %v3672_v36  ;;  %v4227_v40 = vpack.c.bf16 %v3691_v38, %v3690_v26  ;;  %v3740_v37 = vld [vmem:[%s6090_s19 + $0x340] sm:$0xff]  ;;  %v3741_v26 = vld [vmem:[%s6090_s19 + $0x348] sm:$0xff]  ;;  %v3758_v38 = vld [vmem:[%s6090_s19 + $0x3d0] sm:$0xff] }
 0x146   : > { %4262 = vmatpush3.bf16.msra.mxu0 %v4261_v43  ;;  %v3693_v43 = vld [vmem:[%s6090_s19 + $0x1c8] sm:$0xff] }
 0x147   : > { %4264 = vmatprep.subr.bf16.mxu0 %v4263_v44  ;;  %v4229_v44 = vpack.c.bf16 %v3675_v42, %v3674_v41  ;;  %v4231_v45 = vpack.c.bf16 %v3693_v43, %v3692_v2  ;;  %v3742_v42 = vld [vmem:[%s6090_s19 + $0x350] sm:$0xff]  ;;  %v3743_v2 = vld [vmem:[%s6090_s19 + $0x358] sm:$0xff]  ;;  %v3760_v43 = vld [vmem:[%s6090_s19 + $0x3e0] sm:$0xff] }
 0x14a   : > { %4266 = vmatpush3.bf16.msra.mxu0 %v4265_v49  ;;  %v3695_v49 = vld [vmem:[%s6090_s19 + $0x1d8] sm:$0xff] }
 0x14b   : > { %4268 = vmatprep.subr.bf16.mxu0 %v4267_v50  ;;  %v4233_v50 = vpack.c.bf16 %v3677_v47, %v3676_v46  ;;  %v4235_v51 = vpack.c.bf16 %v3695_v49, %v3694_v48  ;;  %v3744_v47 = vld [vmem:[%s6090_s19 + $0x360] sm:$0xff]  ;;  %v3745_v48 = vld [vmem:[%s6090_s19 + $0x368] sm:$0xff]  ;;  %v3762_v49 = vld [vmem:[%s6090_s19 + $0x3f0] sm:$0xff] }
 0x14e   : > { %4270 = vmatpush3.bf16.msra.mxu0 %v4269_v54  ;;  %v3697_v54 = vld [vmem:[%s6090_s19 + $0x1e8] sm:$0xff] }
 0x14f   : > { %4272 = vmatprep.subr.bf16.mxu0 %v4271_v55  ;;  %v4237_v55 = vpack.c.bf16 %v3679_v53, %v3678_v52  ;;  %v4239_v56 = vpack.c.bf16 %v3697_v54, %v3696_v4  ;;  %v3746_v53 = vld [vmem:[%s6090_s19 + $0x370] sm:$0xff]  ;;  %v3747_v4 = vld [vmem:[%s6090_s19 + $0x378] sm:$0xff] }
 0x150   : > { %v4309_v54 = vpack.c.bf16 %v3747_v4, %v3746_v53  ;;  %v5383_v4 = vld [vmem:[#allocation3 + $0x10] sm:$0xff] }
 0x152   : > { %4274 = vmatpush3.bf16.msra.mxu0 %v4273_v58  ;;  %v3681_v58 = vld [vmem:[%s6090_s19 + $0x168] sm:$0xff] }
 0x153   : > { %4276 = vmatprep.subr.bf16.mxu0 %v4275_v11  ;;  %v4241_v61 = vpack.c.bf16 %v3681_v58, %v3680_v57  ;;  %v3732_v11 = vld [vmem:[%s6090_s19 + $0x300] sm:$0xff] }
 0x156   : > { %4278 = vmatpush3.bf16.msra.mxu0 %v4277_v12  ;;  %v3733_v12 = vld [vmem:[%s6090_s19 + $0x308] sm:$0xff] }
 0x157   : > { %v4281_v15 = vpack.c.bf16 %v3733_v12, %v3732_v11 }
 0x194   : > { %v1504_v58 = vpop.permute.xlu1 %1503 }
 0x198   : > { %v1534_v20 = vpop.permute.xlu1 %1533 }
 0x20c   : > { %v1036_v21 = vpop.f32.mrb[0].mxu0 }
 0x20d   : > { %v1038_v24 = vpop.f32.mrb[1].mxu0  ;;  %v5146_v28 = vadd.f32 %v1036_v21, %v964_v18 }
 0x20e   : > { %v5144_v25 = vadd.f32 %v1038_v24, %v964_v18  ;;  %v3735_v18 = vld [vmem:[%s6090_s19 + $0x318] sm:$0xff]  ;;  %v3737_v24 = vld [vmem:[%s6090_s19 + $0x328] sm:$0xff] }
 0x20f   : > { %v4285_v21 = vpack.c.bf16 %v3735_v18, %v3734_v17 }
 0x210   : > { %1137 = vmatprep.mubr.f32.mxu1 %v5144_v25  ;;  %1344 = vmatprep.mubr.f32.mxu0 %v5144_v25 }
 0x211   : > { %1138 = vmatmul.mubr.f32.vlgmr.msra.gmra.mrb[0].mxu1 %v5146_v28  ;;  %1345 = vmatmul.mubr.f32.vlgmr.msra.gmra.mrb[2].mxu0 %v5146_v28 }
 0x212   : > { %4218 = vmatpush3.bf16.msra.mxu1 %v4217_v27  ;;  %1240 = vmatprep.mubr.f32.mxu1 %v5144_v25  ;;  %v3754_v27 = vld [vmem:[%s6090_s19 + $0x3b0] sm:$0xff] }
 0x213   : > { %4220 = vmatprep.subr.bf16.mxu1 %v4219_v29  ;;  %v3755_v29 = vld [vmem:[%s6090_s19 + $0x3b8] sm:$0xff] }
 0x214   : > { %v4291_v30 = vpack.c.bf16 %v3755_v29, %v3754_v27 }
 0x216   : > { %4222 = vmatpush3.bf16.msra.mxu1 %v4221_v34  ;;  %v3757_v34 = vld [vmem:[%s6090_s19 + $0x3c8] sm:$0xff] }
 0x217   : > { %4224 = vmatprep.subr.bf16.mxu1 %v4223_v35  ;;  %v4293_v35 = vpack.c.bf16 %v3739_v32, %v3738_v31  ;;  %v4295_v36 = vpack.c.bf16 %v3757_v34, %v3756_v33  ;;  %v1587_v31 = vld [vmem:[%s6096_s29 + $0x8] sm:$0xff]  ;;  %v1586_v33 = vld [vmem:[%s6096_s29] sm:$0xff] }
 0x218   : > { %v1679_v34 = vld [vmem:[%s6023_s20] sm:$0xff] }
 0x21a   : > { %4226 = vmatpush3.bf16.msra.mxu1 %v4225_v39  ;;  %v3759_v39 = vld [vmem:[%s6090_s19 + $0x3d8] sm:$0xff] }
 0x21b   : > { %4228 = vmatprep.subr.bf16.mxu1 %v4227_v40  ;;  %v4297_v40 = vpack.c.bf16 %v3741_v26, %v3740_v37  ;;  %v4299_v41 = vpack.c.bf16 %v3759_v39, %v3758_v38  ;;  %v1681_v37 = vld [vmem:[%s6023_s20 + $0x10] sm:$0xff]  ;;  %v1682_v26 = vld [vmem:[%s6023_s20 + $0x18] sm:$0xff]  ;;  %v1683_v39 = vld [vmem:[%s6023_s20 + $0x20] sm:$0xff] }
 0x21c   : > { %v4342_v38 = vpack.c.bf16 %v1682_v26, %v1681_v37  ;;  %v3782_v37 = vld [vmem:[%s6023_s20 + $0x88] sm:$0xff]  ;;  %v3791_v26 = vld [vmem:[%s6023_s20 + $0xc0] sm:$0xff] }
 0x21e   : > { %4230 = vmatpush3.bf16.msra.mxu1 %v4229_v44  ;;  %v3761_v44 = vld [vmem:[%s6090_s19 + $0x3e8] sm:$0xff] }
 0x21f   : > { %4232 = vmatprep.subr.bf16.mxu1 %v4231_v45  ;;  %v4301_v45 = vpack.c.bf16 %v3743_v2, %v3742_v42  ;;  %v4303_v46 = vpack.c.bf16 %v3761_v44, %v3760_v43 }
 0x222   : > { %4234 = vmatpush3.bf16.msra.mxu1 %v4233_v50  ;;  %v3763_v50 = vld [vmem:[%s6090_s19 + $0x3f8] sm:$0xff]  ;;  %s6103_s19 = smov 5  }
 0x223   : > { %4236 = vmatprep.subr.bf16.mxu1 %v4235_v51  ;;  %v4305_v51 = vpack.c.bf16 %v3745_v48, %v3744_v47  ;;  %v4307_v52 = vpack.c.bf16 %v3763_v50, %v3762_v49 }
 0x226   : > { %4238 = vmatpush3.bf16.msra.mxu1 %v4237_v55  ;;  %v1463_v55 = vld [vmem:[#allocation2] sm:$0x7] }
 0x227   : > { %4240 = vmatprep.subr.bf16.mxu1 %v4239_v56  ;;  %v1474_v56 = vpop.permute.xlu0 %1473  ;;  %2029 = vst [vmem:[#allocation2] sm:$0xff] %v4603_v6  ;;  %v1506_v59 = vmul.f32 %v1504_v58, %v1463_v55 }
 0x228   : > { %v1476_v57 = vmul.f32 %v1474_v56, %v1463_v55 }
 0x22a   : > { %4242 = vmatpush3.bf16.msra.mxu1 %v4241_v61  ;;  %1480 = vrot.lane.b32.xlu0 %v1476_v57, %s6048_s27 }
 0x22b   : > { %4244 = vmatprep.subr.bf16.mxu1 %v4243_v62  ;;  %v1519_v60 = vpop.permute.xlu0 %1518 }
 0x22c   : > { %v1521_v61 = vmul.f32 %v1519_v60, %v1463_v55 }
 0x22e   : > { %4246 = vmatpush3.bf16.msra.mxu1 %v4245_v9  ;;  %1490 = vrot.lane.b32.xlu0 %v1463_v55, %s6046_s5 }
 0x22f   : > { %4280 = vmatprep.subr.bf16.mxu1 %v4279_v10  ;;  %v1543_v29 = vpop.permute.xlu0 %1542 }
 0x231   : > { %1241 = vmatmul.mubr.f32.vlgmr.msra.gmra.mrb[2].mxu1 %v5146_v28 }
 0x232   : > { %4282 = vmatpush3.bf16.msra.mxu1 %v4281_v15  ;;  %1448 = vmatprep.mubr.f32.mxu1 %v5144_v25  ;;  %v4289_v25 = vpack.c.bf16 %v3737_v24, %v3736_v23 }
 0x233   : > { %4284 = vmatprep.subr.bf16.mxu1 %v4283_v16  ;;  %1510 = vrot.lane.b32.xlu0 %v1506_v59, %s6050_s0 }
 0x236   : > { %4286 = vmatpush3.bf16.msra.mxu1 %v4285_v21 }
 0x237   : > { %4288 = vmatprep.subr.bf16.mxu1 %v4287_v22  ;;  %1525 = vrot.lane.b32.xlu0 %v1521_v61, %s6092_s4  ;;  %v4616_v22 = vmov 0.0|0.0  }
 0x238   : > { %4311 = vmatprep.subr.bf16.mxu0 %v4616_v22 }
 0x23a   : > { %4290 = vmatpush3.bf16.msra.mxu1 %v4289_v25  ;;  %v1556_v25 = vpop.permute.xlu1 %1555 }
 0x23b   : > { %4292 = vmatprep.subr.bf16.mxu1 %v4291_v30 }
 0x23e   : > { %4294 = vmatpush3.bf16.msra.mxu1 %v4293_v35  ;;  %v1680_v35 = vld [vmem:[%s6023_s20 + $0x8] sm:$0xff] }
 0x23f   : > { %4296 = vmatprep.subr.bf16.mxu1 %v4295_v36  ;;  %v4338_v36 = vpack.c.bf16 %v1680_v35, %v1679_v34  ;;  %v3778_v34 = vld [vmem:[%s6023_s20 + $0x78] sm:$0xff] }
 0x242   : > { %4298 = vmatpush3.bf16.msra.mxu1 %v4297_v40  ;;  %v1684_v40 = vld [vmem:[%s6023_s20 + $0x28] sm:$0xff] }
 0x243   : > { %4300 = vmatprep.subr.bf16.mxu1 %v4299_v41  ;;  %v4346_v41 = vpack.c.bf16 %v1684_v40, %v1683_v39  ;;  %v3792_v39 = vld [vmem:[%s6023_s20 + $0xc8] sm:$0xff] }
 0x244   : > { %v4386_v40 = vpack.c.bf16 %v3792_v39, %v3791_v26 }
 0x246   : > { %4302 = vmatpush3.bf16.msra.mxu1 %v4301_v45 }
 0x247   : > { %4304 = vmatprep.subr.bf16.mxu1 %v4303_v46 }
 0x24a   : > { %4306 = vmatpush3.bf16.msra.mxu1 %v4305_v51 }
 0x24b   : > { %4308 = vmatprep.subr.bf16.mxu1 %v4307_v52 }
 0x24e   : > { %4310 = vmatpush3.bf16.msra.mxu1 %v4309_v54 }
 0x24f   : > { %4339 = vmatprep.subr.bf16.mxu1 %v4338_v36 }
 0x251   : > { %1449 = vmatmul.mubr.f32.vlgmr.msra.gmra.mrb[4].mxu1 %v5146_v28 }
 0x252   : > { %4341 = vmatpush3.bf16.msra.mxu1 %v4338_v36  ;;  %v3781_v36 = vld [vmem:[%s6023_s20 + $0x80] sm:$0xff] }
 0x253   : > { %4343 = vmatprep.subr.bf16.mxu1 %v4342_v38 }
 0x256   : > { %4345 = vmatpush3.bf16.msra.mxu1 %v4342_v38  ;;  %v4370_v38 = vpack.c.bf16 %v3782_v37, %v3781_v36 }
 0x257   : > { %4347 = vmatprep.subr.bf16.mxu1 %v4346_v41 }
 0x25a   : > { %4349 = vmatpush3.bf16.msra.mxu1 %v4346_v41 }
 0x29c   : > { %v1481_v42 = vpop.permute.xlu0 %1480 }
 0x2a0   : > { %v1491_v2 = vpop.permute.xlu0 %1490 }
 0x2a5   : > { %v1511_v43 = vpop.permute.xlu0 %1510 }
 0x2a9   : > { %v1526_v44 = vpop.permute.xlu0 %1525 }
 0x2e4   : > { %v3865_v62 = vpop.f32.mrb[0].mxu1  ;;  %v3935_v28 = vpop.f32.mrb[2].mxu0 }
 0x2e5   : > { %v3866_v63 = vpop.f32.mrb[1].mxu1  ;;  %v3936_v0 = vpop.f32.mrb[3].mxu0 }
 0x2e6   : > { %v3867_v1 = vadd.f32 %v3866_v63, %v3865_v62  ;;  %v3937_v8 = vadd.f32 %v3936_v0, %v3935_v28 }
 0x304   : > { %v3900_v9 = vpop.f32.mrb[2].mxu1 }
 0x305   : > { %v3901_v10 = vpop.f32.mrb[3].mxu1 }
 0x306   : > { %v3902_v11 = vadd.f32 %v3901_v10, %v3900_v9 }
 0x308   : > { %v1246_v12 = vmax.f32 %v3867_v1, %v3902_v11 }
 0x30a   : > { %v1350_v13 = vmax.f32 %v1246_v12, %v3937_v8 }
 0x324   : > { %v3970_v14 = vpop.f32.mrb[4].mxu1 }
 0x325   : > { %v3971_v15 = vpop.f32.mrb[5].mxu1 }
 0x326   : > { %v3972_v16 = vadd.f32 %v3971_v15, %v3970_v14  ;;  %v3771_v14 = vld [vmem:[%s6023_s20 + $0x40] sm:$0xff]  ;;  %v3772_v15 = vld [vmem:[%s6023_s20 + $0x48] sm:$0xff] }
 0x328   : > { %v1454_v17 = vmax.f32 %v1350_v13, %v3972_v16 }
 0x32a   : > { %v1455_v18 = vmax.f32 %v1454_v17, 0.0  ;;  %v4354_v17 = vpack.c.bf16 %v3772_v15, %v3771_v14 }
 0x32c   : > { %1462 = vst.msk [vmem:[#allocation2 + $0x8] sm:$0x7] %vm1461_vm11, %v1455_v18 }
 0x333   : > { %v1464_v19 = vld [vmem:[#allocation2 + $0x8] sm:$0x7] }
 0x334   : > { %1532 = vst.msk [vmem:[#allocation3 + $0x80] sm:$0x7] %vm1461_vm11, %v1464_v19  ;;  %2030 = vst [vmem:[#allocation2 + $0x8] sm:$0xff] %v4603_v6  ;;  %v1536_v21 = vmul.f32 %v1534_v20, %v1464_v19  ;;  %v1477_v23 = vmul.f32 %v1474_v56, %v1464_v19  ;;  %v1507_v24 = vmul.f32 %v1504_v58, %v1464_v19  ;;  %v3774_v20 = vld [vmem:[%s6023_s20 + $0x58] sm:$0xff] }
 0x335   : > { %v1522_v27 = vmul.f32 %v1519_v60, %v1464_v19  ;;  %v1545_v6 = vmul.f32 %v1543_v29, %v1464_v19  ;;  %v1558_v30 = vmul.f32 %v1556_v25, %v1464_v19  ;;  %v3776_v29 = vld [vmem:[%s6023_s20 + $0x68] sm:$0xff] }
 0x336   : > { %1538 = vrot.lane.b32.xlu0 %v1536_v21, %s6093_s30  ;;  %1482 = vrot.lane.b32.xlu1 %v1477_v23, %s6048_s27  ;;  %s6061_s27 = smov 124  }
 0x33a   : > { %1551 = vrot.lane.b32.xlu0 %v1464_v19, %s6044_s7  ;;  %1492 = vrot.lane.b32.xlu1 %v1464_v19, %s6046_s5  ;;  %s6097_s5 = sld [smem:[#allocation11_spill]]  ;;  %v3773_v19 = vld [vmem:[%s6023_s20 + $0x50] sm:$0xff]  ;;  %s6099_s7 = smov 3  }
 0x33b   : > { %v1572_v0 = vld [vmem:[#allocation3 + $0x80] sm:$0xff] }
 0x33c   : > { %v4324_v1 = vpack.c.bf16 %v5383_v4, %v1572_v0  ;;  %v3798_v0 = vld [vmem:[%s6023_s20 + $0xf8] sm:$0xff] }
 0x33e   : > { %1512 = vrot.lane.b32.xlu1 %v1507_v24, %s6050_s0  ;;  %1590 = vperm.xlu0 %4578, %v1586_v33   ;;  %v4358_v24 = vpack.c.bf16 %v3774_v20, %v3773_v19  ;;  %s6098_s0 = sld [smem:[#allocation16_spill]] }
 0x340   : > { %v1583_v32 = vld [vmem:[%s6097_s5 + $0x8] sm:$0xff]  ;;  %v1582_v21 = vld [vmem:[%s6097_s5] sm:$0xff]  ;;  %v1585_v23 = vld [vmem:[%s6097_s5 + $0x18] sm:$0xff] }
 0x341   : > { %3767 = vmatprep.mubr.msk.f32.mxu0 %vm837_vm7, %v1583_v32  ;;  %v3777_v32 = vld [vmem:[%s6023_s20 + $0x70] sm:$0xff] }
 0x342   : > { %1527 = vrot.lane.b32.xlu1 %v1522_v27, %s6092_s4  ;;  %v3775_v27 = vld [vmem:[%s6023_s20 + $0x60] sm:$0xff]  ;;  %v4366_v35 = vpack.c.bf16 %v3778_v34, %v3777_v32 }
 0x343   : > { %v4362_v25 = vpack.c.bf16 %v3776_v29, %v3775_v27 }
 0x344   : > { %v3802_v41 = vld [vmem:[%s6098_s0] ss:$0 sm:$0xff] }
 0x346   : > { %1547 = vrot.lane.b32.xlu1 %v1545_v6, %s6094_s1  ;;  %v1584_v6 = vld [vmem:[%s6097_s5 + $0x10] sm:$0xff]  ;;  %s4625_s5 = smov 2  }
 0x34a   : > { %1560 = vrot.lane.b32.xlu1 %v1558_v30, %s6095_s8  ;;  %v1685_v30 = vld [vmem:[%s6023_s20 + $0x30] sm:$0xff] }
 0x34e   : > { %1595 = vperm.xlu1 %4577, %v1587_v31   ;;  %v1686_v31 = vld [vmem:[%s6023_s20 + $0x38] sm:$0xff] }
 0x34f   : > { %v4350_v33 = vpack.c.bf16 %v1686_v31, %v1685_v30 }
 0x351   : > { %4351 = vmatprep.subr.bf16.mxu1 %v4350_v33 }
 0x352   : > { %4353 = vmatpush3.bf16.msra.mxu1 %v4350_v33  ;;  %2051 = vrot.lane.b32.xlu1 %v3802_v41, %s6055_s17  ;;  %s6101_s17 = smov 123  }
 0x353   : > { %4371 = vmatprep.subr.bf16.mxu1 %v4370_v38 }
 0x356   : > { %2127 = vrot.lane.b32.xlu1 %v3802_v41, %s6093_s30 }
 0x35a   : > { %2169 = vrot.lane.b32.xlu1 %v3802_v41, %s6059_s2  ;;  %s6102_s2 = sld [smem:[#allocation14_spill]] }
 0x3a8   : > { %v1539_v45 = vpop.permute.xlu0 %1538  ;;  %v1483_v46 = vpop.permute.xlu1 %1482 }
 0x3a9   : > { %1541 = vst.msk [vmem:[#allocation3 + $0xa0] sm:$0x7] %vm1461_vm11, %v1539_v45  ;;  %v1485_v47 = vsel %vm1484_vm12, %v1481_v42, %v1483_v46  ;;  %v3803_v42 = vld [vmem:[%s6098_s0 + $0x1] ss:$0 sm:$0xff]  ;;  %v3783_v46 = vld [vmem:[%s6023_s20 + $0x90] sm:$0xff]  ;;  %s6108_s0 = smov 8  }
 0x3aa   : > { %1487 = vst.msk [vmem:[#allocation3] sm:$0x7] %vm1461_vm11, %v1485_v47  ;;  %2101 = vrot.lane.b32.xlu0 %v3803_v42, %s6057_s3  ;;  %v3784_v47 = vld [vmem:[%s6023_s20 + $0x98] sm:$0xff]  ;;  %s6104_s3 = smov 4  }
 0x3ac   : > { %v1552_v48 = vpop.permute.xlu0 %1551  ;;  %v1493_v49 = vpop.permute.xlu1 %1492 }
 0x3ad   : > { %1554 = vst.msk [vmem:[#allocation3 + $0xe0] sm:$0x7] %vm1461_vm11, %v1552_v48  ;;  %v1495_v50 = vsel %vm1494_vm13, %v1491_v2, %v1493_v49  ;;  %v3793_v48 = vld [vmem:[%s6023_s20 + $0xd0] sm:$0xff]  ;;  %v3794_v49 = vld [vmem:[%s6023_s20 + $0xd8] sm:$0xff] }
 0x3ae   : > { %1497 = vst.msk [vmem:[#allocation3 + $0x20] sm:$0x7] %vm1461_vm11, %v1495_v50  ;;  %2154 = vrot.lane.b32.xlu0 %v3803_v42, %s6092_s4 }
 0x3b0   : > { %v1513_v51 = vpop.permute.xlu1 %1512  ;;  %v1574_v8 = vld [vmem:[#allocation3 + $0xa0] sm:$0xff] }
 0x3b1   : > { %v1515_v52 = vsel %vm1514_vm14, %v1511_v43, %v1513_v51  ;;  %v1564_v53 = vld [vmem:[#allocation3] sm:$0xff]  ;;  %v4327_v9 = vpack.c.bf16 %v5383_v4, %v1574_v8 }
 0x3b2   : > { %1517 = vst.msk [vmem:[#allocation3 + $0x40] sm:$0x7] %vm1461_vm11, %v1515_v52  ;;  %v4312_v54 = vpack.c.bf16 %v5383_v4, %v1564_v53  ;;  %2192 = vrot.lane.b32.xlu0 %v3803_v42, %s6064_s28 }
 0x3b4   : > { %4313 = vmatpush1.bf16.msra.mxu0 %v4312_v54  ;;  %v1528_v55 = vpop.permute.xlu1 %1527  ;;  %v1578_v12 = vld [vmem:[#allocation3 + $0xe0] sm:$0xff] }
 0x3b5   : > { %v1529_v56 = vsel %vm872_vm8, %v1526_v44, %v1528_v55  ;;  %4314 = vmatprep.subr.bf16.mxu0 %v4616_v22  ;;  %v1566_v57 = vld [vmem:[#allocation3 + $0x20] sm:$0xff]  ;;  %v4333_v13 = vpack.c.bf16 %v5383_v4, %v1578_v12  ;;  %v4374_v55 = vpack.c.bf16 %v3784_v47, %v3783_v46  ;;  %v5521_v12 = vpack.i.bf16 %v5383_v4, %v5383_v4 }
 0x3b6   : > { %1531 = vst.msk [vmem:[#allocation3 + $0x60] sm:$0x7] %vm1461_vm11, %v1529_v56  ;;  %v4315_v58 = vpack.c.bf16 %v5383_v4, %v1566_v57  ;;  %v3785_v54 = vld [vmem:[%s6023_s20 + $0xa0] sm:$0xff]  ;;  %v4390_v56 = vpack.c.bf16 %v3794_v49, %v3793_v48  ;;  %v3786_v57 = vld [vmem:[%s6023_s20 + $0xa8] sm:$0xff]  ;;  %v5556_v48 = vshrl.u32 %v801_v3, 7  ;;  %v3807_v3 = vld [vmem:[%s6024_s21 + $0x18] sm:$0xff] }
 0x3b7   : > { %v2226_v49 = vld [vmem:[#allocation4] sm:$0x1] }
 0x3b8   : > { %4316 = vmatpush1.bf16.msra.mxu0 %v4315_v58  ;;  %v1548_v59 = vpop.permute.xlu1 %1547  ;;  %v3795_v58 = vld [vmem:[%s6023_s20 + $0xe0] sm:$0xff] }
 0x3b9   : > { %1550 = vst.msk [vmem:[#allocation3 + $0xc0] sm:$0x7] %vm1461_vm11, %v1548_v59  ;;  %4317 = vmatprep.subr.bf16.mxu0 %v4616_v22  ;;  %v1568_v60 = vld [vmem:[#allocation3 + $0x40] sm:$0xff]  ;;  %v3796_v59 = vld [vmem:[%s6023_s20 + $0xe8] sm:$0xff] }
 0x3ba   : > { %v4318_v61 = vpack.c.bf16 %v5383_v4, %v1568_v60  ;;  %v4378_v60 = vpack.c.bf16 %v3786_v57, %v3785_v54 }
 0x3bc   : > { %4319 = vmatpush1.bf16.msra.mxu0 %v4318_v61  ;;  %v1561_v62 = vpop.permute.xlu1 %1560  ;;  %v4394_v61 = vpack.c.bf16 %v3796_v59, %v3795_v58 }
 0x3bd   : > { %1563 = vst.msk [vmem:[#allocation3 + $0x100] sm:$0x7] %vm1461_vm11, %v1561_v62  ;;  %4320 = vmatprep.subr.bf16.mxu0 %v4616_v22  ;;  %v1570_v28 = vld [vmem:[#allocation3 + $0x60] sm:$0xff]  ;;  %v1591_v2 = vpop.permute.xlu0 %1590  ;;  %v3787_v62 = vld [vmem:[%s6023_s20 + $0xb0] sm:$0xff]  ;;  %vm2627_vm11 = vcmask 1022976  }
 0x3be   : > { %v4321_v63 = vpack.c.bf16 %v5383_v4, %v1570_v28  ;;  %v3788_v28 = vld [vmem:[%s6023_s20 + $0xb8] sm:$0xff] }
 0x3c0   : > { %4322 = vmatpush1.bf16.msra.mxu0 %v4321_v63  ;;  %v1576_v10 = vld [vmem:[#allocation3 + $0xc0] sm:$0xff]  ;;  %v3797_v63 = vld [vmem:[%s6023_s20 + $0xf0] sm:$0xff] }
 0x3c1   : > { %4323 = vmatprep.subr.bf16.mxu0 %v4616_v22  ;;  %v4330_v11 = vpack.c.bf16 %v5383_v4, %v1576_v10  ;;  %v4398_v8 = vpack.c.bf16 %v3798_v0, %v3797_v63 }
 0x3c4   : > { %4325 = vmatpush1.bf16.msra.mxu0 %v4324_v1  ;;  %v1580_v16 = vld [vmem:[#allocation3 + $0x100] sm:$0xff]  ;;  %v4382_v1 = vpack.c.bf16 %v3788_v28, %v3787_v62 }
 0x3c5   : > { %4326 = vmatprep.subr.bf16.mxu0 %v4616_v22  ;;  %v4336_v18 = vpack.c.bf16 %v5383_v4, %v1580_v16 }
 0x3c8   : > { %4328 = vmatpush1.bf16.msra.mxu0 %v4327_v9 }
 0x3c9   : > { %4329 = vmatprep.subr.bf16.mxu0 %v4616_v22 }
 0x3cc   : > { %4331 = vmatpush1.bf16.msra.mxu0 %v4330_v11 }
 0x3cd   : > { %4332 = vmatprep.subr.bf16.mxu0 %v4616_v22  ;;  %v1596_v50 = vpop.permute.xlu1 %1595 }
 0x3d0   : > { %4334 = vmatpush1.bf16.msra.mxu0 %v4333_v13 }
 0x3d1   : > { %4335 = vmatprep.subr.bf16.mxu0 %v4616_v22  ;;  %v2052_v9 = vpop.permute.xlu1 %2051 }
 0x3d2   : > { %v2054_v10 = vmul.f32 %v5383_v4, %v2052_v9 }
 0x3d4   : > { %4337 = vmatpush1.bf16.msra.mxu0 %v4336_v18  ;;  %2062 = vrot.lane.b32.xlu1 %v2054_v10, %s6064_s28 }
 0x3d5   : > { %4355 = vmatprep.subr.bf16.mxu0 %v4354_v17  ;;  %v2128_v26 = vpop.permute.xlu1 %2127 }
 0x3d6   : > { %v2130_v5 = vmul.f32 %v5383_v4, %v2128_v26 }
 0x3d7   : > { %1669 = vmatmul.mubr.f32.vlgmr.msra.gmra.mrb[4].mxu0 %v1582_v21 }
 0x3d8   : > { %3768 = vmatprep.mubr.msk.f32.mxu0 %vm837_vm7, %v1585_v23  ;;  %4357 = vmatpush3.bf16.msra.mxu0 %v4354_v17 }
 0x3d9   : > { %4359 = vmatprep.subr.bf16.mxu0 %v4358_v24  ;;  %2066 = vrot.lane.b32.xlu1 %v2054_v10, %s6064_s28  ;;  %v2170_v42 = vpop.permute.xlu1 %2169 }
 0x3db   : > { %1674 = vmatmul.mubr.f32.gmra.mrb[6].mxu0 %v1584_v6 }
 0x3dc   : > { %4361 = vmatpush3.bf16.msra.mxu0 %v4358_v24 }
 0x3dd   : > { %4363 = vmatprep.subr.bf16.mxu0 %v4362_v25  ;;  %4580 = vrot.lane.b32.xlu1 %v5521_v12, %s6062_s6 }
 0x3e0   : > { %4365 = vmatpush3.bf16.msra.mxu0 %v4362_v25 }
 0x3e1   : > { %4367 = vmatprep.subr.bf16.mxu0 %v4366_v35 }
 0x3e4   : > { %4369 = vmatpush3.bf16.msra.mxu0 %v4366_v35 }
 0x3e5   : > { %4387 = vmatprep.subr.bf16.mxu0 %v4386_v40 }
 0x41c   : > { %v2102_v11 = vpop.permute.xlu0 %2101 }
 0x41d   : > { %v2104_v13 = vmul.f32 %v5383_v4, %v2102_v11 }
 0x41f   : > { %2112 = vrot.lane.b32.xlu0 %v2104_v13, %s6099_s7 }
 0x4aa   : > { %v1670_v43 = vpop.f32.mrb[4].mxu0 }
 0x4ab   : > { %v1671_v44 = vadd.f32 %v1670_v43, %v1591_v2  ;;  %v1672_v45 = vpop.f32.mrb[5].mxu0 }
 0x4ad   : > { %4047 = vmatprep.mubr.msk.f32.mxu1 %vm1687_vm15, %v1671_v44  ;;  %4066 = vmatprep.mubr.msk.f32.mxu0 %vm1687_vm15, %v1671_v44 }
 0x4ae   : > { %v1675_v51 = vpop.f32.mrb[6].mxu0 }
 0x4af   : > { %v1676_v52 = vadd.f32 %v1675_v51, %v1596_v50  ;;  %v1677_v53 = vpop.f32.mrb[7].mxu0  ;;  %v5559_v50 = vsub.s32 1, %v5556_v48  ;;  %v5564_v51 = vld [vmem:[%s6102_s2] sm:$0x3]  ;;  %s6105_s2 = smov 124  }
 0x4b0   : > { %v3806_v53 = vld [vmem:[%s6024_s21 + $0x10] sm:$0xff] }
 0x4b1   : > { %4048 = vmatmul.mubr.msk.f32.vlgmr.msra.gmra.mrb[6].mxu1 %vm1687_vm15, %v1676_v52  ;;  %4067 = vmatmul.mubr.msk.f32.vlgmr.msra.gmra.mrb[8].mxu0 %vm1687_vm15, %v1676_v52  ;;  %v4433_v54 = vpack.c.bf16 %v3807_v3, %v3806_v53 }
 0x4b2   : > { %4373 = vmatpush3.bf16.msra.mxu1 %v4370_v38  ;;  %4389 = vmatpush3.bf16.msra.mxu0 %v4386_v40  ;;  %v2155_v40 = vpop.permute.xlu0 %2154 }
 0x4b3   : > { %4085 = vmatprep.mubr.msk.f32.mxu1 %vm1687_vm15, %v1671_v44  ;;  %4104 = vmatprep.mubr.msk.f32.mxu0 %vm1687_vm15, %v1671_v44 }
 0x4b4   : > { %4375 = vmatprep.subr.bf16.mxu1 %v4374_v55  ;;  %4391 = vmatprep.subr.bf16.mxu0 %v4390_v56 }
 0x4b6   : > { %4377 = vmatpush3.bf16.msra.mxu1 %v4374_v55  ;;  %4393 = vmatpush3.bf16.msra.mxu0 %v4390_v56  ;;  %v2193_v44 = vpop.permute.xlu0 %2192  ;;  %v2063_v55 = vpop.permute.xlu1 %2062 }
 0x4b7   : > { %4379 = vmatprep.subr.bf16.mxu1 %v4378_v60  ;;  %4395 = vmatprep.subr.bf16.mxu0 %v4394_v61 }
 0x4ba   : > { %4381 = vmatpush3.bf16.msra.mxu1 %v4378_v60  ;;  %4397 = vmatpush3.bf16.msra.mxu0 %v4394_v61  ;;  %v2067_v56 = vpop.permute.xlu1 %2066  ;;  %v2113_v58 = vpop.permute.xlu0 %2112 }
 0x4bb   : > { %4383 = vmatprep.subr.bf16.mxu1 %v4382_v1  ;;  %4399 = vmatprep.subr.bf16.mxu0 %v4398_v8 }
 0x4be   : > { %4385 = vmatpush3.bf16.msra.mxu1 %v4382_v1  ;;  %4401 = vmatpush3.bf16.msra.mxu0 %v4398_v8  ;;  %v4581_v57 = vpop.permute.xlu1 %4580 }
 0x4bf   : > { %4402 = vmatprep.subr.bf16.mxu1 %v4616_v22  ;;  %4432 = vmatprep.subr.bf16.mxu0 %v4616_v22  ;;  %v4583_v59 = vunpack.i.h.bf16 %v4581_v57  ;;  %v4582_v60 = vunpack.i.l.bf16 %v4581_v57 }
 0x4c1   : > { %4086 = vmatmul.mubr.msk.f32.vlgmr.msra.gmra.mrb[8].mxu1 %vm1687_vm15, %v1676_v52  ;;  %4105 = vmatmul.mubr.msk.f32.vlgmr.msra.gmra.mrb[10].mxu0 %vm1687_vm15, %v1676_v52  ;;  %v2244_v52 = vrot.slane %v5564_v51, %v5559_v50 }
 0x4c2   : > { %4434 = vmatpush3.bf16.msra.mxu0 %v4433_v54  ;;  %4118 = vmatprep.mubr.msk.f32.mxu0 %vm4624_vm9, %v5383_v4 }
 0x4c3   : > { %3804 = vmatprep.mubr.msk.f32.mxu1 %vm837_vm7, %v2244_v52  ;;  %4435 = vmatprep.subr.bf16.mxu0 %v4616_v22 }
 0x584   : > { %v4049_v14 = vpop.f32.mrb[6].mxu1  ;;  %v4068_v15 = vpop.f32.mrb[8].mxu0 }
 0x585   : > { %v1854_v16 = vmax.f32 %v4049_v14, %v4068_v15  ;;  %v1760_v17 = vpop.f32.mrb[7].mxu1  ;;  %v1844_v18 = vpop.f32.mrb[9].mxu0 }
 0x586   : > { %v1853_v19 = vmax.f32 %v1760_v17, %v1844_v18 }
 0x594   : > { %v4087_v20 = vpop.f32.mrb[8].mxu1  ;;  %v4106_v21 = vpop.f32.mrb[10].mxu0 }
 0x595   : > { %v1940_v23 = vmax.f32 %v1854_v16, %v4087_v20  ;;  %v1930_v24 = vpop.f32.mrb[9].mxu1  ;;  %v2016_v27 = vpop.f32.mrb[11].mxu0 }
 0x596   : > { %v1939_v29 = vmax.f32 %v1853_v19, %v1930_v24 }
 0x597   : > { %v2026_v6 = vmax.f32 %v1940_v23, %v4106_v21 }
 0x598   : > { %v2025_v25 = vmax.f32 %v1939_v29, %v2016_v27 }
 0x599   : > { %v2028_v30 = vmax.f32 %v2026_v6, 0.0 }
 0x59a   : > { %v2027_v31 = vmax.f32 %v2025_v25, 0.0 }
 0x59b   : > { %2038 = vst.msk [vmem:[#allocation2 + $0x28] sm:$0xff] %vm837_vm7, %v2028_v30 }
 0x59c   : > { %2037 = vst.msk [vmem:[#allocation2 + $0x8] sm:$0xff] %vm837_vm7, %v2027_v31 }
 0x5a2   : > { %v2042_v32 = vld [vmem:[#allocation2 + $0x28] sm:$0xff] }
 0x5a3   : > { %v2040_v33 = vld [vmem:[#allocation2 + $0x8] sm:$0xff]  ;;  %2153 = vst.msk [vmem:[#allocation3 + $0x90] sm:$0xff] %vm837_vm7, %v2042_v32  ;;  %3216 = vst [vmem:[#allocation2 + $0x28] sm:$0xff] %v5383_v4  ;;  %2087 = vrot.lane.b32.xlu1 %v2042_v32, %s6062_s6  ;;  %v2107_v34 = vmul.f32 %v2102_v11, %v2042_v32  ;;  %v2057_v35 = vmul.f32 %v2052_v9, %v2042_v32  ;;  %v2133_v39 = vmul.f32 %v2128_v26, %v2042_v32 }
 0x5a4   : > { %2152 = vst.msk [vmem:[#allocation3 + $0x80] sm:$0xff] %vm837_vm7, %v2040_v33  ;;  %2083 = vrot.lane.b32.xlu0 %v2040_v33, %s6062_s6  ;;  %v2105_v36 = vmul.f32 %v2102_v11, %v2040_v33  ;;  %v2055_v37 = vmul.f32 %v2052_v9, %v2040_v33  ;;  %v2131_v38 = vmul.f32 %v2128_v26, %v2040_v33  ;;  %s6110_s6 = sshll.u32 %s6113_s26, 1 }
 0x5a5   : > { %2615 = vst.msk [vmem:[#allocation2] ss:$8 sm:$0xf] %vm4793_vm0, %v5383_v4  ;;  %v2158_v41 = vmul.f32 %v2155_v40, %v2042_v32  ;;  %v2173_v2 = vmul.f32 %v2170_v42, %v2042_v32  ;;  %v2157_v43 = vmul.f32 %v2155_v40, %v2040_v33  ;;  %v2172_v45 = vmul.f32 %v2170_v42, %v2040_v33 }
 0x5a6   : > { %v2196_v46 = vmul.f32 %v2193_v44, %v2042_v32  ;;  %v2195_v47 = vmul.f32 %v2193_v44, %v2040_v33  ;;  %vm2089_vm0 = vcmask 31744  }
 0x5a7   : > { %2118 = vrot.lane.b32.xlu1 %v2107_v34, %s6099_s7 }
 0x5a8   : > { %2068 = vrot.lane.b32.xlu0 %v2057_v35, %s6064_s28 }
 0x5ab   : > { %2114 = vrot.lane.b32.xlu1 %v2105_v36, %s6099_s7  ;;  %v2215_v40 = vld [vmem:[#allocation3 + $0x80] sm:$0xff] }
 0x5ac   : > { %2064 = vrot.lane.b32.xlu0 %v2055_v37, %s6064_s28  ;;  %s4626_s28 = smov 126  }
 0x5af   : > { %2140 = vrot.lane.b32.xlu1 %v2131_v38, %s6092_s4 }
 0x5b0   : > { %2116 = vrot.lane.b32.xlu0 %v2104_v13, %s6099_s7 }
 0x5b3   : > { %2144 = vrot.lane.b32.xlu1 %v2133_v39, %s6092_s4 }
 0x5b4   : > { %2138 = vrot.lane.b32.xlu0 %v2130_v5, %s6092_s4 }
 0x5b7   : > { %2163 = vrot.lane.b32.xlu1 %v2158_v41, %s6093_s30  ;;  %v5612_v41 = vld [vmem:[#allocation3 + $0x90] sm:$0xff] }
 0x5b8   : > { %2142 = vrot.lane.b32.xlu0 %v2130_v5, %s6092_s4 }
 0x5bb   : > { %2178 = vrot.lane.b32.xlu1 %v2173_v2, %s6100_s9  ;;  %v4415_v2 = vpack.c.bf16 %v5612_v41, %v2215_v40 }
 0x5bc   : > { %2161 = vrot.lane.b32.xlu0 %v2157_v43, %s6093_s30 }
 0x5bf   : > { %2186 = vrot.lane.b32.xlu1 %v2042_v32, %s6061_s27 }
 0x5c0   : > { %2176 = vrot.lane.b32.xlu0 %v2172_v45, %s6100_s9 }
 0x5c3   : > { %2201 = vrot.lane.b32.xlu1 %v2196_v46, %s6101_s17 }
 0x5c4   : > { %2184 = vrot.lane.b32.xlu0 %v2040_v33, %s6061_s27 }
 0x5c8   : > { %2199 = vrot.lane.b32.xlu0 %v2195_v47, %s6101_s17 }
 0x5cc   : > { %2229 = vperm.xlu0 %4578, %v2226_v49  }
 0x615   : > { %v2088_v61 = vpop.permute.xlu1 %2087 }
 0x616   : > { %v2091_v62 = vsel %vm2089_vm0, %v4583_v59, %v2088_v61  ;;  %v2084_v28 = vpop.permute.xlu0 %2083  ;;  %v2319_v61 = vld [vmem:[%s6024_s21 + $0x8] sm:$0xff] }
 0x617   : > { %2095 = vst.msk [vmem:[#allocation3 + $0x30] sm:$0xff] %vm837_vm7, %v2091_v62  ;;  %v2090_v63 = vsel %vm2089_vm0, %v4582_v60, %v2084_v28  ;;  %v2318_v60 = vld [vmem:[%s6024_s21] sm:$0xff] }
 0x618   : > { %2094 = vst.msk [vmem:[#allocation3 + $0x20] sm:$0xff] %vm837_vm7, %v2090_v63  ;;  %v4430_v62 = vpack.c.bf16 %v2319_v61, %v2318_v60  ;;  %v5660_v28 = vld [vmem:[%s6016_s12 + $0x1] sm:$0x1] }
 0x619   : > { %v2119_v0 = vpop.permute.xlu1 %2118  ;;  %2665 = vrot.lane.b32.xlu0 %v5660_v28, %s6093_s30  ;;  %v2748_v60 = vld [vmem:[%s6015_s11] sm:$0x7] }
 0x61a   : > { %v2069_v1 = vpop.permute.xlu0 %2068  ;;  %v5727_v61 = vld [vmem:[%s6014_s10] sm:$0x77] }
 0x61b   : > { %v2072_v8 = vsel %vm2070_vm4, %v2067_v56, %v2069_v1  ;;  %v5632_v56 = vsub.s32 0, %v5556_v48  ;;  %v3810_v1 = vld [vmem:[%s6024_s21 + $0x28] sm:$0xff] }
 0x61c   : > { %2076 = vst.msk [vmem:[#allocation3 + $0x10] sm:$0xff] %vm837_vm7, %v2072_v8 }
 0x61d   : > { %v2115_v9 = vpop.permute.xlu1 %2114  ;;  %v2240_v59 = vrot.slane %v5564_v51, %v5632_v56  ;;  %v5655_v51 = vld [vmem:[%s6016_s12] sm:$0x1] }
 0x61e   : > { %v2121_v10 = vsel %vm2120_vm6, %v2113_v58, %v2115_v9  ;;  %v2065_v11 = vpop.permute.xlu0 %2064  ;;  %v5593_v29 = vld [vmem:[#allocation3 + $0x30] sm:$0xff]  ;;  %2624 = vrot.lane.b32.xlu1 %v5655_v51, %s6100_s9 }
 0x61f   : > { %2125 = vst.msk [vmem:[#allocation3 + $0x40] sm:$0xff] %vm837_vm7, %v2121_v10  ;;  %v2071_v13 = vsel %vm2070_vm4, %v2063_v55, %v2065_v11  ;;  %v2209_v27 = vld [vmem:[#allocation3 + $0x20] sm:$0xff] }
 0x620   : > { %2075 = vst.msk [vmem:[#allocation3] sm:$0xff] %vm837_vm7, %v2071_v13  ;;  %v4406_v30 = vpack.c.bf16 %v5593_v29, %v2209_v27 }
 0x621   : > { %v2141_v14 = vpop.permute.xlu1 %2140 }
 0x622   : > { %v2117_v15 = vpop.permute.xlu0 %2116  ;;  %2687 = vrot.lane.b32.xlu1 %v5655_v51, %s6093_s30 }
 0x623   : > { %v2122_v16 = vsel %vm2120_vm6, %v2117_v15, %v2119_v0  ;;  %v5589_v21 = vld [vmem:[#allocation3 + $0x10] sm:$0xff]  ;;  %v3809_v0 = vld [vmem:[%s6024_s21 + $0x20] sm:$0xff]  ;;  %v3813_v15 = vld [vmem:[%s6024_s21 + $0x38] sm:$0xff] }
 0x624   : > { %2126 = vst.msk [vmem:[#allocation3 + $0x50] sm:$0xff] %vm837_vm7, %v2122_v16  ;;  %v4436_v10 = vpack.c.bf16 %v3810_v1, %v3809_v0 }
 0x625   : > { %v2145_v17 = vpop.permute.xlu1 %2144 }
 0x626   : > { %v2139_v18 = vpop.permute.xlu0 %2138  ;;  %v2211_v34 = vld [vmem:[#allocation3 + $0x40] sm:$0xff] }
 0x627   : > { %v2146_v19 = vsel %vm872_vm8, %v2139_v18, %v2141_v14  ;;  %v2207_v20 = vld [vmem:[#allocation3] sm:$0xff]  ;;  %v3812_v14 = vld [vmem:[%s6024_s21 + $0x30] sm:$0xff] }
 0x628   : > { %2150 = vst.msk [vmem:[#allocation3 + $0x60] sm:$0xff] %vm837_vm7, %v2146_v19  ;;  %v4403_v23 = vpack.c.bf16 %v5589_v21, %v2207_v20  ;;  %v4439_v16 = vpack.c.bf16 %v3813_v15, %v3812_v14 }
 0x629   : > { %v2164_v24 = vpop.permute.xlu1 %2163 }
 0x62a   : > { %2168 = vst.msk [vmem:[#allocation3 + $0xb0] sm:$0xff] %vm837_vm7, %v2164_v24  ;;  %v2143_v6 = vpop.permute.xlu0 %2142  ;;  %4404 = vmatpush1.bf16.msra.mxu1 %v4403_v23 }
 0x62b   : > { %v2147_v25 = vsel %vm872_vm8, %v2143_v6, %v2145_v17  ;;  %4405 = vmatprep.subr.bf16.mxu1 %v4616_v22  ;;  %v5600_v32 = vld [vmem:[#allocation3 + $0x50] sm:$0xff] }
 0x62c   : > { %2151 = vst.msk [vmem:[#allocation3 + $0x70] sm:$0xff] %vm837_vm7, %v2147_v25  ;;  %v4409_v35 = vpack.c.bf16 %v5600_v32, %v2211_v34 }
 0x62d   : > { %v2179_v31 = vpop.permute.xlu1 %2178 }
 0x62e   : > { %2183 = vst.msk [vmem:[#allocation3 + $0xd0] sm:$0xff] %vm837_vm7, %v2179_v31  ;;  %v2162_v33 = vpop.permute.xlu0 %2161  ;;  %4407 = vmatpush1.bf16.msra.mxu1 %v4406_v30 }
 0x62f   : > { %2167 = vst.msk [vmem:[#allocation3 + $0xa0] sm:$0xff] %vm837_vm7, %v2162_v33  ;;  %4408 = vmatprep.subr.bf16.mxu1 %v4616_v22  ;;  %v2213_v26 = vld [vmem:[#allocation3 + $0x60] sm:$0xff] }
 0x631   : > { %v2187_v36 = vpop.permute.xlu1 %2186  ;;  %v5620_v45 = vld [vmem:[#allocation3 + $0xb0] sm:$0xff] }
 0x632   : > { %2191 = vst.msk [vmem:[#allocation3 + $0xf0] sm:$0xff] %vm837_vm7, %v2187_v36  ;;  %v2177_v37 = vpop.permute.xlu0 %2176  ;;  %4410 = vmatpush1.bf16.msra.mxu1 %v4409_v35 }
 0x633   : > { %2182 = vst.msk [vmem:[#allocation3 + $0xc0] sm:$0xff] %vm837_vm7, %v2177_v37  ;;  %4411 = vmatprep.subr.bf16.mxu1 %v4616_v22  ;;  %v5609_v38 = vld [vmem:[#allocation3 + $0x70] sm:$0xff] }
 0x634   : > { %v4412_v5 = vpack.c.bf16 %v5609_v38, %v2213_v26 }
 0x635   : > { %v2202_v39 = vpop.permute.xlu1 %2201  ;;  %v5624_v49 = vld [vmem:[#allocation3 + $0xd0] sm:$0xff] }
 0x636   : > { %2206 = vst.msk [vmem:[#allocation3 + $0x110] sm:$0xff] %vm837_vm7, %v2202_v39  ;;  %v2185_v42 = vpop.permute.xlu0 %2184  ;;  %4413 = vmatpush1.bf16.msra.mxu1 %v4412_v5  ;;  %v2217_v43 = vld [vmem:[#allocation3 + $0xa0] sm:$0xff] }
 0x637   : > { %2190 = vst.msk [vmem:[#allocation3 + $0xe0] sm:$0xff] %vm837_vm7, %v2185_v42  ;;  %4414 = vmatprep.subr.bf16.mxu1 %v4616_v22  ;;  %v4418_v46 = vpack.c.bf16 %v5620_v45, %v2217_v43 }
 0x639   : > { %v5628_v3 = vld [vmem:[#allocation3 + $0xf0] sm:$0xff] }
 0x63a   : > { %v2200_v44 = vpop.permute.xlu0 %2199  ;;  %4416 = vmatpush1.bf16.msra.mxu1 %v4415_v2  ;;  %v2219_v47 = vld [vmem:[#allocation3 + $0xc0] sm:$0xff] }
 0x63b   : > { %2205 = vst.msk [vmem:[#allocation3 + $0x100] sm:$0xff] %vm837_vm7, %v2200_v44  ;;  %4417 = vmatprep.subr.bf16.mxu1 %v4616_v22  ;;  %v4421_v52 = vpack.c.bf16 %v5624_v49, %v2219_v47 }
 0x63d   : > { %v5635_v57 = vld [vmem:[#allocation3 + $0x110] sm:$0xff] }
 0x63e   : > { %4419 = vmatpush1.bf16.msra.mxu1 %v4418_v46  ;;  %v2221_v53 = vld [vmem:[#allocation3 + $0xe0] sm:$0xff] }
 0x63f   : > { %4420 = vmatprep.subr.bf16.mxu1 %v4616_v22  ;;  %v4424_v54 = vpack.c.bf16 %v5628_v3, %v2221_v53 }
 0x642   : > { %4422 = vmatpush1.bf16.msra.mxu1 %v4421_v52  ;;  %v2223_v55 = vld [vmem:[#allocation3 + $0x100] sm:$0xff] }
 0x643   : > { %4423 = vmatprep.subr.bf16.mxu1 %v4616_v22  ;;  %v4427_v58 = vpack.c.bf16 %v5635_v57, %v2223_v55 }
 0x646   : > { %4425 = vmatpush1.bf16.msra.mxu1 %v4424_v54 }
 0x647   : > { %4426 = vmatprep.subr.bf16.mxu1 %v4616_v22 }
 0x64a   : > { %4428 = vmatpush1.bf16.msra.mxu1 %v4427_v58 }
 0x64b   : > { %4429 = vmatprep.subr.bf16.mxu1 %v4616_v22  ;;  %v2230_v63 = vpop.permute.xlu0 %2229 }
 0x64c   : > { %v2235_v8 = vrot.slane %v2230_v63, %v5632_v56  ;;  %v2828_v63 = vld [vmem:[%s6025_s22] sm:$0xf] }
 0x64d   : > { %2313 = vmatmul.mubr.f32.vlgmr.msra.gmra.mrb[10].mxu1 %v2240_v59 }
 0x64e   : > { %4431 = vmatpush3.bf16.msra.mxu1 %v4430_v62  ;;  %4111 = vmatprep.mubr.msk.f32.mxu1 %vm4624_vm9, %v5383_v4  ;;  %v2755_v62 = vcombine.high %v5727_v61, %v5727_v61 }
 0x64f   : > { %4135 = vmatprep.subr.mxu1 %v5383_v4 }
 0x68b   : > { %v2666_v35 = vpop.permute.xlu0 %2665 }
 0x68c   : > { %v2667_v26 = vrot.slane %v2666_v35, 7 }
 0x68e   : > { %v2668_v43 = vsel %vm864_vm5, %v2667_v26, %v2666_v35 }
 0x690   : > { %v2625_v33 = vpop.permute.xlu1 %2624 }
 0x691   : > { %v2626_v34 = vrot.slane %v2625_v33, 7 }
 0x693   : > { %v2628_v37 = vsel %vm2627_vm11, %v2626_v34, %v2625_v33 }
 0x694   : > { %v2688_v39 = vpop.permute.xlu1 %2687 }
 0x695   : > { %v2689_v44 = vrot.slane %v2688_v39, 7 }
 0x697   : > { %v2690_v52 = vsel %vm864_vm5, %v2689_v44, %v2688_v39  ;;  %vm2911_vm5 = vcmask 124928  }
 0x720   : > { %v2314_v9 = vpop.f32.mrb[10].mxu1 }
 0x721   : > { %v2315_v11 = vadd.f32 %v2314_v9, %v2235_v8  ;;  %v2316_v13 = vpop.f32.mrb[11].mxu1 }
 0x723   : > { %4112 = vmatmul.mubr.msk.f32.vlgmr.msra.gmra.mrb[12].mxu1 %vm837_vm7, %v2315_v11  ;;  %4119 = vmatmul.mubr.msk.f32.vlgmr.msra.gmra.mrb[12].mxu0 %vm837_vm7, %v2315_v11 }
 0x724   : > { %4437 = vmatpush3.bf16.msra.mxu0 %v4436_v10  ;;  %4125 = vmatprep.mubr.msk.f32.mxu0 %vm4624_vm9, %v5383_v4 }
 0x725   : > { %4438 = vmatprep.subr.bf16.mxu0 %v4616_v22  ;;  %4137 = vmatprep.mubr.msk.f32.mxu1 %vm4624_vm9, %v5383_v4 }
 0x727   : > { %4126 = vmatmul.mubr.msk.f32.vlgmr.msra.gmra.mrb[14].mxu0 %vm837_vm7, %v2315_v11 }
 0x728   : > { %4440 = vmatpush3.bf16.msra.mxu0 %v4439_v16  ;;  %4132 = vmatprep.mubr.msk.f32.mxu0 %vm4624_vm9, %v5383_v4 }
 0x729   : > { %4441 = vmatprep.subr.bf16.mxu0 %v4616_v22 }
 0x72b   : > { %4133 = vmatmul.mubr.msk.f32.vlgmr.msra.gmra.mrb[16].mxu0 %vm837_vm7, %v2315_v11 }
 0x72c   : > { %3816 = vmatprep.mubr.msk.f32.mxu0 %vm837_vm7, %v2755_v62 }
 0x7f6   : > { %v2389_v17 = vpop.f32.mrb[12].mxu1  ;;  %v2462_v18 = vpop.f32.mrb[12].mxu0 }
 0x7f7   : > { %v2466_v19 = vmax.f32 %v2389_v17, %v2462_v18  ;;  %v4113_v20 = vpop.f32.mrb[13].mxu1  ;;  %v4120_v23 = vpop.f32.mrb[13].mxu0 }
 0x7fa   : > { %v2536_v24 = vpop.f32.mrb[14].mxu0 }
 0x7fb   : > { %v2540_v27 = vmax.f32 %v2466_v19, %v2536_v24  ;;  %v4127_v6 = vpop.f32.mrb[15].mxu0 }
 0x7fe   : > { %v2610_v25 = vpop.f32.mrb[16].mxu0 }
 0x7ff   : > { %v2614_v30 = vmax.f32 %v2540_v27, %v2610_v25  ;;  %v4134_v31 = vpop.f32.mrb[17].mxu0 }
 0x801   : > { %2618 = vst.msk [vmem:[#allocation2 + $0x8] sm:$0x1] %vm2617_vm10, %v2614_v30 }
 0x808   : > { %v2619_v36 = vld [vmem:[#allocation2] ss:$8 sm:$0xf] }
 0x809   : > { %2907 = vst [vmem:[#allocation2] sm:$0x7] %v5383_v4  ;;  %2908 = vst [vmem:[#allocation2 + $0x8] sm:$0x7] %v5383_v4  ;;  %v2630_v5 = vmul.f32 %v2628_v37, %v2619_v36  ;;  %v2655_v40 = vrot.slane %v2619_v36, %v5559_v50  ;;  %v2670_v46 = vmul.f32 %v2668_v43, %v2619_v36 }
 0x80a   : > { %2909 = vst [vmem:[#allocation2 + $0x10] sm:$0x7] %v5383_v4  ;;  %2910 = vst.msk [vmem:[#allocation2 + $0x18] sm:$0x7] %vm1459_vm3, %v5383_v4  ;;  %v2651_v47 = vrot.slane %v2619_v36, %v5632_v56  ;;  %v2692_v53 = vmul.f32 %v2690_v52, %v2619_v36  ;;  %vm2660_vm3 = vcmask 15360  }
 0x80b   : > { %3213 = vst [vmem:[#allocation2 + $0x10] sm:$0xff] %v5383_v4  ;;  %3214 = vst.msk [vmem:[#allocation2 + $0x18] sm:$0xff] %vm828_vm2, %v5383_v4  ;;  %v2639_v42 = vrot.slane %v2630_v5, %v5559_v50  ;;  %v2635_v2 = vrot.slane %v2630_v5, %v5632_v56  ;;  %v2679_v54 = vrot.slane %v2670_v46, %v5559_v50  ;;  %vm2832_vm2 = vcmask 1043456   ;;  %v3820_v52 = vld [vmem:[%s6019_s15] ss:$0 sm:$0xff] }
 0x80c   : > { %2710 = vst.msk [vmem:[#allocation3 + $0x80] sm:$0x1] %vm2617_vm10, %v2655_v40  ;;  %v2675_v55 = vrot.slane %v2670_v46, %v5632_v56  ;;  %v2701_v58 = vrot.slane %v2692_v53, %v5559_v50  ;;  %v2697_v59 = vrot.slane %v2692_v53, %v5632_v56  ;;  %4136 = vmatpush3.msk.msra.mxu1 %vm2832_vm2, %v2828_v63  ;;  %v3821_v53 = vld [vmem:[%s6019_s15 + $0x1] ss:$0 sm:$0xff] }
 0x80d   : > { %2642 = vrot.lane.b32.xlu1 %v2639_v42, %s6099_s7  ;;  %2640 = vrot.lane.b32.xlu0 %v2635_v2, %s6099_s7 }
 0x80e   : > { %4468 = vmatprep.subr.bf16.mxu1 %v4616_v22 }
 0x811   : > { %2658 = vrot.lane.b32.xlu1 %v2655_v40, %s4625_s5  ;;  %2656 = vrot.lane.b32.xlu0 %v2651_v47, %s4625_s5  ;;  %s6109_s5 = smov 120  }
 0x813   : > { %v2737_v39 = vld [vmem:[#allocation3 + $0x80] sm:$0xff] }
 0x815   : > { %2682 = vrot.lane.b32.xlu1 %v2679_v54, %s6092_s4  ;;  %2680 = vrot.lane.b32.xlu0 %v2675_v55, %s6092_s4  ;;  %v2913_v54 = vld [vmem:[#allocation2] sm:$0x7] }
 0x816   : > { %3211 = vst [vmem:[#allocation2] sm:$0xff] %v5383_v4 }
 0x819   : > { %2704 = vrot.lane.b32.xlu1 %v2701_v58, %s6092_s4  ;;  %2702 = vrot.lane.b32.xlu0 %v2697_v59, %s6092_s4 }
 0x81d   : > { %2719 = vrot.lane.b32.xlu1 %v2655_v40, %s4626_s28  ;;  %2711 = vrot.lane.b32.xlu0 %v2619_v36, %s6093_s30 }
 0x821   : > { %2751 = vperm.xlu1 %4577, %v2748_v60   ;;  %2723 = vrot.lane.b32.xlu0 %v2619_v36, %s6100_s9 }
 0x825   : > { %2923 = vrot.lane.b32.xlu0 %v3820_v52, %s6101_s17  ;;  %2951 = vrot.lane.b32.xlu1 %v3821_v53, %s6100_s9 }
 0x829   : > { %2980 = vrot.lane.b32.xlu1 %v3821_v53, %s6092_s4  ;;  %2965 = vrot.lane.b32.xlu0 %v3820_v52, %s6093_s30 }
 0x82d   : > { %3002 = vrot.lane.b32.xlu1 %v3821_v53, %s6103_s19  ;;  %2989 = vrot.lane.b32.xlu0 %v3820_v52, %s6099_s7 }
 0x87f   : > { %v2643_v0 = vpop.permute.xlu1 %2642  ;;  %v2641_v1 = vpop.permute.xlu0 %2640 }
 0x880   : > { %v2644_v8 = vsel %vm2120_vm6, %v2641_v1, %v2643_v0 }
 0x881   : > { %2646 = vst.msk [vmem:[#allocation3] sm:$0x1] %vm2617_vm10, %v2644_v8 }
 0x883   : > { %v2659_v9 = vpop.permute.xlu1 %2658  ;;  %v2657_v10 = vpop.permute.xlu0 %2656 }
 0x884   : > { %v2661_v11 = vsel %vm2660_vm3, %v2657_v10, %v2659_v9 }
 0x885   : > { %2663 = vst.msk [vmem:[#allocation3 + $0x20] sm:$0x1] %vm2617_vm10, %v2661_v11 }
 0x887   : > { %v2683_v13 = vpop.permute.xlu1 %2682  ;;  %v2681_v14 = vpop.permute.xlu0 %2680 }
 0x888   : > { %v2684_v15 = vsel %vm872_vm8, %v2681_v14, %v2683_v13  ;;  %v2729_v16 = vld [vmem:[#allocation3] sm:$0xff]  ;;  %v5788_v14 = vld [vmem:[#allocation3 + $0x18] sm:$0xff] }
 0x889   : > { %2686 = vst.msk [vmem:[#allocation3 + $0x40] sm:$0x1] %vm2617_vm10, %v2684_v15  ;;  %v4442_v17 = vpack.c.bf16 %v5589_v21, %v2729_v16 }
 0x88b   : > { %v2705_v18 = vpop.permute.xlu1 %2704  ;;  %4443 = vmatpush1.bf16.msra.mxu0 %v4442_v17  ;;  %v2703_v19 = vpop.permute.xlu0 %2702  ;;  %v3033_v17 = vld [vmem:[%s6018_s14] sm:$0xff] }
 0x88c   : > { %v2706_v20 = vsel %vm872_vm8, %v2703_v19, %v2705_v18  ;;  %4444 = vmatprep.subr.bf16.mxu0 %v4616_v22  ;;  %v2731_v23 = vld [vmem:[#allocation3 + $0x20] sm:$0xff] }
 0x88d   : > { %2708 = vst.msk [vmem:[#allocation3 + $0x60] sm:$0x1] %vm2617_vm10, %v2706_v20  ;;  %v4445_v24 = vpack.c.bf16 %v5593_v29, %v2731_v23 }
 0x88f   : > { %v2720_v27 = vpop.permute.xlu1 %2719  ;;  %4446 = vmatpush1.bf16.msra.mxu0 %v4445_v24  ;;  %v2712_v6 = vpop.permute.xlu0 %2711 }
 0x890   : > { %2722 = vst.msk [vmem:[#allocation3 + $0xe0] sm:$0x1] %vm2617_vm10, %v2720_v27  ;;  %v2713_v25 = vrot.slane %v2712_v6, 1  ;;  %4447 = vmatprep.subr.bf16.mxu0 %v4616_v22  ;;  %v2733_v30 = vld [vmem:[#allocation3 + $0x40] sm:$0xff]  ;;  %v3034_v6 = vld [vmem:[%s6018_s14 + $0x8] sm:$0xff] }
 0x891   : > { %v4448_v31 = vpack.c.bf16 %v5600_v32, %v2733_v30 }
 0x892   : > { %v2715_v33 = vmul.f32 %v5660_v28, %v2713_v25  ;;  %v2717_v34 = vmul.f32 %v2713_v25, %v5655_v51  ;;  %v4454_v51 = vpack.c.bf16 %v5612_v41, %v2737_v39  ;;  %v3030_v25 = vld [vmem:[%s6017_s13 + $0x8] sm:$0xff] }
 0x893   : > { %4449 = vmatpush1.bf16.msra.mxu0 %v4448_v31  ;;  %v2724_v35 = vpop.permute.xlu0 %2723 }
 0x894   : > { %2716 = vst.msk [vmem:[#allocation3 + $0xa0] sm:$0x1] %vm2617_vm10, %v2715_v33  ;;  %2718 = vst.msk [vmem:[#allocation3 + $0xc0] sm:$0x1] %vm2617_vm10, %v2717_v34  ;;  %v2725_v36 = vrot.slane %v2724_v35, 1  ;;  %4450 = vmatprep.subr.bf16.mxu0 %v4616_v22  ;;  %v2735_v37 = vld [vmem:[#allocation3 + $0x60] sm:$0xff] }
 0x895   : > { %v4451_v26 = vpack.c.bf16 %v5609_v38, %v2735_v37 }
 0x896   : > { %v2727_v5 = vmul.f32 %v5660_v28, %v2725_v36 }
 0x897   : > { %4452 = vmatpush1.bf16.msra.mxu0 %v4451_v26  ;;  %v2743_v43 = vld [vmem:[#allocation3 + $0xe0] sm:$0xff]  ;;  %v2924_v55 = vpop.permute.xlu0 %2923 }
 0x898   : > { %2728 = vst.msk [vmem:[#allocation3 + $0x100] sm:$0x1] %vm2617_vm10, %v2727_v5  ;;  %4453 = vmatprep.subr.bf16.mxu0 %v4616_v22  ;;  %v4463_v44 = vpack.c.bf16 %v5628_v3, %v2743_v43  ;;  %v2926_v58 = vmul.f32 %v2924_v55, %v2913_v54 }
 0x89a   : > { %2930 = vrot.lane.b32.xlu0 %v2926_v58, %s6103_s19 }
 0x89b   : > { %4455 = vmatpush1.bf16.msra.mxu0 %v4454_v51  ;;  %v2739_v40 = vld [vmem:[#allocation3 + $0xa0] sm:$0xff]  ;;  %v2966_v0 = vpop.permute.xlu0 %2965 }
 0x89c   : > { %4456 = vmatprep.subr.bf16.mxu0 %v4616_v22  ;;  %v4457_v42 = vpack.c.bf16 %v5620_v45, %v2739_v40  ;;  %v2741_v2 = vld [vmem:[#allocation3 + $0xc0] sm:$0xff]  ;;  %v2968_v1 = vmul.f32 %v2966_v0, %v2913_v54 }
 0x89d   : > { %v4460_v28 = vpack.c.bf16 %v5624_v49, %v2741_v2 }
 0x89e   : > { %2939 = vrot.lane.b32.xlu0 %v2913_v54, %s6104_s3 }
 0x89f   : > { %4458 = vmatpush1.bf16.msra.mxu0 %v4457_v42  ;;  %v2745_v46 = vld [vmem:[#allocation3 + $0x100] sm:$0xff]  ;;  %v2990_v20 = vpop.permute.xlu0 %2989 }
 0x8a0   : > { %4459 = vmatprep.subr.bf16.mxu0 %v4616_v22  ;;  %v4466_v47 = vpack.c.bf16 %v5635_v57, %v2745_v46  ;;  %v2752_v59 = vpop.permute.xlu1 %2751 }
 0x8a3   : > { %4461 = vmatpush1.bf16.msra.mxu0 %v4460_v28 }
 0x8a4   : > { %4462 = vmatprep.subr.bf16.mxu0 %v4616_v22  ;;  %v2952_v4 = vpop.permute.xlu1 %2951 }
 0x8a5   : > { %v2954_v63 = vmul.f32 %v2952_v4, %v2913_v54 }
 0x8a7   : > { %4464 = vmatpush1.bf16.msra.mxu0 %v4463_v44  ;;  %2958 = vrot.lane.b32.xlu0 %v2954_v63, %s6099_s7  ;;  %v3127_v63 = vld [vmem:[%s6026_s23 + $0x8] sm:$0xff] }
 0x8a8   : > { %4465 = vmatprep.subr.bf16.mxu0 %v4616_v22  ;;  %v2981_v13 = vpop.permute.xlu1 %2980 }
 0x8ab   : > { %4467 = vmatpush1.bf16.msra.mxu0 %v4466_v47  ;;  %2972 = vrot.lane.b32.xlu0 %v2968_v1, %s6092_s4  ;;  %v3827_v1 = vld [vmem:[%s6021_s18] ss:$0 sm:$0xff] }
 0x8ac   : > { %v3003_v24 = vpop.permute.xlu1 %3002 }
 0x8ae   : > { %2823 = vmatmul.mubr.f32.vlgmr.msra.gmra.mrb[18].mxu0 %v5727_v61 }
 0x90c   : > { %v2931_v30 = vpop.permute.xlu0 %2930 }
 0x910   : > { %v2940_v31 = vpop.permute.xlu0 %2939 }
 0x919   : > { %v2959_v33 = vpop.permute.xlu0 %2958 }
 0x91d   : > { %v2973_v34 = vpop.permute.xlu0 %2972 }
 0x981   : > { %v2824_v60 = vpop.f32.mrb[18].mxu0 }
 0x982   : > { %v2825_v61 = vadd.f32 %v2824_v60, %v2752_v59  ;;  %v2826_v62 = vpop.f32.mrb[19].mxu0 }
 0x984   : > { %4138 = vmatmul.mubr.msk.f32.vlgmr.msra.gmra.mrb[14].mxu1 %vm2089_vm0, %v2825_v61 }
 0x985   : > { %3822 = vmatprep.mubr.msk.f32.mxu1 %vm837_vm7, %v3030_v25 }
 0xa57   : > { %v2902_v8 = vpop.f32.mrb[14].mxu1 }
 0xa58   : > { %v2906_v9 = vmax.f32 %v2902_v8, 0.0  ;;  %v4139_v10 = vpop.f32.mrb[15].mxu1  ;;  %v3828_v8 = vld [vmem:[%s6021_s18 + $0x1] ss:$0 sm:$0xff] }
 0xa5a   : > { %2912 = vst.msk [vmem:[#allocation2 + $0x8] sm:$0x7] %vm2911_vm5, %v2906_v9 }
 0xa61   : > { %v2914_v11 = vld [vmem:[#allocation2 + $0x8] sm:$0x7] }
 0xa62   : > { %2979 = vst.msk [vmem:[#allocation3 + $0x80] sm:$0x7] %vm2911_vm5, %v2914_v11  ;;  %3212 = vst [vmem:[#allocation2 + $0x8] sm:$0xff] %v5788_v14  ;;  %v2983_v15 = vmul.f32 %v2981_v13, %v2914_v11  ;;  %v2927_v16 = vmul.f32 %v2924_v55, %v2914_v11  ;;  %v2955_v18 = vmul.f32 %v2952_v4, %v2914_v11 }
 0xa63   : > { %v2969_v19 = vmul.f32 %v2966_v0, %v2914_v11  ;;  %v2992_v23 = vmul.f32 %v2990_v20, %v2914_v11  ;;  %v3005_v27 = vmul.f32 %v3003_v24, %v2914_v11 }
 0xa64   : > { %2985 = vrot.lane.b32.xlu0 %v2983_v15, %s6093_s30  ;;  %2932 = vrot.lane.b32.xlu1 %v2927_v16, %s6103_s19 }
 0xa68   : > { %2998 = vrot.lane.b32.xlu0 %v2914_v11, %s6105_s2  ;;  %2941 = vrot.lane.b32.xlu1 %v2914_v11, %s6104_s3  ;;  %s6106_s3 = smov 7   ;;  %s6107_s2 = smov 9  }
 0xa69   : > { %v3019_v58 = vld [vmem:[#allocation3 + $0x80] sm:$0xff] }
 0xa6c   : > { %3037 = vperm.xlu0 %4578, %v3033_v17   ;;  %2960 = vrot.lane.b32.xlu1 %v2955_v18, %s6099_s7 }
 0xa70   : > { %2974 = vrot.lane.b32.xlu1 %v2969_v19, %s6092_s4  ;;  %3233 = vrot.lane.b32.xlu0 %v3827_v1, %s6095_s8 }
 0xa74   : > { %2994 = vrot.lane.b32.xlu1 %v2992_v23, %s6100_s9  ;;  %3306 = vrot.lane.b32.xlu0 %v3827_v1, %s6093_s30 }
 0xa78   : > { %3007 = vrot.lane.b32.xlu1 %v3005_v27, %s6101_s17  ;;  %3348 = vrot.lane.b32.xlu0 %v3827_v1, %s6106_s3 }
 0xa7c   : > { %3042 = vperm.xlu1 %4577, %v3034_v6  }
 0xa80   : > { %3281 = vrot.lane.b32.xlu1 %v3828_v8, %s6094_s1 }
 0xa84   : > { %3333 = vrot.lane.b32.xlu1 %v3828_v8, %s6092_s4 }
 0xa88   : > { %3371 = vrot.lane.b32.xlu1 %v3828_v8, %s6107_s2 }
 0xad6   : > { %v2986_v35 = vpop.permute.xlu0 %2985  ;;  %v2933_v36 = vpop.permute.xlu1 %2932 }
 0xad7   : > { %2988 = vst.msk [vmem:[#allocation3 + $0xa0] sm:$0x7] %vm2911_vm5, %v2986_v35  ;;  %v2934_v37 = vsel %vm2070_vm4, %v2931_v30, %v2933_v36 }
 0xad8   : > { %2936 = vst.msk [vmem:[#allocation3] sm:$0x7] %vm2911_vm5, %v2934_v37 }
 0xada   : > { %v2999_v26 = vpop.permute.xlu0 %2998  ;;  %v2942_v5 = vpop.permute.xlu1 %2941 }
 0xadb   : > { %3001 = vst.msk [vmem:[#allocation3 + $0xe0] sm:$0x7] %vm2911_vm5, %v2999_v26  ;;  %v2943_v39 = vsel %vm2089_vm0, %v2940_v31, %v2942_v5 }
 0xadc   : > { %2945 = vst.msk [vmem:[#allocation3 + $0x20] sm:$0x7] %vm2911_vm5, %v2943_v39 }
 0xade   : > { %v2961_v51 = vpop.permute.xlu1 %2960  ;;  %v3021_v59 = vld [vmem:[#allocation3 + $0xa0] sm:$0xff] }
 0xadf   : > { %v2962_v40 = vsel %vm2120_vm6, %v2959_v33, %v2961_v51  ;;  %v3011_v42 = vld [vmem:[#allocation3] sm:$0xff] }
 0xae0   : > { %2964 = vst.msk [vmem:[#allocation3 + $0x40] sm:$0x7] %vm2911_vm5, %v2962_v40  ;;  %v4469_v2 = vpack.c.bf16 %v5589_v21, %v3011_v42 }
 0xae2   : > { %4470 = vmatpush1.bf16.msra.mxu1 %v4469_v2  ;;  %v2975_v28 = vpop.permute.xlu1 %2974  ;;  %v3025_v62 = vld [vmem:[#allocation3 + $0xe0] sm:$0xff] }
 0xae3   : > { %v2976_v43 = vsel %vm872_vm8, %v2973_v34, %v2975_v28  ;;  %4471 = vmatprep.subr.bf16.mxu1 %v4616_v22  ;;  %v3013_v44 = vld [vmem:[#allocation3 + $0x20] sm:$0xff] }
 0xae4   : > { %2978 = vst.msk [vmem:[#allocation3 + $0x60] sm:$0x7] %vm2911_vm5, %v2976_v43  ;;  %v4472_v46 = vpack.c.bf16 %v5593_v29, %v3013_v44  ;;  %v4481_v29 = vpack.c.bf16 %v5612_v41, %v3019_v58 }
 0xae6   : > { %4473 = vmatpush1.bf16.msra.mxu1 %v4472_v46  ;;  %v2995_v47 = vpop.permute.xlu1 %2994 }
 0xae7   : > { %2997 = vst.msk [vmem:[#allocation3 + $0xc0] sm:$0x7] %vm2911_vm5, %v2995_v47  ;;  %4474 = vmatprep.subr.bf16.mxu1 %v4616_v22  ;;  %v3015_v52 = vld [vmem:[#allocation3 + $0x40] sm:$0xff] }
 0xae8   : > { %v4475_v21 = vpack.c.bf16 %v5600_v32, %v3015_v52  ;;  %v4484_v32 = vpack.c.bf16 %v5620_v45, %v3021_v59  ;;  %v3029_v45 = vld [vmem:[%s6017_s13] sm:$0xff]  ;;  %v3504_v59 = vld [vmem:[%s6027_s24 + $0x38] sm:$0xff] }
 0xae9   : > { %v3405_v47 = vld [vmem:[#allocation5] sm:$0x1] }
 0xaea   : > { %4476 = vmatpush1.bf16.msra.mxu1 %v4475_v21  ;;  %v3008_v53 = vpop.permute.xlu1 %3007  ;;  %v5904_v52 = vld [vmem:[%s6020_s16] sm:$0x3] }
 0xaeb   : > { %3010 = vst.msk [vmem:[#allocation3 + $0x100] sm:$0x7] %vm2911_vm5, %v3008_v53  ;;  %4477 = vmatprep.subr.bf16.mxu1 %v4616_v22  ;;  %v3017_v54 = vld [vmem:[#allocation3 + $0x60] sm:$0xff]  ;;  %v3038_v9 = vpop.permute.xlu0 %3037  ;;  %v3423_v21 = vrot.slane %v5904_v52, %v5559_v50  ;;  %v3498_v53 = vld [vmem:[%s6027_s24 + $0x8] sm:$0xff] }
 0xaec   : > { %v4478_v55 = vpack.c.bf16 %v5609_v38, %v3017_v54  ;;  %v4490_v38 = vpack.c.bf16 %v5628_v3, %v3025_v62  ;;  %v3031_v3 = vld [vmem:[%s6017_s13 + $0x10] sm:$0xff]  ;;  %v3500_v54 = vld [vmem:[%s6027_s24 + $0x18] sm:$0xff]  ;;  %v3502_v50 = vld [vmem:[%s6027_s24 + $0x28] sm:$0xff] }
 0xaed   : > { %v4526_v58 = vpack.c.bf16 %v3500_v54, %v3498_v53  ;;  %v3503_v62 = vld [vmem:[%s6027_s24 + $0x30] sm:$0xff] }
 0xaee   : > { %4479 = vmatpush1.bf16.msra.mxu1 %v4478_v55  ;;  %v3023_v60 = vld [vmem:[#allocation3 + $0xc0] sm:$0xff] }
 0xaef   : > { %4480 = vmatprep.subr.bf16.mxu1 %v4616_v22  ;;  %v4487_v61 = vpack.c.bf16 %v5624_v49, %v3023_v60  ;;  %v3032_v49 = vld [vmem:[%s6017_s13 + $0x18] sm:$0xff]  ;;  %v3234_v10 = vpop.permute.xlu0 %3233  ;;  %v3497_v55 = vld [vmem:[%s6027_s24] sm:$0xff]  ;;  %v4530_v60 = vpack.c.bf16 %v3504_v59, %v3502_v50 }
 0xaf0   : > { %v3236_v11 = vmul.f32 %v5788_v14, %v3234_v10 }
 0xaf2   : > { %4482 = vmatpush1.bf16.msra.mxu1 %v4481_v29  ;;  %v3027_v4 = vld [vmem:[#allocation3 + $0x100] sm:$0xff]  ;;  %3244 = vrot.lane.b32.xlu0 %v3236_v11, %s6107_s2  ;;  %v3499_v29 = vld [vmem:[%s6027_s24 + $0x10] sm:$0xff] }
 0xaf3   : > { %4483 = vmatprep.subr.bf16.mxu1 %v4616_v22  ;;  %v4493_v41 = vpack.c.bf16 %v5635_v57, %v3027_v4  ;;  %v3126_v57 = vld [vmem:[%s6026_s23] sm:$0xff]  ;;  %v3307_v37 = vpop.permute.xlu0 %3306  ;;  %v3508_v4 = vld [vmem:[%s6027_s24 + $0x58] sm:$0xff] }
 0xaf4   : > { %v4495_v0 = vpack.c.bf16 %v3127_v63, %v3126_v57  ;;  %v3309_v5 = vmul.f32 %v5788_v14, %v3307_v37  ;;  %v3510_v57 = vld [vmem:[%s6027_s24 + $0x68] sm:$0xff]  ;;  %v3512_v63 = vld [vmem:[%s6027_s24 + $0x78] sm:$0xff] }
 0xaf5   : > { %v4538_v1 = vpack.c.bf16 %v3512_v63, %v3510_v57 }
 0xaf6   : > { %4485 = vmatpush1.bf16.msra.mxu1 %v4484_v32  ;;  %4496 = vmatprep.subr.bf16.mxu0 %v4495_v0  ;;  %v4528_v32 = vpack.c.bf16 %v3499_v29, %v3497_v55 }
 0xaf7   : > { %4486 = vmatprep.subr.bf16.mxu1 %v4616_v22  ;;  %4498 = vmatpush3.bf16.msra.mxu0 %v4495_v0  ;;  %v3349_v42 = vpop.permute.xlu0 %3348 }
 0xaf8   : > { %4499 = vmatprep.subr.bf16.mxu0 %v4616_v22  ;;  %3248 = vrot.lane.b32.xlu0 %v3236_v11, %s6107_s2 }
 0xafa   : > { %4488 = vmatpush1.bf16.msra.mxu1 %v4487_v61  ;;  %v3501_v61 = vld [vmem:[%s6027_s24 + $0x20] sm:$0xff] }
 0xafb   : > { %4489 = vmatprep.subr.bf16.mxu1 %v4616_v22  ;;  %v3043_v17 = vpop.permute.xlu1 %3042 }
 0xafc   : > { %4585 = vrot.lane.b32.xlu0 %v5521_v12, %s6108_s0 }
 0xafe   : > { %4491 = vmatpush1.bf16.msra.mxu1 %v4490_v38  ;;  %v3506_v38 = vld [vmem:[%s6027_s24 + $0x48] sm:$0xff] }
 0xaff   : > { %4492 = vmatprep.subr.bf16.mxu1 %v4616_v22  ;;  %v3282_v23 = vpop.permute.xlu1 %3281 }
 0xb00   : > { %v3284_v24 = vmul.f32 %v5788_v14, %v3282_v23 }
 0xb02   : > { %4494 = vmatpush1.bf16.msra.mxu1 %v4493_v41  ;;  %3292 = vrot.lane.b32.xlu1 %v3284_v24, %s6106_s3  ;;  %v4532_v41 = vpack.c.bf16 %v3503_v62, %v3501_v61 }
 0xb03   : > { %v3334_v51 = vpop.permute.xlu1 %3333  ;;  %4527 = vmatprep.subr.bf16.mxu1 %v4526_v58 }
 0xb05   : > { %3116 = vmatmul.mubr.f32.vlgmr.msra.gmra.mrb[16].mxu1 %v3029_v45  ;;  %v4534_v45 = vpack.c.bf16 %v3508_v4, %v3506_v38 }
 0xb06   : > { %3823 = vmatprep.mubr.msk.f32.mxu1 %vm837_vm7, %v3032_v49  ;;  %4529 = vmatpush1.bf16.msra.mxu1 %v4528_v32  ;;  %v3505_v49 = vld [vmem:[%s6027_s24 + $0x40] sm:$0xff] }
 0xb07   : > { %v3372_v43 = vpop.permute.xlu1 %3371  ;;  %4531 = vmatprep.subr.bf16.mxu1 %v4530_v60 }
 0xb09   : > { %3121 = vmatmul.mubr.f32.gmra.mrb[18].mxu1 %v3031_v3  ;;  %v3507_v3 = vld [vmem:[%s6027_s24 + $0x50] sm:$0xff] }
 0xb0a   : > { %3580 = vmatprep.mubr.f32.mxu1 %v5788_v14  ;;  %4533 = vmatpush1.bf16.msra.mxu1 %v4532_v41  ;;  %v4536_v0 = vpack.c.bf16 %v3507_v3, %v3505_v49 }
 0xb0b   : > { %4535 = vmatprep.subr.bf16.mxu1 %v4534_v45 }
 0xb0e   : > { %4537 = vmatpush1.bf16.msra.mxu1 %v4536_v0 }
 0xb0f   : > { %4539 = vmatprep.subr.bf16.mxu1 %v4538_v1 }
 0xb64   : > { %v3245_v8 = vpop.permute.xlu0 %3244 }
 0xb74   : > { %v3293_v11 = vpop.permute.xlu1 %3292 }
 0xbd8   : > { %v3117_v13 = vpop.f32.mrb[16].mxu1 }
 0xbd9   : > { %v3118_v15 = vadd.f32 %v3117_v13, %v3038_v9  ;;  %v3119_v16 = vpop.f32.mrb[17].mxu1  ;;  %v3249_v9 = vpop.permute.xlu0 %3248 }
 0xbdb   : > { %4144 = vmatprep.mubr.msk.f32.mxu0 %vm837_vm7, %v3118_v15 }
 0xbdc   : > { %v3122_v18 = vpop.f32.mrb[18].mxu1 }
 0xbdd   : > { %v3123_v19 = vadd.f32 %v3122_v18, %v3043_v17  ;;  %v3124_v20 = vpop.f32.mrb[19].mxu1 }
 0xbdf   : > { %4145 = vmatmul.mubr.msk.f32.vlgmr.msra.gmra.mrb[20].mxu0 %vm837_vm7, %v3123_v19 }
 0xbe0   : > { %3829 = vmatprep.mubr.msk.f32.mxu0 %vm837_vm7, %v3423_v21 }
 0xcb2   : > { %v4146_v27 = vpop.f32.mrb[20].mxu0 }
 0xcb3   : > { %v3210_v6 = vmax.f32 %v4146_v27, 0.0  ;;  %v3200_v25 = vpop.f32.mrb[21].mxu0 }
 0xcb4   : > { %v3209_v30 = vmax.f32 %v3200_v25, 0.0 }
 0xcb5   : > { %3220 = vst.msk [vmem:[#allocation2 + $0x28] sm:$0xff] %vm1687_vm15, %v3210_v6 }
 0xcb6   : > { %3219 = vst.msk [vmem:[#allocation2 + $0x8] sm:$0xff] %vm1687_vm15, %v3209_v30 }
 0xcbc   : > { %v3224_v31 = vld [vmem:[#allocation2 + $0x28] sm:$0xff] }
 0xcbd   : > { %v3222_v33 = vld [vmem:[#allocation2 + $0x8] sm:$0xff]  ;;  %3332 = vst.msk [vmem:[#allocation3 + $0x90] sm:$0xff] %vm1687_vm15, %v3224_v31  ;;  %3268 = vrot.lane.b32.xlu0 %v3224_v31, %s6108_s0  ;;  %v3287_v12 = vmul.f32 %v3282_v23, %v3224_v31  ;;  %v3239_v34 = vmul.f32 %v3234_v10, %v3224_v31  ;;  %v3312_v39 = vmul.f32 %v3307_v37, %v3224_v31 }
 0xcbe   : > { %3331 = vst.msk [vmem:[#allocation3 + $0x80] sm:$0xff] %vm1687_vm15, %v3222_v33  ;;  %3264 = vrot.lane.b32.xlu1 %v3222_v33, %s6108_s0  ;;  %v3285_v35 = vmul.f32 %v3282_v23, %v3222_v33  ;;  %v3237_v36 = vmul.f32 %v3234_v10, %v3222_v33  ;;  %v3310_v26 = vmul.f32 %v3307_v37, %v3222_v33  ;;  %v4586_v10 = vpop.permute.xlu0 %4585 }
 0xcbf   : > { %v3337_v40 = vmul.f32 %v3334_v51, %v3224_v31  ;;  %v3352_v2 = vmul.f32 %v3349_v42, %v3224_v31  ;;  %v3336_v28 = vmul.f32 %v3334_v51, %v3222_v33  ;;  %v3351_v14 = vmul.f32 %v3349_v42, %v3222_v33 }
 0xcc0   : > { %v3375_v44 = vmul.f32 %v3372_v43, %v3224_v31  ;;  %v3374_v46 = vmul.f32 %v3372_v43, %v3222_v33  ;;  %v4588_v13 = vunpack.i.h.bf16 %v4586_v10  ;;  %v4587_v15 = vunpack.i.l.bf16 %v4586_v10  ;;  %v3509_v10 = vld [vmem:[%s6027_s24 + $0x60] sm:$0xff] }
 0xcc1   : > { %3298 = vrot.lane.b32.xlu0 %v3287_v12, %s6106_s3 }
 0xcc2   : > { %3250 = vrot.lane.b32.xlu1 %v3239_v34, %s6107_s2 }
 0xcc4   : > { %v3395_v59 = vld [vmem:[#allocation3 + $0x90] sm:$0xff] }
 0xcc5   : > { %3294 = vrot.lane.b32.xlu0 %v3285_v35, %s6106_s3  ;;  %v3394_v50 = vld [vmem:[#allocation3 + $0x80] sm:$0xff] }
 0xcc6   : > { %3246 = vrot.lane.b32.xlu1 %v3237_v36, %s6107_s2  ;;  %v4512_v60 = vpack.c.bf16 %v3395_v59, %v3394_v50 }
 0xcc9   : > { %3319 = vrot.lane.b32.xlu0 %v3310_v26, %s6092_s4 }
 0xcca   : > { %3296 = vrot.lane.b32.xlu1 %v3284_v24, %s6106_s3 }
 0xccd   : > { %3323 = vrot.lane.b32.xlu0 %v3312_v39, %s6092_s4 }
 0xcce   : > { %3317 = vrot.lane.b32.xlu1 %v3309_v5, %s6092_s4 }
 0xcd1   : > { %3342 = vrot.lane.b32.xlu0 %v3337_v40, %s6093_s30 }
 0xcd2   : > { %3321 = vrot.lane.b32.xlu1 %v3309_v5, %s6092_s4 }
 0xcd5   : > { %3357 = vrot.lane.b32.xlu0 %v3352_v2, %s6094_s1 }
 0xcd6   : > { %3340 = vrot.lane.b32.xlu1 %v3336_v28, %s6093_s30 }
 0xcd9   : > { %3365 = vrot.lane.b32.xlu0 %v3224_v31, %s6109_s5 }
 0xcda   : > { %3355 = vrot.lane.b32.xlu1 %v3351_v14, %s6094_s1 }
 0xcdd   : > { %3380 = vrot.lane.b32.xlu0 %v3375_v44, %s6095_s8 }
 0xcde   : > { %3363 = vrot.lane.b32.xlu1 %v3222_v33, %s6109_s5 }
 0xce2   : > { %3378 = vrot.lane.b32.xlu1 %v3374_v46, %s6095_s8  ;;  %s763_s8 = scalar_lea.vmem %s6028_s25, %s6110_s6 }
 0xce6   : > { %3408 = vperm.xlu1 %4577, %v3405_v47  }
 0xd2f   : > { %v3269_v16 = vpop.permute.xlu0 %3268 }
 0xd30   : > { %v3271_v17 = vsel %vm1494_vm13, %v4588_v13, %v3269_v16  ;;  %v3265_v18 = vpop.permute.xlu1 %3264 }
 0xd31   : > { %3275 = vst.msk [vmem:[#allocation3 + $0x30] sm:$0xff] %vm1687_vm15, %v3271_v17  ;;  %v3270_v19 = vsel %vm1494_vm13, %v4587_v15, %v3265_v18 }
 0xd32   : > { %3274 = vst.msk [vmem:[#allocation3 + $0x20] sm:$0xff] %vm1687_vm15, %v3270_v19 }
 0xd33   : > { %v3299_v20 = vpop.permute.xlu0 %3298 }
 0xd34   : > { %v3251_v23 = vpop.permute.xlu1 %3250 }
 0xd35   : > { %v3253_v24 = vsel %vm1484_vm12, %v3249_v9, %v3251_v23  ;;  %v3419_v9 = vrot.slane %v5904_v52, %v5632_v56  ;;  %v4627_v52 = vmov 1966171168  }
 0xd36   : > { %3257 = vst.msk [vmem:[#allocation3 + $0x10] sm:$0xff] %vm1687_vm15, %v3253_v24  ;;  %v3591_v19 = vunpack.c.l.s4 %v4627_v52 }
 0xd37   : > { %v3295_v27 = vpop.permute.xlu0 %3294 }
 0xd38   : > { %v3300_v6 = vsel %vm1514_vm14, %v3293_v11, %v3295_v27  ;;  %v3247_v25 = vpop.permute.xlu1 %3246  ;;  %v3389_v40 = vld [vmem:[#allocation3 + $0x30] sm:$0xff] }
 0xd39   : > { %3304 = vst.msk [vmem:[#allocation3 + $0x40] sm:$0xff] %vm1687_vm15, %v3300_v6  ;;  %v3252_v30 = vsel %vm1484_vm12, %v3245_v8, %v3247_v25  ;;  %v3388_v51 = vld [vmem:[#allocation3 + $0x20] sm:$0xff]  ;;  %v3511_v11 = vld [vmem:[%s6027_s24 + $0x70] sm:$0xff] }
 0xd3a   : > { %3256 = vst.msk [vmem:[#allocation3] sm:$0xff] %vm1687_vm15, %v3252_v30  ;;  %v4503_v28 = vpack.c.bf16 %v3389_v40, %v3388_v51  ;;  %v4540_v13 = vpack.c.bf16 %v3511_v11, %v3509_v10 }
 0xd3b   : > { %v3320_v31 = vpop.permute.xlu0 %3319 }
 0xd3c   : > { %v3297_v33 = vpop.permute.xlu1 %3296  ;;  %4541 = vmatpush1.bf16.msra.mxu1 %v4540_v13 }
 0xd3d   : > { %v3301_v12 = vsel %vm1514_vm14, %v3297_v33, %v3299_v20  ;;  %v3387_v26 = vld [vmem:[#allocation3 + $0x10] sm:$0xff]  ;;  %v3592_v20 = vunpack.c.0.s8 %v3591_v19 }
 0xd3e   : > { %3305 = vst.msk [vmem:[#allocation3 + $0x50] sm:$0xff] %vm1687_vm15, %v3301_v12 }
 0xd3f   : > { %v3324_v34 = vpop.permute.xlu0 %3323  ;;  %v3595_v24 = vsub.s32 %v3592_v20, %v5556_v48 }
 0xd40   : > { %v3318_v35 = vpop.permute.xlu1 %3317  ;;  %v3390_v46 = vld [vmem:[#allocation3 + $0x40] sm:$0xff] }
 0xd41   : > { %v3325_v36 = vsel %vm872_vm8, %v3318_v35, %v3320_v31  ;;  %v3386_v37 = vld [vmem:[#allocation3] sm:$0xff] }
 0xd42   : > { %3329 = vst.msk [vmem:[#allocation3 + $0x60] sm:$0xff] %vm1687_vm15, %v3325_v36  ;;  %v4500_v5 = vpack.c.bf16 %v3387_v26, %v3386_v37 }
 0xd43   : > { %v3343_v39 = vpop.permute.xlu0 %3342 }
 0xd44   : > { %3347 = vst.msk [vmem:[#allocation3 + $0xb0] sm:$0xff] %vm1687_vm15, %v3343_v39  ;;  %4501 = vmatpush1.bf16.msra.mxu0 %v4500_v5  ;;  %v3322_v42 = vpop.permute.xlu1 %3321 }
 0xd45   : > { %v3326_v2 = vsel %vm872_vm8, %v3322_v42, %v3324_v34  ;;  %4502 = vmatprep.subr.bf16.mxu0 %v4616_v22  ;;  %v3391_v43 = vld [vmem:[#allocation3 + $0x50] sm:$0xff] }
 0xd46   : > { %3330 = vst.msk [vmem:[#allocation3 + $0x70] sm:$0xff] %vm1687_vm15, %v3326_v2  ;;  %v4506_v47 = vpack.c.bf16 %v3391_v43, %v3390_v46 }
 0xd47   : > { %v3358_v14 = vpop.permute.xlu0 %3357 }
 0xd48   : > { %3362 = vst.msk [vmem:[#allocation3 + $0xd0] sm:$0xff] %vm1687_vm15, %v3358_v14  ;;  %4504 = vmatpush1.bf16.msra.mxu0 %v4503_v28  ;;  %v3341_v44 = vpop.permute.xlu1 %3340 }
 0xd49   : > { %3346 = vst.msk [vmem:[#allocation3 + $0xa0] sm:$0xff] %vm1687_vm15, %v3341_v44  ;;  %4505 = vmatprep.subr.bf16.mxu0 %v4616_v22  ;;  %v3392_v54 = vld [vmem:[#allocation3 + $0x60] sm:$0xff] }
 0xd4b   : > { %v3366_v21 = vpop.permute.xlu0 %3365  ;;  %v3397_v38 = vld [vmem:[#allocation3 + $0xb0] sm:$0xff] }
 0xd4c   : > { %3370 = vst.msk [vmem:[#allocation3 + $0xf0] sm:$0xff] %vm1687_vm15, %v3366_v21  ;;  %4507 = vmatpush1.bf16.msra.mxu0 %v4506_v47  ;;  %v3356_v53 = vpop.permute.xlu1 %3355 }
 0xd4d   : > { %3361 = vst.msk [vmem:[#allocation3 + $0xc0] sm:$0xff] %vm1687_vm15, %v3356_v53  ;;  %4508 = vmatprep.subr.bf16.mxu0 %v4616_v22  ;;  %v3393_v55 = vld [vmem:[#allocation3 + $0x70] sm:$0xff] }
 0xd4e   : > { %v4509_v58 = vpack.c.bf16 %v3393_v55, %v3392_v54 }
 0xd4f   : > { %v3381_v29 = vpop.permute.xlu0 %3380  ;;  %v3399_v45 = vld [vmem:[#allocation3 + $0xd0] sm:$0xff] }
 0xd50   : > { %3385 = vst.msk [vmem:[#allocation3 + $0x110] sm:$0xff] %vm1687_vm15, %v3381_v29  ;;  %4510 = vmatpush1.bf16.msra.mxu0 %v4509_v58  ;;  %v3364_v32 = vpop.permute.xlu1 %3363  ;;  %v3396_v61 = vld [vmem:[#allocation3 + $0xa0] sm:$0xff] }
 0xd51   : > { %3369 = vst.msk [vmem:[#allocation3 + $0xe0] sm:$0xff] %vm1687_vm15, %v3364_v32  ;;  %4511 = vmatprep.subr.bf16.mxu0 %v4616_v22  ;;  %v4515_v4 = vpack.c.bf16 %v3397_v38, %v3396_v61 }
 0xd53   : > { %v3401_v57 = vld [vmem:[#allocation3 + $0xf0] sm:$0xff] }
 0xd54   : > { %4513 = vmatpush1.bf16.msra.mxu0 %v4512_v60  ;;  %v3379_v62 = vpop.permute.xlu1 %3378  ;;  %v3398_v41 = vld [vmem:[#allocation3 + $0xc0] sm:$0xff] }
 0xd55   : > { %3384 = vst.msk [vmem:[#allocation3 + $0x100] sm:$0xff] %vm1687_vm15, %v3379_v62  ;;  %4514 = vmatprep.subr.bf16.mxu0 %v4616_v22  ;;  %v4518_v49 = vpack.c.bf16 %v3399_v45, %v3398_v41 }
 0xd57   : > { %v3403_v1 = vld [vmem:[#allocation3 + $0x110] sm:$0xff] }
 0xd58   : > { %4516 = vmatpush1.bf16.msra.mxu0 %v4515_v4  ;;  %v3400_v3 = vld [vmem:[#allocation3 + $0xe0] sm:$0xff] }
 0xd59   : > { %4517 = vmatprep.subr.bf16.mxu0 %v4616_v22  ;;  %v4521_v63 = vpack.c.bf16 %v3401_v57, %v3400_v3 }
 0xd5c   : > { %4519 = vmatpush1.bf16.msra.mxu0 %v4518_v49  ;;  %v3402_v0 = vld [vmem:[#allocation3 + $0x100] sm:$0xff] }
 0xd5d   : > { %4520 = vmatprep.subr.bf16.mxu0 %v4616_v22  ;;  %v4524_v8 = vpack.c.bf16 %v3403_v1, %v3402_v0 }
 0xd60   : > { %4522 = vmatpush1.bf16.msra.mxu0 %v4521_v63 }
 0xd61   : > { %4523 = vmatprep.subr.bf16.mxu0 %v4616_v22 }
 0xd64   : > { %4525 = vmatpush1.bf16.msra.mxu0 %v4524_v8 }
 0xd65   : > { %v3409_v15 = vpop.permute.xlu1 %3408 }
 0xd66   : > { %v3414_v22 = vrot.slane %v3409_v15, %v5632_v56 }
 0xd67   : > { %3492 = vmatmul.mubr.f32.vlgmr.msra.gmra.mrb[22].mxu0 %v3419_v9 }
 0xe3a   : > { %v3493_v16 = vpop.f32.mrb[22].mxu0 }
 0xe3b   : > { %v3494_v17 = vadd.f32 %v3493_v16, %v3414_v22  ;;  %v3495_v18 = vpop.f32.mrb[23].mxu0 }
 0xe3d   : > { %3830 = vmatmul.mubr.msk.f32.vlgmr.msra.gmra.mrb[20].mxu1 %vm1687_vm15, %v3494_v17 }
 0xf10   : > { %v3582_v23 = vpop.f32.mrb[20].mxu1 }
 0xf11   : > { %v3584_v27 = vpop.f32.mrb[21].mxu1 }
 0xf12   : > { %v3589_v6 = vcombine.low %v3582_v23, %v3584_v27 }
 0xf14   : > { %v3596_v25 = vrot.slane %v3589_v6, %v3595_v24 }
 0xf16   : > { %v3603_v56 = vrot.slane %v3596_v25, %v3595_v24 }
 0xf18   : > { %3605 = vst.msk [vmem:[%s763_s8] sm:$0x3] %vm4839_vm1, %v3603_v56 }
 0xf19 PF: > { %s6111_s7 = sld [smem:[#allocation6_spill]] }
 0xf1f   : > { %s39_s3 = sadd.s32 1, %s6111_s7  }
 0xf20   : > { %p36_p4 = scmp.ge.s32.totalorder %s39_s3, 4  }
 0xf22   :  { %38 = sbr.rel (!%p36_p4) target bundleno = 18 (0x12), region = 174 }

</bundles_post_ra>
